<compile_context>
chip_gen: v7x
topology: tpu7x:2x2x1
jax: 0.10.0
libtpu: 0.0.40
codegen_flags: <defaults>
</compile_context>

<pallas_src>
import functools

import jax
import jax.numpy as jnp
from jax import lax
from jax.experimental import pallas as pl
from jax.experimental.pallas import tpu as pltpu


def _silu(x):
    # x * sigmoid(x); exp runs on the EUP slot, math stays in f32.
    return x * (1.0 / (1.0 + jnp.exp(-x)))


def _bn_fold(gamma, beta, mean, var, eps=1e-5):
    scale = gamma / jnp.sqrt(var + eps)
    bias = beta - mean * scale
    return scale.astype(jnp.float32), bias.astype(jnp.float32)


# ----------------------------------------------------------------------------
# Fused Bottleneck kernel (one row tile of one image per grid step)
# ----------------------------------------------------------------------------
def _bottleneck_kernel(xt_ref, xc_ref, xb_ref, w1_ref, b1_ref, w2_ref, b2_ref,
                       o_ref, y_ref, *, TH, W, add):
    # xt_ref : (1, 1,  W+2, C1)  halo row above the tile (row r*TH-1, clamped)
    # xc_ref : (1, TH, W+2, C1)  tile rows [r*TH, (r+1)*TH)   (W zero-padded)
    # xb_ref : (1, 1,  W+2, C1)  halo row below the tile (row (r+1)*TH, clamped)
    # w1_ref : (C1, C_)          cv1 weights, BN1 scale folded in
    # b1_ref : (1, C_)   f32     BN1 bias
    # w2_ref : (9, C_, C2)       cv2 taps (HWIO, row-major kh*3+kw), BN2 scale folded
    # b2_ref : (1, C2)   f32     BN2 bias
    # o_ref  : (1, TH, W, C2)
    # y_ref  : VMEM (TH+2, W+2, C_) f32 scratch (cv1 output, zero border)
    r = pl.program_id(1)
    nr = pl.num_programs(1)

    w1 = w1_ref[...]
    b1 = b1_ref[...]

    # Zero mask for the left/right conv-padding columns of y.
    col_ids = lax.broadcasted_iota(jnp.int32, (1, W + 2, 1), 1)
    col_mask = ((col_ids >= 1) & (col_ids <= W)).astype(jnp.float32)

    def cv1(x_piece):                       # (R, W+2, C1) -> (R, W+2, C_) f32
        z = jnp.dot(x_piece, w1, preferred_element_type=jnp.float32)
        z = _silu(z + b1)
        return z * col_mask

    # Rows above row 0 / below row H-1 are the 3x3 conv's zero padding.
    top_scale = jnp.where(r > 0, 1.0, 0.0)
    bot_scale = jnp.where(r < nr - 1, 1.0, 0.0)

    y_ref[0:1, :, :] = cv1(xt_ref[0]) * top_scale
    y_ref[1:TH + 1, :, :] = cv1(xc_ref[0])
    y_ref[TH + 1:TH + 2, :, :] = cv1(xb_ref[0]) * bot_scale

    # 3x3 conv as 9 shifted matmuls, accumulated in vregs (f32). Column shift =
    # one sliced load per dw (3 instead of 9 relayouts); row shift = free slice
    # on the leading dim.
    w2 = w2_ref[...]
    acc = None
    for dw in range(3):
        ycol = y_ref[:, dw:dw + W, :].astype(w2.dtype)   # (TH+2, W, C_)
        for dh in range(3):
            patch = ycol[dh:dh + TH]                     # (TH, W, C_)
            z = jnp.dot(patch, w2[dh * 3 + dw],
                        preferred_element_type=jnp.float32)
            acc = z if acc is None else acc + z

    out = _silu(acc + b2_ref[...])
    if add:
        # Residual = un-padded center columns of the already-loaded x block.
        out = out + xc_ref[0, :, 1:W + 1, :].astype(jnp.float32)
    o_ref[...] = out[None].astype(o_ref.dtype)


def _largest_divisor_leq(n, cap):
    cap = max(1, min(n, cap))
    for d in range(cap, 0, -1):
        if n % d == 0:
            return d
    return 1


def bottleneck_forward(x_nchw, params, shortcut=True, *,
                       block_rows=16, compute_dtype=jnp.bfloat16):
    """Bottleneck forward. x_nchw: (N, C1, H, W) -> (N, C2, H, W)."""
    # TODO(synk): grouped conv (g > 1) not implemented; Bottleneck default g=1.
    # TODO(synk): NCHW<->NHWC transposes could be dropped by keeping the whole
    #             model NHWC; kept to match the PyTorch module interface.
    # TODO(synk): channel counts < 128 give lane-sparse stores; real configs
    #             should pad/keep C2 a multiple of 128 (or pack W*C2 on lanes).
    c1 = x_nchw.shape[1]
    c_ = params["w1"].shape[-1]
    c2 = params["w2"].shape[-1]

    s1, b1 = _bn_fold(*params["bn1"])
    s2, b2 = _bn_fold(*params["bn2"])
    # Fold BN scale into the conv weights; bias stays as an in-kernel add.
    w1 = (params["w1"].astype(jnp.float32) * s1[None, :]).astype(compute_dtype)
    w2 = (params["w2"].astype(jnp.float32) * s2).astype(compute_dtype)
    w2 = w2.reshape(9, c_, c2)

    x = jnp.transpose(x_nchw, (0, 2, 3, 1))                    # NCHW -> NHWC
    n, h, wd, _ = x.shape
    # Pad W only (3x3 conv left/right zero padding); row padding is handled
    # in-kernel with halo rows + masking.
    xw = jnp.pad(x, ((0, 0), (0, 0), (1, 1), (0, 0))).astype(compute_dtype)

    th = _largest_divisor_leq(h, block_rows)
    nr = h // th
    add = bool(shortcut) and (c1 == c2)

    kernel = functools.partial(_bottleneck_kernel, TH=th, W=wd, add=add)

    grid_spec = pltpu.PrefetchScalarGridSpec(
        num_scalar_prefetch=0,
        grid=(n, nr),
        in_specs=[
            # halo row above (clamped; zeroed in-kernel when r == 0)
            pl.BlockSpec((1, 1, wd + 2, c1),
                         lambda i, r: (i, jnp.maximum(r * th - 1, 0), 0, 0)),
            # center rows of the tile
            pl.BlockSpec((1, th, wd + 2, c1), lambda i, r: (i, r, 0, 0)),
            # halo row below (clamped; zeroed in-kernel when r == nr - 1)
            pl.BlockSpec((1, 1, wd + 2, c1),
                         lambda i, r: (i, jnp.minimum((r + 1) * th, h - 1), 0, 0)),
            pl.BlockSpec((c1, c_), lambda i, r: (0, 0)),
            pl.BlockSpec((1, c_), lambda i, r: (0, 0)),
            pl.BlockSpec((9, c_, c2), lambda i, r: (0, 0, 0)),
            pl.BlockSpec((1, c2), lambda i, r: (0, 0)),
        ],
        out_specs=pl.BlockSpec((1, th, wd, c2), lambda i, r: (i, r, 0, 0)),
        scratch_shapes=[
            pltpu.VMEM((th + 2, wd + 2, c_), jnp.float32),  # cv1 output tile
        ],
    )

    out = pl.pallas_call(
        kernel,
        out_shape=jax.ShapeDtypeStruct((n, h, wd, c2), x_nchw.dtype),
        grid_spec=grid_spec,
        compiler_params=pltpu.CompilerParams(
            dimension_semantics=("parallel", "parallel")),
    )(xw, xw, xw, w1, b1.reshape(1, c_), w2, b2.reshape(1, c2))

    return jnp.transpose(out, (0, 3, 1, 2))                    # NHWC -> NCHW


# ----------------------------------------------------------------------------
# Parameter init + pure-JAX reference (for the correctness check)
# ----------------------------------------------------------------------------
def init_bottleneck_params(key, c1, c2, e=0.5):
    c_ = int(c2 * e)
    ks = jax.random.split(key, 10)
    return {
        # 1x1 conv weight as [Cin, Cout] (PyTorch [c_, c1, 1, 1] transposed)
        "w1": 0.1 * jax.random.normal(ks[0], (c1, c_), jnp.float32),
        # 3x3 conv weight as HWIO [3, 3, c_, c2]
        "w2": 0.1 * jax.random.normal(ks[1], (3, 3, c_, c2), jnp.float32),
        "bn1": (
            jax.random.uniform(ks[2], (c_,), jnp.float32, 0.5, 1.5),   # gamma
            0.1 * jax.random.normal(ks[3], (c_,), jnp.float32),        # beta
            0.1 * jax.random.normal(ks[4], (c_,), jnp.float32),        # mean
            jax.random.uniform(ks[5], (c_,), jnp.float32, 0.5, 1.5),   # var
        ),
        "bn2": (
            jax.random.uniform(ks[6], (c2,), jnp.float32, 0.5, 1.5),
            0.1 * jax.random.normal(ks[7], (c2,), jnp.float32),
            0.1 * jax.random.normal(ks[8], (c2,), jnp.float32),
            jax.random.uniform(ks[9], (c2,), jnp.float32, 0.5, 1.5),
        ),
    }


def bottleneck_reference(x_nchw, params, shortcut=True):
    x = jnp.transpose(x_nchw, (0, 2, 3, 1))
    s1, b1 = _bn_fold(*params["bn1"])
    s2, b2 = _bn_fold(*params["bn2"])
    w1 = params["w1"][None, None]  # HWIO [1,1,c1,c_]
    y = lax.conv_general_dilated(x, w1, (1, 1), "SAME",
                                 dimension_numbers=("NHWC", "HWIO", "NHWC"))
    y = y * s1 + b1
    y = y * jax.nn.sigmoid(y)
    z = lax.conv_general_dilated(y, params["w2"], (1, 1), "SAME",
                                 dimension_numbers=("NHWC", "HWIO", "NHWC"))
    z = z * s2 + b2
    z = z * jax.nn.sigmoid(z)
    if shortcut and x.shape[-1] == z.shape[-1]:
        z = z + x
    return jnp.transpose(z, (0, 3, 1, 2))


if __name__ == "__main__":
    key = jax.random.PRNGKey(0)
    k_param, k_x = jax.random.split(key)

    N, C1, C2, H, W = 2, 4, 4, 16, 16  # c1 == c2 -> shortcut add active
    params = init_bottleneck_params(k_param, C1, C2, e=0.5)
    x = jax.random.normal(k_x, (N, C1, H, W), jnp.float32)

    ref = jax.block_until_ready(bottleneck_reference(x, params, shortcut=True))

    # f32 compute path: tight structural check.
    out_f32 = jax.block_until_ready(
        bottleneck_forward(x, params, shortcut=True,
                           compute_dtype=jnp.float32))
    assert out_f32.shape == (N, C2, H, W)
    assert jnp.allclose(out_f32, ref, atol=2e-3, rtol=2e-3), "f32 mismatch"

    # bf16 MXU path (default / optimized): looser tolerance.
    out_bf16 = jax.block_until_ready(
        bottleneck_forward(x, params, shortcut=True,
                           compute_dtype=jnp.bfloat16))
    assert out_bf16.shape == (N, C2, H, W)
    assert jnp.allclose(out_bf16, ref, atol=5e-2, rtol=5e-2), "bf16 mismatch"

    # Also exercise a multi-row-tile grid (th < H) to cover the halo path.
    out_tiled = jax.block_until_ready(
        bottleneck_forward(x, params, shortcut=True,
                           block_rows=8, compute_dtype=jnp.float32))
    assert jnp.allclose(out_tiled, ref, atol=2e-3, rtol=2e-3), "tiled mismatch"

    print("KERNEL_OK")
</pallas_src>

<mosaic_0001>
module attributes {stable_mosaic.version = 11 : i64} {
  func.func @_bottleneck_kernel(%arg0: i32, %arg1: i32, %arg2: memref<1x1x18x4xf32, #tpu.memory_space<vmem>>, %arg3: memref<1x16x18x4xf32, #tpu.memory_space<vmem>>, %arg4: memref<1x1x18x4xf32, #tpu.memory_space<vmem>>, %arg5: memref<4x2xf32, #tpu.memory_space<vmem>>, %arg6: memref<1x2xf32, #tpu.memory_space<vmem>>, %arg7: memref<9x2x4xf32, #tpu.memory_space<vmem>>, %arg8: memref<1x4xf32, #tpu.memory_space<vmem>>, %arg9: memref<1x16x16x4xf32, #tpu.memory_space<vmem>>, %arg10: memref<18x18x2xf32, #tpu.memory_space<vmem>>) attributes {dimension_semantics = [#tpu.dimension_semantics<parallel>, #tpu.dimension_semantics<parallel>], iteration_bounds = array<i64: 2, 1>, scalar_prefetch = 0 : i64, scratch_operands = 1 : i64, tpu.core_type = #tpu.core_type<tc>, window_params = [{transform_indices = @transform_0, window_bounds = array<i64: 1, 1, 18, 4>}, {transform_indices = @transform_1, window_bounds = array<i64: 1, 16, 18, 4>}, {transform_indices = @transform_2, window_bounds = array<i64: 1, 1, 18, 4>}, {pipeline_mode = #tpu.pipeline_mode<synchronous>, transform_indices = @transform_3, window_bounds = array<i64: 4, 2>}, {pipeline_mode = #tpu.pipeline_mode<synchronous>, transform_indices = @transform_4, window_bounds = array<i64: 1, 2>}, {pipeline_mode = #tpu.pipeline_mode<synchronous>, transform_indices = @transform_5, window_bounds = array<i64: 9, 2, 4>}, {pipeline_mode = #tpu.pipeline_mode<synchronous>, transform_indices = @transform_6, window_bounds = array<i64: 1, 4>}, {transform_indices = @transform_7, window_bounds = array<i64: 1, 16, 16, 4>}]} {
    %c0 = arith.constant 0 : index
    %c0_0 = arith.constant 0 : index
    %0 = vector.load %arg5[%c0, %c0_0] : memref<4x2xf32, #tpu.memory_space<vmem>>, vector<4x2xf32>
    %c0_1 = arith.constant 0 : index
    %c0_2 = arith.constant 0 : index
    %1 = vector.load %arg6[%c0_1, %c0_2] : memref<1x2xf32, #tpu.memory_space<vmem>>, vector<1x2xf32>
    %2 = tpu.iota {dimensions = array<i32: 1>} : vector<1x18x1xi32>
    %c1_i32 = arith.constant 1 : i32
    %3 = vector.broadcast %c1_i32 : i32 to vector<1x18x1xi32>
    %4 = arith.cmpi sge, %2, %3 : vector<1x18x1xi32>
    %c16_i32 = arith.constant 16 : i32
    %5 = vector.broadcast %c16_i32 : i32 to vector<1x18x1xi32>
    %6 = arith.cmpi sle, %2, %5 : vector<1x18x1xi32>
    %7 = arith.andi %4, %6 : vector<1x18x1xi1>
    %8 = arith.extui %7 : vector<1x18x1xi1> to vector<1x18x1xi32>
    %9 = arith.sitofp %8 : vector<1x18x1xi32> to vector<1x18x1xf32>
    %c0_i32 = arith.constant 0 : i32
    %10 = arith.cmpi sgt, %arg1, %c0_i32 : i32
    %cst = arith.constant 1.000000e+00 : f32
    %cst_3 = arith.constant 0.000000e+00 : f32
    %11 = arith.select %10, %cst, %cst_3 : f32
    %c0_i32_4 = arith.constant 0 : i32
    %12 = arith.cmpi slt, %arg1, %c0_i32_4 : i32
    %cst_5 = arith.constant 1.000000e+00 : f32
    %cst_6 = arith.constant 0.000000e+00 : f32
    %13 = arith.select %12, %cst_5, %cst_6 : f32
    %c0_7 = arith.constant 0 : index
    %c0_8 = arith.constant 0 : index
    %c0_9 = arith.constant 0 : index
    %c0_10 = arith.constant 0 : index
    %14 = vector.load %arg2[%c0_7, %c0_8, %c0_9, %c0_10] : memref<1x1x18x4xf32, #tpu.memory_space<vmem>>, vector<1x1x18x4xf32>
    %15 = vector.shape_cast %14 : vector<1x1x18x4xf32> to vector<1x18x4xf32>
    %cst_11 = arith.constant dense<0.000000e+00> : vector<1x18x2xf32>
    %16 = tpu.matmul %15, %0, %cst_11 {dimension_numbers = #tpu.dot_dimension_numbers<[2], [0], [0, 1], [1], [0, 0, 0, 1, 1, 1], [], []>} : vector<1x18x4xf32>, vector<4x2xf32>, vector<1x18x2xf32> -> vector<1x18x2xf32>
    %17 = vector.shape_cast %1 : vector<1x2xf32> to vector<1x1x2xf32>
    %18 = vector.broadcast %17 : vector<1x1x2xf32> to vector<1x18x2xf32>
    %19 = arith.addf %16, %18 : vector<1x18x2xf32>
    %cst_12 = arith.constant 0.000000e+00 : f32
    %20 = vector.broadcast %cst_12 : f32 to vector<1x18x2xf32>
    %21 = arith.subf %20, %19 : vector<1x18x2xf32>
    %22 = math.exp %21 : vector<1x18x2xf32>
    %cst_13 = arith.constant 1.000000e+00 : f32
    %23 = vector.broadcast %cst_13 : f32 to vector<1x18x2xf32>
    %24 = arith.addf %23, %22 : vector<1x18x2xf32>
    %cst_14 = arith.constant 1.000000e+00 : f32
    %25 = vector.broadcast %cst_14 : f32 to vector<1x18x2xf32>
    %26 = arith.divf %25, %24 : vector<1x18x2xf32>
    %27 = arith.mulf %19, %26 : vector<1x18x2xf32>
    %28 = vector.broadcast %9 : vector<1x18x1xf32> to vector<1x18x2xf32>
    %29 = arith.mulf %27, %28 : vector<1x18x2xf32>
    %30 = vector.broadcast %11 : f32 to vector<1x18x2xf32>
    %31 = arith.mulf %29, %30 : vector<1x18x2xf32>
    %c0_15 = arith.constant 0 : index
    %c0_16 = arith.constant 0 : index
    %c0_17 = arith.constant 0 : index
    %32 = vector.load %arg10[%c0_15, %c0_16, %c0_17] : memref<18x18x2xf32, #tpu.memory_space<vmem>>, vector<1x18x2xf32>
    tpu.vector_store %arg10[%c0_15, %c0_16, %c0_17], %31 {strides = array<i32>} : memref<18x18x2xf32, #tpu.memory_space<vmem>>, vector<1x18x2xf32>,
    %c0_18 = arith.constant 0 : index
    %c0_19 = arith.constant 0 : index
    %c0_20 = arith.constant 0 : index
    %c0_21 = arith.constant 0 : index
    %33 = vector.load %arg3[%c0_18, %c0_19, %c0_20, %c0_21] : memref<1x16x18x4xf32, #tpu.memory_space<vmem>>, vector<1x16x18x4xf32>
    %34 = vector.shape_cast %33 : vector<1x16x18x4xf32> to vector<16x18x4xf32>
    %cst_22 = arith.constant dense<0.000000e+00> : vector<16x18x2xf32>
    %35 = tpu.matmul %34, %0, %cst_22 {dimension_numbers = #tpu.dot_dimension_numbers<[2], [0], [0, 1], [1], [0, 0, 0, 1, 1, 1], [], []>} : vector<16x18x4xf32>, vector<4x2xf32>, vector<16x18x2xf32> -> vector<16x18x2xf32>
    %36 = vector.shape_cast %1 : vector<1x2xf32> to vector<1x1x2xf32>
    %37 = vector.broadcast %36 : vector<1x1x2xf32> to vector<16x18x2xf32>
    %38 = arith.addf %35, %37 : vector<16x18x2xf32>
    %cst_23 = arith.constant 0.000000e+00 : f32
    %39 = vector.broadcast %cst_23 : f32 to vector<16x18x2xf32>
    %40 = arith.subf %39, %38 : vector<16x18x2xf32>
    %41 = math.exp %40 : vector<16x18x2xf32>
    %cst_24 = arith.constant 1.000000e+00 : f32
    %42 = vector.broadcast %cst_24 : f32 to vector<16x18x2xf32>
    %43 = arith.addf %42, %41 : vector<16x18x2xf32>
    %cst_25 = arith.constant 1.000000e+00 : f32
    %44 = vector.broadcast %cst_25 : f32 to vector<16x18x2xf32>
    %45 = arith.divf %44, %43 : vector<16x18x2xf32>
    %46 = arith.mulf %38, %45 : vector<16x18x2xf32>
    %47 = vector.broadcast %9 : vector<1x18x1xf32> to vector<16x18x2xf32>
    %48 = arith.mulf %46, %47 : vector<16x18x2xf32>
    %c1 = arith.constant 1 : index
    %c0_26 = arith.constant 0 : index
    %c0_27 = arith.constant 0 : index
    %49 = vector.load %arg10[%c1, %c0_26, %c0_27] : memref<18x18x2xf32, #tpu.memory_space<vmem>>, vector<16x18x2xf32>
    tpu.vector_store %arg10[%c1, %c0_26, %c0_27], %48 {strides = array<i32>} : memref<18x18x2xf32, #tpu.memory_space<vmem>>, vector<16x18x2xf32>,
    %c0_28 = arith.constant 0 : index
    %c0_29 = arith.constant 0 : index
    %c0_30 = arith.constant 0 : index
    %c0_31 = arith.constant 0 : index
    %50 = vector.load %arg4[%c0_28, %c0_29, %c0_30, %c0_31] : memref<1x1x18x4xf32, #tpu.memory_space<vmem>>, vector<1x1x18x4xf32>
    %51 = vector.shape_cast %50 : vector<1x1x18x4xf32> to vector<1x18x4xf32>
    %cst_32 = arith.constant dense<0.000000e+00> : vector<1x18x2xf32>
    %52 = tpu.matmul %51, %0, %cst_32 {dimension_numbers = #tpu.dot_dimension_numbers<[2], [0], [0, 1], [1], [0, 0, 0, 1, 1, 1], [], []>} : vector<1x18x4xf32>, vector<4x2xf32>, vector<1x18x2xf32> -> vector<1x18x2xf32>
    %53 = vector.shape_cast %1 : vector<1x2xf32> to vector<1x1x2xf32>
    %54 = vector.broadcast %53 : vector<1x1x2xf32> to vector<1x18x2xf32>
    %55 = arith.addf %52, %54 : vector<1x18x2xf32>
    %cst_33 = arith.constant 0.000000e+00 : f32
    %56 = vector.broadcast %cst_33 : f32 to vector<1x18x2xf32>
    %57 = arith.subf %56, %55 : vector<1x18x2xf32>
    %58 = math.exp %57 : vector<1x18x2xf32>
    %cst_34 = arith.constant 1.000000e+00 : f32
    %59 = vector.broadcast %cst_34 : f32 to vector<1x18x2xf32>
    %60 = arith.addf %59, %58 : vector<1x18x2xf32>
    %cst_35 = arith.constant 1.000000e+00 : f32
    %61 = vector.broadcast %cst_35 : f32 to vector<1x18x2xf32>
    %62 = arith.divf %61, %60 : vector<1x18x2xf32>
    %63 = arith.mulf %55, %62 : vector<1x18x2xf32>
    %64 = vector.broadcast %9 : vector<1x18x1xf32> to vector<1x18x2xf32>
    %65 = arith.mulf %63, %64 : vector<1x18x2xf32>
    %66 = vector.broadcast %13 : f32 to vector<1x18x2xf32>
    %67 = arith.mulf %65, %66 : vector<1x18x2xf32>
    %c17 = arith.constant 17 : index
    %c0_36 = arith.constant 0 : index
    %c0_37 = arith.constant 0 : index
    %68 = vector.load %arg10[%c17, %c0_36, %c0_37] : memref<18x18x2xf32, #tpu.memory_space<vmem>>, vector<1x18x2xf32>
    tpu.vector_store %arg10[%c17, %c0_36, %c0_37], %67 {strides = array<i32>} : memref<18x18x2xf32, #tpu.memory_space<vmem>>, vector<1x18x2xf32>,
    %c0_38 = arith.constant 0 : index
    %c0_39 = arith.constant 0 : index
    %c0_40 = arith.constant 0 : index
    %69 = vector.load %arg7[%c0_38, %c0_39, %c0_40] : memref<9x2x4xf32, #tpu.memory_space<vmem>>, vector<9x2x4xf32>
    %c0_41 = arith.constant 0 : index
    %c0_42 = arith.constant 0 : index
    %c0_43 = arith.constant 0 : index
    %70 = vector.load %arg10[%c0_41, %c0_42, %c0_43] : memref<18x18x2xf32, #tpu.memory_space<vmem>>, vector<18x16x2xf32>
    %71 = vector.extract_strided_slice %70 {offsets = [0, 0, 0], sizes = [16, 16, 2], strides = [1, 1, 1]} : vector<18x16x2xf32> to vector<16x16x2xf32>
    %72 = vector.extract_strided_slice %69 {offsets = [0, 0, 0], sizes = [1, 2, 4], strides = [1, 1, 1]} : vector<9x2x4xf32> to vector<1x2x4xf32>
    %73 = vector.shape_cast %72 : vector<1x2x4xf32> to vector<2x4xf32>
    %cst_44 = arith.constant dense<0.000000e+00> : vector<16x16x4xf32>
    %74 = tpu.matmul %71, %73, %cst_44 {dimension_numbers = #tpu.dot_dimension_numbers<[2], [0], [0, 1], [1], [0, 0, 0, 1, 1, 1], [], []>} : vector<16x16x2xf32>, vector<2x4xf32>, vector<16x16x4xf32> -> vector<16x16x4xf32>
    %75 = vector.extract_strided_slice %70 {offsets = [1, 0, 0], sizes = [16, 16, 2], strides = [1, 1, 1]} : vector<18x16x2xf32> to vector<16x16x2xf32>
    %76 = vector.extract_strided_slice %69 {offsets = [3, 0, 0], sizes = [1, 2, 4], strides = [1, 1, 1]} : vector<9x2x4xf32> to vector<1x2x4xf32>
    %77 = vector.shape_cast %76 : vector<1x2x4xf32> to vector<2x4xf32>
    %cst_45 = arith.constant dense<0.000000e+00> : vector<16x16x4xf32>
    %78 = tpu.matmul %75, %77, %cst_45 {dimension_numbers = #tpu.dot_dimension_numbers<[2], [0], [0, 1], [1], [0, 0, 0, 1, 1, 1], [], []>} : vector<16x16x2xf32>, vector<2x4xf32>, vector<16x16x4xf32> -> vector<16x16x4xf32>
    %79 = arith.addf %74, %78 : vector<16x16x4xf32>
    %80 = vector.extract_strided_slice %70 {offsets = [2, 0, 0], sizes = [16, 16, 2], strides = [1, 1, 1]} : vector<18x16x2xf32> to vector<16x16x2xf32>
    %81 = vector.extract_strided_slice %69 {offsets = [6, 0, 0], sizes = [1, 2, 4], strides = [1, 1, 1]} : vector<9x2x4xf32> to vector<1x2x4xf32>
    %82 = vector.shape_cast %81 : vector<1x2x4xf32> to vector<2x4xf32>
    %cst_46 = arith.constant dense<0.000000e+00> : vector<16x16x4xf32>
    %83 = tpu.matmul %80, %82, %cst_46 {dimension_numbers = #tpu.dot_dimension_numbers<[2], [0], [0, 1], [1], [0, 0, 0, 1, 1, 1], [], []>} : vector<16x16x2xf32>, vector<2x4xf32>, vector<16x16x4xf32> -> vector<16x16x4xf32>
    %84 = arith.addf %79, %83 : vector<16x16x4xf32>
    %c0_47 = arith.constant 0 : index
    %c1_48 = arith.constant 1 : index
    %c0_49 = arith.constant 0 : index
    %85 = vector.load %arg10[%c0_47, %c1_48, %c0_49] : memref<18x18x2xf32, #tpu.memory_space<vmem>>, vector<18x16x2xf32>
    %86 = vector.extract_strided_slice %85 {offsets = [0, 0, 0], sizes = [16, 16, 2], strides = [1, 1, 1]} : vector<18x16x2xf32> to vector<16x16x2xf32>
    %87 = vector.extract_strided_slice %69 {offsets = [1, 0, 0], sizes = [1, 2, 4], strides = [1, 1, 1]} : vector<9x2x4xf32> to vector<1x2x4xf32>
    %88 = vector.shape_cast %87 : vector<1x2x4xf32> to vector<2x4xf32>
    %cst_50 = arith.constant dense<0.000000e+00> : vector<16x16x4xf32>
    %89 = tpu.matmul %86, %88, %cst_50 {dimension_numbers = #tpu.dot_dimension_numbers<[2], [0], [0, 1], [1], [0, 0, 0, 1, 1, 1], [], []>} : vector<16x16x2xf32>, vector<2x4xf32>, vector<16x16x4xf32> -> vector<16x16x4xf32>
    %90 = arith.addf %84, %89 : vector<16x16x4xf32>
    %91 = vector.extract_strided_slice %85 {offsets = [1, 0, 0], sizes = [16, 16, 2], strides = [1, 1, 1]} : vector<18x16x2xf32> to vector<16x16x2xf32>
    %92 = vector.extract_strided_slice %69 {offsets = [4, 0, 0], sizes = [1, 2, 4], strides = [1, 1, 1]} : vector<9x2x4xf32> to vector<1x2x4xf32>
    %93 = vector.shape_cast %92 : vector<1x2x4xf32> to vector<2x4xf32>
    %cst_51 = arith.constant dense<0.000000e+00> : vector<16x16x4xf32>
    %94 = tpu.matmul %91, %93, %cst_51 {dimension_numbers = #tpu.dot_dimension_numbers<[2], [0], [0, 1], [1], [0, 0, 0, 1, 1, 1], [], []>} : vector<16x16x2xf32>, vector<2x4xf32>, vector<16x16x4xf32> -> vector<16x16x4xf32>
    %95 = arith.addf %90, %94 : vector<16x16x4xf32>
    %96 = vector.extract_strided_slice %85 {offsets = [2, 0, 0], sizes = [16, 16, 2], strides = [1, 1, 1]} : vector<18x16x2xf32> to vector<16x16x2xf32>
    %97 = vector.extract_strided_slice %69 {offsets = [7, 0, 0], sizes = [1, 2, 4], strides = [1, 1, 1]} : vector<9x2x4xf32> to vector<1x2x4xf32>
    %98 = vector.shape_cast %97 : vector<1x2x4xf32> to vector<2x4xf32>
    %cst_52 = arith.constant dense<0.000000e+00> : vector<16x16x4xf32>
    %99 = tpu.matmul %96, %98, %cst_52 {dimension_numbers = #tpu.dot_dimension_numbers<[2], [0], [0, 1], [1], [0, 0, 0, 1, 1, 1], [], []>} : vector<16x16x2xf32>, vector<2x4xf32>, vector<16x16x4xf32> -> vector<16x16x4xf32>
    %100 = arith.addf %95, %99 : vector<16x16x4xf32>
    %c0_53 = arith.constant 0 : index
    %c2 = arith.constant 2 : index
    %c0_54 = arith.constant 0 : index
    %101 = vector.load %arg10[%c0_53, %c2, %c0_54] : memref<18x18x2xf32, #tpu.memory_space<vmem>>, vector<18x16x2xf32>
    %102 = vector.extract_strided_slice %101 {offsets = [0, 0, 0], sizes = [16, 16, 2], strides = [1, 1, 1]} : vector<18x16x2xf32> to vector<16x16x2xf32>
    %103 = vector.extract_strided_slice %69 {offsets = [2, 0, 0], sizes = [1, 2, 4], strides = [1, 1, 1]} : vector<9x2x4xf32> to vector<1x2x4xf32>
    %104 = vector.shape_cast %103 : vector<1x2x4xf32> to vector<2x4xf32>
    %cst_55 = arith.constant dense<0.000000e+00> : vector<16x16x4xf32>
    %105 = tpu.matmul %102, %104, %cst_55 {dimension_numbers = #tpu.dot_dimension_numbers<[2], [0], [0, 1], [1], [0, 0, 0, 1, 1, 1], [], []>} : vector<16x16x2xf32>, vector<2x4xf32>, vector<16x16x4xf32> -> vector<16x16x4xf32>
    %106 = arith.addf %100, %105 : vector<16x16x4xf32>
    %107 = vector.extract_strided_slice %101 {offsets = [1, 0, 0], sizes = [16, 16, 2], strides = [1, 1, 1]} : vector<18x16x2xf32> to vector<16x16x2xf32>
    %108 = vector.extract_strided_slice %69 {offsets = [5, 0, 0], sizes = [1, 2, 4], strides = [1, 1, 1]} : vector<9x2x4xf32> to vector<1x2x4xf32>
    %109 = vector.shape_cast %108 : vector<1x2x4xf32> to vector<2x4xf32>
    %cst_56 = arith.constant dense<0.000000e+00> : vector<16x16x4xf32>
    %110 = tpu.matmul %107, %109, %cst_56 {dimension_numbers = #tpu.dot_dimension_numbers<[2], [0], [0, 1], [1], [0, 0, 0, 1, 1, 1], [], []>} : vector<16x16x2xf32>, vector<2x4xf32>, vector<16x16x4xf32> -> vector<16x16x4xf32>
    %111 = arith.addf %106, %110 : vector<16x16x4xf32>
    %112 = vector.extract_strided_slice %101 {offsets = [2, 0, 0], sizes = [16, 16, 2], strides = [1, 1, 1]} : vector<18x16x2xf32> to vector<16x16x2xf32>
    %113 = vector.extract_strided_slice %69 {offsets = [8, 0, 0], sizes = [1, 2, 4], strides = [1, 1, 1]} : vector<9x2x4xf32> to vector<1x2x4xf32>
    %114 = vector.shape_cast %113 : vector<1x2x4xf32> to vector<2x4xf32>
    %cst_57 = arith.constant dense<0.000000e+00> : vector<16x16x4xf32>
    %115 = tpu.matmul %112, %114, %cst_57 {dimension_numbers = #tpu.dot_dimension_numbers<[2], [0], [0, 1], [1], [0, 0, 0, 1, 1, 1], [], []>} : vector<16x16x2xf32>, vector<2x4xf32>, vector<16x16x4xf32> -> vector<16x16x4xf32>
    %116 = arith.addf %111, %115 : vector<16x16x4xf32>
    %c0_58 = arith.constant 0 : index
    %c0_59 = arith.constant 0 : index
    %117 = vector.load %arg8[%c0_58, %c0_59] : memref<1x4xf32, #tpu.memory_space<vmem>>, vector<1x4xf32>
    %118 = vector.shape_cast %117 : vector<1x4xf32> to vector<1x1x4xf32>
    %119 = vector.broadcast %118 : vector<1x1x4xf32> to vector<16x16x4xf32>
    %120 = arith.addf %116, %119 : vector<16x16x4xf32>
    %cst_60 = arith.constant 0.000000e+00 : f32
    %121 = vector.broadcast %cst_60 : f32 to vector<16x16x4xf32>
    %122 = arith.subf %121, %120 : vector<16x16x4xf32>
    %123 = math.exp %122 : vector<16x16x4xf32>
    %cst_61 = arith.constant 1.000000e+00 : f32
    %124 = vector.broadcast %cst_61 : f32 to vector<16x16x4xf32>
    %125 = arith.addf %124, %123 : vector<16x16x4xf32>
    %cst_62 = arith.constant 1.000000e+00 : f32
    %126 = vector.broadcast %cst_62 : f32 to vector<16x16x4xf32>
    %127 = arith.divf %126, %125 : vector<16x16x4xf32>
    %128 = arith.mulf %120, %127 : vector<16x16x4xf32>
    %c0_63 = arith.constant 0 : index
    %c0_64 = arith.constant 0 : index
    %c1_65 = arith.constant 1 : index
    %c0_66 = arith.constant 0 : index
    %129 = vector.load %arg3[%c0_63, %c0_64, %c1_65, %c0_66] : memref<1x16x18x4xf32, #tpu.memory_space<vmem>>, vector<1x16x16x4xf32>
    %130 = vector.shape_cast %129 : vector<1x16x16x4xf32> to vector<16x16x4xf32>
    %131 = arith.addf %128, %130 : vector<16x16x4xf32>
    %132 = vector.shape_cast %131 : vector<16x16x4xf32> to vector<1x16x16x4xf32>
    %c0_67 = arith.constant 0 : index
    %c0_68 = arith.constant 0 : index
    %c0_69 = arith.constant 0 : index
    %c0_70 = arith.constant 0 : index
    %133 = vector.load %arg9[%c0_67, %c0_68, %c0_69, %c0_70] : memref<1x16x16x4xf32, #tpu.memory_space<vmem>>, vector<1x16x16x4xf32>
    tpu.vector_store %arg9[%c0_67, %c0_68, %c0_69, %c0_70], %132 {strides = array<i32>} : memref<1x16x16x4xf32, #tpu.memory_space<vmem>>, vector<1x16x16x4xf32>,
    return
  }
  func.func @transform_0(%arg0: i32, %arg1: i32) -> (i32, i32, i32, i32) {
    %c16_i32 = arith.constant 16 : i32
    %0 = arith.muli %arg1, %c16_i32 : i32
    %c1_i32 = arith.constant 1 : i32
    %1 = arith.subi %0, %c1_i32 : i32
    %c0_i32 = arith.constant 0 : i32
    %2 = arith.maxsi %1, %c0_i32 : i32
    %c0_i32_0 = arith.constant 0 : i32
    %c0_i32_1 = arith.constant 0 : i32
    %c0_i32_2 = arith.constant 0 : i32
    return %arg0, %2, %c0_i32_0, %c0_i32_1 : i32, i32, i32, i32
  }
  func.func @transform_1(%arg0: i32, %arg1: i32) -> (i32, i32, i32, i32) {
    %c0_i32 = arith.constant 0 : i32
    %c0_i32_0 = arith.constant 0 : i32
    %c0_i32_1 = arith.constant 0 : i32
    return %arg0, %arg1, %c0_i32, %c0_i32_0 : i32, i32, i32, i32
  }
  func.func @transform_2(%arg0: i32, %arg1: i32) -> (i32, i32, i32, i32) {
    %c1_i32 = arith.constant 1 : i32
    %0 = arith.addi %arg1, %c1_i32 : i32
    %c16_i32 = arith.constant 16 : i32
    %1 = arith.muli %0, %c16_i32 : i32
    %c15_i32 = arith.constant 15 : i32
    %2 = arith.minsi %1, %c15_i32 : i32
    %c0_i32 = arith.constant 0 : i32
    %c0_i32_0 = arith.constant 0 : i32
    %c0_i32_1 = arith.constant 0 : i32
    return %arg0, %2, %c0_i32, %c0_i32_0 : i32, i32, i32, i32
  }
  func.func @transform_3(%arg0: i32, %arg1: i32) -> (i32, i32) {
    %c0_i32 = arith.constant 0 : i32
    %c0_i32_0 = arith.constant 0 : i32
    %c0_i32_1 = arith.constant 0 : i32
    return %c0_i32, %c0_i32_0 : i32, i32
  }
  func.func @transform_4(%arg0: i32, %arg1: i32) -> (i32, i32) {
    %c0_i32 = arith.constant 0 : i32
    %c0_i32_0 = arith.constant 0 : i32
    %c0_i32_1 = arith.constant 0 : i32
    return %c0_i32, %c0_i32_0 : i32, i32
  }
  func.func @transform_5(%arg0: i32, %arg1: i32) -> (i32, i32, i32) {
    %c0_i32 = arith.constant 0 : i32
    %c0_i32_0 = arith.constant 0 : i32
    %c0_i32_1 = arith.constant 0 : i32
    %c0_i32_2 = arith.constant 0 : i32
    return %c0_i32, %c0_i32_0, %c0_i32_1 : i32, i32, i32
  }
  func.func @transform_6(%arg0: i32, %arg1: i32) -> (i32, i32) {
    %c0_i32 = arith.constant 0 : i32
    %c0_i32_0 = arith.constant 0 : i32
    %c0_i32_1 = arith.constant 0 : i32
    return %c0_i32, %c0_i32_0 : i32, i32
  }
  func.func @transform_7(%arg0: i32, %arg1: i32) -> (i32, i32, i32, i32) {
    %c0_i32 = arith.constant 0 : i32
    %c0_i32_0 = arith.constant 0 : i32
    %c0_i32_1 = arith.constant 0 : i32
    return %arg0, %arg1, %c0_i32, %c0_i32_0 : i32, i32, i32, i32
  }
}

</mosaic_0001>

<bundles_post_ra>
// kernel: tpu_custom_call.1
= control target key start
LH: loop header
LB: loop body
LE: loop exit
PB: predicated region body
PF: predicated region fallthrough
CT: control target
= control target key end

     0   :  { %s11036_s24 = smov 0   ;;  %s11038_s25 = smov 0   ;;  %s13950_s0 = inlined_call_operand.vmem [shape: f32[2,16,18,4], index: 0, kind: input, shape index: {}]   ;;  %s13951_s1 = inlined_call_operand.vmem [shape: f32[2,16,18,4], index: 1, kind: input, shape index: {}]   ;;  %s13952_s2 = inlined_call_operand.vmem [shape: f32[2,16,18,4], index: 2, kind: input, shape index: {}]   ;;  %s13953_s3 = inlined_call_operand.vmem [shape: f32[4,2], index: 3, kind: input, shape index: {}]   ;;  %s13954_s4 = inlined_call_operand.vmem [shape: f32[1,2], index: 4, kind: input, shape index: {}]   ;;  %s13955_s5 = inlined_call_operand.vmem [shape: f32[9,2,4], index: 5, kind: input, shape index: {}]   ;;  %s13956_s6 = inlined_call_operand.vmem [shape: f32[1,4], index: 6, kind: input, shape index: {}]   ;;  %s13957_s7 = inlined_call_operand.vmem [shape: f32[2,16,16,4], index: 7, kind: output, shape index: {}]  }
   0x1   :  { %s11040_s26 = smov 0  }
   0x2 LB: > { %s29_s27 = sadd.s32 1, %s10982_s25  ;;  %p8619_p0 = scmp.ge.s32.totalorder %s10986_s26, 1  ;;  %s10986_s26 = sphi %s11040_s26, %s17_s26   ;;  %s10982_s25 = sphi %s11038_s25, %s14023_s25   ;;  %s10978_s24 = sphi %s11036_s24, %s14022_s24  }
   0x3   : > { %p31_p1 = scmp.ge.s32.totalorder %s29_s27, 2  ;;  %p323_p2 = scmp.lt.s32.totalorder %s10986_s26, 3 }
   0x5   : > { %s14025_s27 = smov (%p31_p1, %s29_s27), 0  ;;  %p324_p3 = pnand %p8619_p0, %p323_p2 }
   0x7   : > { %327 = sbr.rel (%p324_p3) target bundleno = 1152 (0x480), region = 48 }
   0xe   : > { %v447_v0 = vld [vmem:[%s13953_s3] sm:$0xf]  ;;  %vm491_vm0 = vcmask 1043456   ;;  %p395_p4 = scmp.lt.s32.totalorder %s10978_s24, 1  ;;  %v449_v1 = vlaneseq  ;;  %v10988_v2 = vmov 0.0   ;;  %vm10990_vm1 = vmmov 0  }
   0xf   : > { %9334 = vmatprep.subr.mxu0 %v10988_v2  ;;  %9862 = vmatprep.subr.mxu1 %v10988_v2  ;;  %v10989_v4 = vmov 1983009808   ;;  %vm481_vm2 = vcmask 31744   ;;  %vm603_vm5 = vcmask 15360   ;;  %vm606_vm6 = vcmask 9216  }
  0x10   : > { %9335 = vmatpush3.msk.msra.mxu0 %vm491_vm0, %v447_v0  ;;  %9863 = vmatpush3.msk.msra.mxu1 %vm491_vm0, %v447_v0  ;;  %s14027_s24 = smov (!%p395_p4, %s10978_s24), 1  ;;  %v11063_v3 = vshrl.u32 %v449_v1, 7  ;;  %v706_v5 = vunpack.c.l.s4 %v10989_v4  ;;  %vm5541_vm7 = vcmask 1041408  }
  0x11   : > { %9336 = vmatprep.mubr.msk.f32.mxu0 %vm10990_vm1, %v10988_v2  ;;  %9339 = vmatprep.mubr.msk.f32.mxu1 %vm10990_vm1, %v10988_v2  ;;  %s11070_s30 = smul.u32 384, %s14027_s24 }
  0x12   : > { %9345 = vmatprep.subr.msk.mxu1 %vm491_vm0, %v447_v0  ;;  %v707_v6 = vunpack.c.0.s8 %v706_v5  ;;  %9401 = vmatprep.subr.mxu0 %v10988_v2  ;;  %vm453_vm3 = vcmp.ge.s32.totalorder %v11063_v3, 1 }
  0x13   : > { %s403_s10 = scalar_lea.vmem %s13950_s0, %s11070_s30  ;;  %s11082_s13 = scalar_lea.vmem %s13951_s1, %s11070_s30 }
  0x14   : > { %v11085_v7 = vsub.s32 %v707_v6, %v11063_v3  ;;  %v472_v8 = vld [vmem:[%s403_s10] sm:$0xff]  ;;  %v473_v9 = vld [vmem:[%s403_s10 + $0x8] sm:$0xff]  ;;  %v474_v10 = vld [vmem:[%s403_s10 + $0x10] sm:$0x3]  ;;  %s8990_s14 = sadd.s32 360, %s11070_s30  ;;  %s8991_s30 = sshll.u32 %s14027_s24, 8 }
  0x15   : > { %9337 = vmatmul.mubr.msk.f32.vlgmr.msra.gmra.mrb[0].mxu0 %vm481_vm2, %v472_v8  ;;  %9340 = vmatmul.mubr.msk.f32.vlgmr.msra.gmra.mrb[0].mxu1 %vm481_vm2, %v473_v9  ;;  %v608_v11 = vld [vmem:[%s11082_s13] sm:$0xff]  ;;  %v609_v12 = vld [vmem:[%s11082_s13 + $0x8] sm:$0xff]  ;;  %v8632_v16 = vld.sshfl [vmem:[%s11082_s13 + $0x10] sm:$0x3 pattern:$0x76325410]  ;;  %s11133_s17 = scalar_lea.vmem %s13952_s2, %s8990_s14  ;;  %s13734_s9 = scalar_lea.vmem %s13957_s7, %s8991_s30 }
  0x16   : > { %9342 = vmatprep.mubr.msk.f32.mxu1 %vm10990_vm1, %v10988_v2  ;;  %9346 = vmatpush3.msk.msra.mxu1 %vm491_vm0, %v447_v0  ;;  %v704_v13 = vcombine.high %v608_v11, %v608_v11  ;;  %v711_v14 = vrot.slane %v608_v11, %v11085_v7  ;;  %v721_v15 = vcombine.high %v609_v12, %v609_v12  ;;  %v611_v17 = vld [vmem:[%s11082_s13 + $0x18] sm:$0xff]  ;;  %v612_v18 = vld [vmem:[%s11082_s13 + $0x20] sm:$0xff]  ;;  %v614_v39 = vld [vmem:[%s11082_s13 + $0x30] sm:$0xff] }
  0x17   : > { %v728_v19 = vrot.slane %v609_v12, %v11085_v7  ;;  %v745_v20 = vcombine.high %v611_v17, %v611_v17  ;;  %v752_v21 = vrot.slane %v611_v17, %v11085_v7  ;;  %v762_v22 = vcombine.high %v612_v18, %v612_v18  ;;  %9402 = vmatpush3.msk.msra.mxu0 %vm491_vm0, %v447_v0  ;;  %v8633_v44 = vld.sshfl [vmem:[%s11082_s13 + $0x28] sm:$0x3 pattern:$0x76325410]  ;;  %v615_v53 = vld [vmem:[%s11082_s13 + $0x38] sm:$0xff]  ;;  %v618_v63 = vld [vmem:[%s11082_s13 + $0x50] sm:$0xff] }
  0x18   : > { %v718_v23 = vrot.slane %v704_v13, %v11085_v7  ;;  %v719_v24 = vcombine.high %v711_v14, %v711_v14  ;;  %v735_v25 = vrot.slane %v721_v15, %v11085_v7  ;;  %v769_v26 = vrot.slane %v612_v18, %v11085_v7  ;;  %9403 = vmatprep.mubr.msk.f32.mxu0 %vm10990_vm1, %v10988_v2  ;;  %v617_v58 = vld [vmem:[%s11082_s13 + $0x48] sm:$0xff]  ;;  %v8634_v5 = vld.sshfl [vmem:[%s11082_s13 + $0x40] sm:$0x3 pattern:$0x76325410] }
  0x19   : > { %9343 = vmatmul.mubr.msk.f32.gmra.mrb[2].mxu1 %vm481_vm2, %v474_v10  ;;  %v736_v27 = vcombine.high %v728_v19, %v728_v19  ;;  %v759_v28 = vrot.slane %v745_v20, %v11085_v7  ;;  %v760_v29 = vcombine.high %v752_v21, %v752_v21  ;;  %v1411_v30 = vcombine.low %v8632_v16, %v752_v21 }
  0x1a   : > { %v720_v31 = vcombine.high %v718_v23, %v718_v23  ;;  %v1377_v32 = vcombine.low %v711_v14, %v719_v24  ;;  %v737_v33 = vcombine.high %v735_v25, %v735_v25  ;;  %v776_v34 = vrot.slane %v762_v22, %v11085_v7  ;;  %v620_v24 = vld [vmem:[%s11082_s13 + $0x60] sm:$0xff] }
  0x1b   : > { %v1394_v35 = vcombine.low %v728_v19, %v736_v27  ;;  %v1412_v36 = vcombine.low %v760_v29, %v759_v28  ;;  %v1419_v37 = vrot.slane %v1411_v30, %v11085_v7  ;;  %v761_v38 = vcombine.high %v759_v28, %v759_v28 }
  0x1c   : > { %v1378_v40 = vcombine.low %v718_v23, %v720_v31  ;;  %v1385_v41 = vrot.slane %v1377_v32, %v11085_v7  ;;  %v1395_v42 = vcombine.low %v735_v25, %v737_v33  ;;  %v777_v43 = vcombine.high %v769_v26, %v769_v26  ;;  %v5276_v25 = vld [vmem:[%s11133_s17] sm:$0xff] }
  0x1d   : > { %v1402_v45 = vrot.slane %v1394_v35, %v11085_v7  ;;  %v1426_v46 = vrot.slane %v1412_v36, %v11085_v7  ;;  %v1428_v47 = vcombine.low %v761_v38, %v769_v26  ;;  %v778_v48 = vcombine.high %v776_v34, %v776_v34  ;;  %9404 = vmatmul.mubr.msk.f32.vlgmr.msra.gmra.mrb[2].mxu0 %vm481_vm2, %v5276_v25  ;;  %v5277_v35 = vld [vmem:[%s11133_s17 + $0x8] sm:$0xff]  ;;  %v8635_v38 = vld.sshfl [vmem:[%s11082_s13 + $0x58] sm:$0x3 pattern:$0x76325410] }
  0x1e   : > { %v1392_v49 = vrot.slane %v1378_v40, %v11085_v7  ;;  %v1409_v50 = vrot.slane %v1395_v42, %v11085_v7  ;;  %v1429_v51 = vcombine.low %v777_v43, %v776_v34  ;;  %v793_v52 = vrot.slane %v614_v39, %v11085_v7  ;;  %v621_v34 = vld [vmem:[%s11082_s13 + $0x68] sm:$0xff]  ;;  %9406 = vmatprep.mubr.msk.f32.mxu0 %vm10990_vm1, %v10988_v2 }
  0x1f   : > { %v1427_v54 = vcombine.low %v1419_v37, %v1426_v46  ;;  %v1436_v55 = vrot.slane %v1428_v47, %v11085_v7  ;;  %v1445_v56 = vcombine.low %v778_v48, %v8633_v44  ;;  %v786_v57 = vcombine.high %v614_v39, %v614_v39 }
  0x20   : > { %v1393_v59 = vcombine.low %v1385_v41, %v1392_v49  ;;  %v1410_v60 = vcombine.low %v1402_v45, %v1409_v50  ;;  %v1443_v61 = vrot.slane %v1429_v51, %v11085_v7  ;;  %v801_v62 = vcombine.high %v793_v52, %v793_v52  ;;  %v623_v49 = vld [vmem:[%s11082_s13 + $0x78] sm:$0xff] }
  0x21   : > { %v1453_v0 = vrot.slane %v1445_v56, %v11085_v7  ;;  %v800_v1 = vrot.slane %v786_v57, %v11085_v7  ;;  %v810_v4 = vrot.slane %v615_v53, %v11085_v7  ;;  %v803_v6 = vcombine.high %v615_v53, %v615_v53  ;;  %9407 = vmatmul.mubr.msk.f32.gmra.mrb[4].mxu0 %vm481_vm2, %v5277_v35  ;;  %v629_v35 = vld [vmem:[%s11082_s13 + $0xa8] sm:$0xff] }
  0x22   : > { %9347 = vmatprep.mubr.msk.f32.mxu1 %vm481_vm2, %v1393_v59  ;;  %v1444_v8 = vcombine.low %v1436_v55, %v1443_v61  ;;  %v1446_v9 = vcombine.low %v793_v52, %v801_v62  ;;  %v834_v10 = vrot.slane %v617_v58, %v11085_v7  ;;  %v827_v11 = vcombine.high %v617_v58, %v617_v58  ;;  %v5278_v55 = vld [vmem:[%s11133_s17 + $0x10] sm:$0x3] }
  0x23   : > { %9348 = vmatmul.mubr.msk.f32.vlgmr.msra.gmra.mrb[4].mxu1 %vm481_vm2, %v1410_v60  ;;  %v802_v12 = vcombine.high %v800_v1, %v800_v1  ;;  %v818_v13 = vcombine.high %v810_v4, %v810_v4  ;;  %v817_v14 = vrot.slane %v803_v6, %v11085_v7  ;;  %v851_v15 = vrot.slane %v618_v63, %v11085_v7 }
  0x24   : > { %9350 = vmatprep.mubr.msk.f32.mxu1 %vm481_vm2, %v1427_v54  ;;  %v1460_v16 = vrot.slane %v1446_v9, %v11085_v7  ;;  %v1480_v17 = vcombine.low %v8634_v5, %v834_v10  ;;  %v841_v18 = vrot.slane %v827_v11, %v11085_v7  ;;  %v842_v19 = vcombine.high %v834_v10, %v834_v10  ;;  %v624_v54 = vld [vmem:[%s11082_s13 + $0x80] sm:$0xff] }
  0x25   : > { %v1462_v20 = vcombine.low %v800_v1, %v802_v12  ;;  %v1463_v21 = vcombine.low %v810_v4, %v818_v13  ;;  %v819_v22 = vcombine.high %v817_v14, %v817_v14  ;;  %v844_v23 = vcombine.high %v618_v63, %v618_v63  ;;  %9409 = vmatprep.mubr.msk.f32.mxu0 %vm10990_vm1, %v10988_v2  ;;  %v8636_v63 = vld.sshfl [vmem:[%s11082_s13 + $0x70] sm:$0x3 pattern:$0x76325410] }
  0x26   : > { %v1461_v26 = vcombine.low %v1453_v0, %v1460_v16  ;;  %v1494_v27 = vrot.slane %v1480_v17, %v11085_v7  ;;  %v843_v28 = vcombine.high %v841_v18, %v841_v18  ;;  %v1496_v29 = vcombine.low %v842_v19, %v841_v18  ;;  %9410 = vmatmul.mubr.msk.f32.gmra.mrb[6].mxu0 %vm481_vm2, %v5278_v55  ;;  %v626_v16 = vld [vmem:[%s11082_s13 + $0x90] sm:$0xff] }
  0x27   : > { %9351 = vmatmul.mubr.msk.f32.gmra.mrb[6].mxu1 %vm481_vm2, %v1444_v8  ;;  %v1470_v30 = vrot.slane %v1462_v20, %v11085_v7  ;;  %v1477_v31 = vrot.slane %v1463_v21, %v11085_v7  ;;  %v1479_v32 = vcombine.low %v817_v14, %v819_v22  ;;  %v858_v33 = vrot.slane %v844_v23, %v11085_v7  ;;  %v627_v21 = vld [vmem:[%s11082_s13 + $0x98] sm:$0xff] }
  0x28   : > { %9353 = vmatprep.mubr.msk.f32.mxu1 %vm481_vm2, %v1461_v26  ;;  %v1497_v36 = vcombine.low %v843_v28, %v851_v15  ;;  %v1504_v37 = vrot.slane %v1496_v29, %v11085_v7  ;;  %v859_v39 = vcombine.high %v851_v15, %v851_v15  ;;  %v868_v40 = vcombine.high %v620_v24, %v620_v24  ;;  %v8637_v26 = vld.sshfl [vmem:[%s11082_s13 + $0x88] sm:$0x3 pattern:$0x76325410] }
  0x29   : > { %v1478_v41 = vcombine.low %v1470_v30, %v1477_v31  ;;  %v1487_v42 = vrot.slane %v1479_v32, %v11085_v7  ;;  %v860_v43 = vcombine.high %v858_v33, %v858_v33  ;;  %v875_v44 = vrot.slane %v620_v24, %v11085_v7 }
  0x2a   : > { %v1511_v45 = vrot.slane %v1497_v36, %v11085_v7  ;;  %v1513_v46 = vcombine.low %v859_v39, %v858_v33  ;;  %v882_v47 = vrot.slane %v868_v40, %v11085_v7  ;;  %v885_v48 = vcombine.high %v621_v34, %v621_v34 }
  0x2b   : > { %9354 = vmatmul.mubr.msk.f32.gmra.mrb[8].mxu1 %vm481_vm2, %v1478_v41  ;;  %v1495_v50 = vcombine.low %v1487_v42, %v1494_v27  ;;  %v1514_v51 = vcombine.low %v860_v43, %v8635_v38  ;;  %v883_v52 = vcombine.high %v875_v44, %v875_v44  ;;  %v892_v53 = vrot.slane %v621_v34, %v11085_v7  ;;  %v8638_v43 = vld.sshfl [vmem:[%s11082_s13 + $0xa0] sm:$0x3 pattern:$0x76325410] }
  0x2c   : > { %v1512_v56 = vcombine.low %v1504_v37, %v1511_v45  ;;  %v1521_v57 = vrot.slane %v1513_v46, %v11085_v7  ;;  %v884_v58 = vcombine.high %v882_v47, %v882_v47  ;;  %v899_v59 = vrot.slane %v885_v48, %v11085_v7 }
  0x2d   : > { %9356 = vmatprep.mubr.msk.f32.mxu1 %vm481_vm2, %v1495_v50  ;;  %v1528_v60 = vrot.slane %v1514_v51, %v11085_v7  ;;  %v1530_v61 = vcombine.low %v875_v44, %v883_v52  ;;  %v900_v62 = vcombine.high %v892_v53, %v892_v53  ;;  %v909_v0 = vcombine.high %v623_v49, %v623_v49  ;;  %v630_v52 = vld [vmem:[%s11082_s13 + $0xb0] sm:$0xff] }
  0x2e   : > { %v1531_v1 = vcombine.low %v882_v47, %v884_v58  ;;  %v901_v4 = vcombine.high %v899_v59, %v899_v59  ;;  %v916_v5 = vrot.slane %v623_v49, %v11085_v7  ;;  %v926_v6 = vcombine.high %v624_v54, %v624_v54 }
  0x2f   : > { %9357 = vmatmul.mubr.msk.f32.gmra.mrb[10].mxu1 %vm481_vm2, %v1512_v56  ;;  %v1529_v8 = vcombine.low %v1521_v57, %v1528_v60  ;;  %v1538_v9 = vrot.slane %v1530_v61, %v11085_v7  ;;  %v1547_v10 = vcombine.low %v892_v53, %v900_v62  ;;  %v923_v11 = vrot.slane %v909_v0, %v11085_v7  ;;  %v632_v62 = vld [vmem:[%s11082_s13 + $0xc0] sm:$0xff] }
  0x30   : > { %v1545_v12 = vrot.slane %v1531_v1, %v11085_v7  ;;  %v1548_v13 = vcombine.low %v899_v59, %v901_v4  ;;  %v924_v14 = vcombine.high %v916_v5, %v916_v5  ;;  %v1564_v15 = vcombine.low %v8636_v63, %v916_v5 }
  0x31   : > { %9359 = vmatprep.mubr.msk.f32.mxu1 %vm481_vm2, %v1529_v8  ;;  %v1555_v17 = vrot.slane %v1547_v10, %v11085_v7  ;;  %v925_v18 = vcombine.high %v923_v11, %v923_v11  ;;  %v933_v19 = vrot.slane %v624_v54, %v11085_v7  ;;  %v940_v20 = vrot.slane %v926_v6, %v11085_v7 }
  0x32   : > { %v1546_v22 = vcombine.low %v1538_v9, %v1545_v12  ;;  %v1562_v23 = vrot.slane %v1548_v13, %v11085_v7  ;;  %v1565_v24 = vcombine.low %v924_v14, %v923_v11  ;;  %v1572_v25 = vrot.slane %v1564_v15, %v11085_v7  ;;  %v633_v14 = vld [vmem:[%s11082_s13 + $0xc8] sm:$0xff] }
  0x33   : > { %v941_v27 = vcombine.high %v933_v19, %v933_v19  ;;  %v1581_v28 = vcombine.low %v925_v18, %v933_v19  ;;  %v942_v29 = vcombine.high %v940_v20, %v940_v20  ;;  %v957_v30 = vrot.slane %v626_v16, %v11085_v7  ;;  %v8639_v19 = vld.sshfl [vmem:[%s11082_s13 + $0xb8] sm:$0x3 pattern:$0x76325410] }
  0x34   : > { %9360 = vmatmul.mubr.msk.f32.gmra.mrb[12].mxu1 %vm481_vm2, %v1546_v22  ;;  %v1563_v31 = vcombine.low %v1555_v17, %v1562_v23  ;;  %v1579_v32 = vrot.slane %v1565_v24, %v11085_v7  ;;  %v950_v33 = vcombine.high %v626_v16, %v626_v16  ;;  %v974_v34 = vrot.slane %v627_v21, %v11085_v7  ;;  %v635_v24 = vld [vmem:[%s11082_s13 + $0xd8] sm:$0xff] }
  0x35   : > { %v1582_v36 = vcombine.low %v941_v27, %v940_v20  ;;  %v1589_v37 = vrot.slane %v1581_v28, %v11085_v7  ;;  %v965_v38 = vcombine.high %v957_v30, %v957_v30  ;;  %v1598_v39 = vcombine.low %v942_v29, %v8637_v26 }
  0x36   : > { %9362 = vmatprep.mubr.msk.f32.mxu1 %vm481_vm2, %v1563_v31  ;;  %v1580_v40 = vcombine.low %v1572_v25, %v1579_v32  ;;  %v964_v41 = vrot.slane %v950_v33, %v11085_v7  ;;  %v982_v42 = vcombine.high %v974_v34, %v974_v34  ;;  %v967_v44 = vcombine.high %v627_v21, %v627_v21  ;;  %v636_v33 = vld [vmem:[%s11082_s13 + $0xe0] sm:$0xff] }
  0x37   : > { %v1596_v45 = vrot.slane %v1582_v36, %v11085_v7  ;;  %v1599_v46 = vcombine.low %v957_v30, %v965_v38  ;;  %v1606_v47 = vrot.slane %v1598_v39, %v11085_v7  ;;  %v998_v48 = vrot.slane %v629_v35, %v11085_v7 }
  0x38   : > { %9363 = vmatmul.mubr.msk.f32.gmra.mrb[14].mxu1 %vm481_vm2, %v1580_v40  ;;  %v966_v49 = vcombine.high %v964_v41, %v964_v41  ;;  %v1616_v50 = vcombine.low %v974_v34, %v982_v42  ;;  %v981_v51 = vrot.slane %v967_v44, %v11085_v7  ;;  %v991_v53 = vcombine.high %v629_v35, %v629_v35 }
  0x39   : > { %v1597_v54 = vcombine.low %v1589_v37, %v1596_v45  ;;  %v1613_v55 = vrot.slane %v1599_v46, %v11085_v7  ;;  %v1633_v56 = vcombine.low %v8638_v43, %v998_v48  ;;  %v1006_v57 = vcombine.high %v998_v48, %v998_v48  ;;  %v8640_v37 = vld.sshfl [vmem:[%s11082_s13 + $0xd0] sm:$0x3 pattern:$0x76325410] }
  0x3a   : > { %v1615_v58 = vcombine.low %v964_v41, %v966_v49  ;;  %v1630_v59 = vrot.slane %v1616_v50, %v11085_v7  ;;  %v983_v60 = vcombine.high %v981_v51, %v981_v51  ;;  %v1005_v61 = vrot.slane %v991_v53, %v11085_v7 }
  0x3b   : > { %9365 = vmatprep.mubr.msk.f32.mxu1 %vm481_vm2, %v1597_v54  ;;  %v1614_v63 = vcombine.low %v1606_v47, %v1613_v55  ;;  %v1647_v0 = vrot.slane %v1633_v56, %v11085_v7  ;;  %v1015_v1 = vrot.slane %v630_v52, %v11085_v7  ;;  %v1008_v4 = vcombine.high %v630_v52, %v630_v52  ;;  %v639_v56 = vld [vmem:[%s11082_s13 + $0xf8] sm:$0xff] }
  0x3c   : > { %v1623_v5 = vrot.slane %v1615_v58, %v11085_v7  ;;  %v1632_v6 = vcombine.low %v981_v51, %v983_v60  ;;  %v1007_v8 = vcombine.high %v1005_v61, %v1005_v61  ;;  %v1649_v9 = vcombine.low %v1006_v57, %v1005_v61  ;;  %v638_v51 = vld [vmem:[%s11082_s13 + $0xf0] sm:$0xff] }
  0x3d   : > { %9366 = vmatmul.mubr.msk.f32.gmra.mrb[16].mxu1 %vm481_vm2, %v1614_v63  ;;  %v1022_v10 = vrot.slane %v1008_v4, %v11085_v7  ;;  %v1023_v11 = vcombine.high %v1015_v1, %v1015_v1  ;;  %v1032_v12 = vcombine.high %v632_v62, %v632_v62  ;;  %v1039_v13 = vrot.slane %v632_v62, %v11085_v7 }
  0x3e   : > { %v1631_v15 = vcombine.low %v1623_v5, %v1630_v59  ;;  %v1640_v16 = vrot.slane %v1632_v6, %v11085_v7  ;;  %v1650_v17 = vcombine.low %v1007_v8, %v1015_v1  ;;  %v1657_v18 = vrot.slane %v1649_v9, %v11085_v7 }
  0x3f   : > { %v1024_v20 = vcombine.high %v1022_v10, %v1022_v10  ;;  %v1666_v21 = vcombine.low %v1023_v11, %v1022_v10  ;;  %v1046_v22 = vrot.slane %v1032_v12, %v11085_v7  ;;  %v1047_v23 = vcombine.high %v1039_v13, %v1039_v13 }
  0x40   : > { %9368 = vmatprep.mubr.msk.f32.mxu1 %vm481_vm2, %v1631_v15  ;;  %v1648_v25 = vcombine.low %v1640_v16, %v1647_v0  ;;  %v1664_v26 = vrot.slane %v1650_v17, %v11085_v7  ;;  %v1049_v27 = vcombine.high %v633_v14, %v633_v14  ;;  %v1056_v28 = vrot.slane %v633_v14, %v11085_v7  ;;  %v8641_v0 = vld.sshfl [vmem:[%s11082_s13 + $0xe8] sm:$0x3 pattern:$0x76325410] }
  0x41   : > { %v1667_v29 = vcombine.low %v1024_v20, %v8639_v19  ;;  %v1674_v30 = vrot.slane %v1666_v21, %v11085_v7  ;;  %v1048_v31 = vcombine.high %v1046_v22, %v1046_v22  ;;  %v1683_v32 = vcombine.low %v1039_v13, %v1047_v23  ;;  %v641_v13 = vld [vmem:[%s11082_s13 + $0x108] sm:$0xff] }
  0x42   : > { %9369 = vmatmul.mubr.msk.f32.gmra.mrb[18].mxu1 %vm481_vm2, %v1648_v25  ;;  %v1665_v34 = vcombine.low %v1657_v18, %v1664_v26  ;;  %v1063_v35 = vrot.slane %v1049_v27, %v11085_v7  ;;  %v1064_v36 = vcombine.high %v1056_v28, %v1056_v28  ;;  %v1073_v38 = vcombine.high %v635_v24, %v635_v24  ;;  %v8642_v18 = vld.sshfl [vmem:[%s11082_s13 + $0x100] sm:$0x3 pattern:$0x76325410]  ;;  %v642_v26 = vld [vmem:[%s11082_s13 + $0x110] sm:$0xff] }
  0x43   : > { %v1681_v39 = vrot.slane %v1667_v29, %v11085_v7  ;;  %v1684_v40 = vcombine.low %v1046_v22, %v1048_v31  ;;  %v1691_v41 = vrot.slane %v1683_v32, %v11085_v7  ;;  %v1080_v42 = vrot.slane %v635_v24, %v11085_v7 }
  0x44   : > { %9371 = vmatprep.mubr.msk.f32.mxu1 %vm481_vm2, %v1665_v34  ;;  %v1065_v43 = vcombine.high %v1063_v35, %v1063_v35  ;;  %v1700_v44 = vcombine.low %v1056_v28, %v1064_v36  ;;  %v1087_v45 = vrot.slane %v1073_v38, %v11085_v7  ;;  %v1090_v46 = vcombine.high %v636_v33, %v636_v33  ;;  %v644_v36 = vld [vmem:[%s11082_s13 + $0x120] sm:$0xff] }
  0x45   : > { %v1682_v47 = vcombine.low %v1674_v30, %v1681_v39  ;;  %v1698_v48 = vrot.slane %v1684_v40, %v11085_v7  ;;  %v1088_v49 = vcombine.high %v1080_v42, %v1080_v42  ;;  %v1717_v50 = vcombine.low %v8640_v37, %v1080_v42 }
  0x46   : > { %v1701_v52 = vcombine.low %v1063_v35, %v1065_v43  ;;  %v1708_v53 = vrot.slane %v1700_v44, %v11085_v7  ;;  %v1089_v54 = vcombine.high %v1087_v45, %v1087_v45  ;;  %v1097_v55 = vrot.slane %v636_v33, %v11085_v7 }
  0x47   : > { %9372 = vmatmul.mubr.msk.f32.gmra.mrb[20].mxu1 %vm481_vm2, %v1682_v47  ;;  %v1699_v57 = vcombine.low %v1691_v41, %v1698_v48  ;;  %v1718_v58 = vcombine.low %v1088_v49, %v1087_v45  ;;  %v1725_v59 = vrot.slane %v1717_v50, %v11085_v7  ;;  %v1104_v60 = vrot.slane %v1090_v46, %v11085_v7  ;;  %v645_v45 = vld [vmem:[%s11082_s13 + $0x128] sm:$0xff] }
  0x48   : > { %v1715_v61 = vrot.slane %v1701_v52, %v11085_v7  ;;  %v1105_v62 = vcombine.high %v1097_v55, %v1097_v55  ;;  %v1734_v63 = vcombine.low %v1089_v54, %v1097_v55  ;;  %v1121_v1 = vrot.slane %v638_v51, %v11085_v7  ;;  %v8643_v55 = vld.sshfl [vmem:[%s11082_s13 + $0x118] sm:$0x3 pattern:$0x76325410] }
  0x49   : > { %9374 = vmatprep.mubr.msk.f32.mxu1 %vm481_vm2, %v1699_v57  ;;  %v1732_v4 = vrot.slane %v1718_v58, %v11085_v7  ;;  %v1106_v5 = vcombine.high %v1104_v60, %v1104_v60  ;;  %v1114_v6 = vcombine.high %v638_v51, %v638_v51  ;;  %v1138_v8 = vrot.slane %v639_v56, %v11085_v7 }
  0x4a   : > { %v1716_v9 = vcombine.low %v1708_v53, %v1715_v61  ;;  %v1735_v10 = vcombine.low %v1105_v62, %v1104_v60  ;;  %v1742_v11 = vrot.slane %v1734_v63, %v11085_v7  ;;  %v1129_v12 = vcombine.high %v1121_v1, %v1121_v1  ;;  %v647_v63 = vld [vmem:[%s11082_s13 + $0x138] sm:$0xff] }
  0x4b   : > { %v1733_v14 = vcombine.low %v1725_v59, %v1732_v4  ;;  %v1751_v15 = vcombine.low %v1106_v5, %v8641_v0  ;;  %v1128_v16 = vrot.slane %v1114_v6, %v11085_v7  ;;  %v1146_v17 = vcombine.high %v1138_v8, %v1138_v8  ;;  %v648_v6 = vld [vmem:[%s11082_s13 + $0x140] sm:$0xff] }
  0x4c   : > { %9375 = vmatmul.mubr.msk.f32.gmra.mrb[22].mxu1 %vm481_vm2, %v1716_v9  ;;  %v1749_v19 = vrot.slane %v1735_v10, %v11085_v7  ;;  %v1752_v20 = vcombine.low %v1121_v1, %v1129_v12  ;;  %v1131_v21 = vcombine.high %v639_v56, %v639_v56  ;;  %v1162_v22 = vrot.slane %v641_v13, %v11085_v7 }
  0x4d   : > { %9377 = vmatprep.mubr.msk.f32.mxu1 %vm481_vm2, %v1733_v14  ;;  %v1759_v23 = vrot.slane %v1751_v15, %v11085_v7  ;;  %v1130_v24 = vcombine.high %v1128_v16, %v1128_v16  ;;  %v1769_v25 = vcombine.low %v1138_v8, %v1146_v17  ;;  %v1155_v27 = vcombine.high %v641_v13, %v641_v13  ;;  %v8644_v15 = vld.sshfl [vmem:[%s11082_s13 + $0x130] sm:$0x3 pattern:$0x76325410] }
  0x4e   : > { %v1750_v28 = vcombine.low %v1742_v11, %v1749_v19  ;;  %v1766_v29 = vrot.slane %v1752_v20, %v11085_v7  ;;  %v1145_v30 = vrot.slane %v1131_v21, %v11085_v7  ;;  %v1786_v31 = vcombine.low %v8642_v18, %v1162_v22 }
  0x4f   : > { %v1768_v32 = vcombine.low %v1128_v16, %v1130_v24  ;;  %v1783_v33 = vrot.slane %v1769_v25, %v11085_v7  ;;  %v1169_v34 = vrot.slane %v1155_v27, %v11085_v7  ;;  %v1170_v35 = vcombine.high %v1162_v22, %v1162_v22  ;;  %v650_v25 = vld [vmem:[%s11082_s13 + $0x150] sm:$0xff] }
  0x50   : > { %9378 = vmatmul.mubr.msk.f32.gmra.mrb[24].mxu1 %vm481_vm2, %v1750_v28  ;;  %v1767_v37 = vcombine.low %v1759_v23, %v1766_v29  ;;  %v1147_v38 = vcombine.high %v1145_v30, %v1145_v30  ;;  %v1800_v39 = vrot.slane %v1786_v31, %v11085_v7  ;;  %v1179_v40 = vrot.slane %v642_v26, %v11085_v7 }
  0x51   : > { %v1776_v41 = vrot.slane %v1768_v32, %v11085_v7  ;;  %v1171_v42 = vcombine.high %v1169_v34, %v1169_v34  ;;  %v1802_v43 = vcombine.low %v1170_v35, %v1169_v34  ;;  %v1172_v44 = vcombine.high %v642_v26, %v642_v26  ;;  %v651_v34 = vld [vmem:[%s11082_s13 + $0x158] sm:$0xff] }
  0x52   : > { %9380 = vmatprep.mubr.msk.f32.mxu1 %vm481_vm2, %v1767_v37  ;;  %v1785_v46 = vcombine.low %v1145_v30, %v1147_v38  ;;  %v1187_v47 = vcombine.high %v1179_v40, %v1179_v40  ;;  %v1196_v48 = vcombine.high %v644_v36, %v644_v36  ;;  %v1203_v49 = vrot.slane %v644_v36, %v11085_v7  ;;  %v8645_v38 = vld.sshfl [vmem:[%s11082_s13 + $0x148] sm:$0x3 pattern:$0x76325410] }
  0x53   : > { %v1784_v50 = vcombine.low %v1776_v41, %v1783_v33  ;;  %v1803_v51 = vcombine.low %v1171_v42, %v1179_v40  ;;  %v1810_v52 = vrot.slane %v1802_v43, %v11085_v7  ;;  %v1186_v53 = vrot.slane %v1172_v44, %v11085_v7 }
  0x54   : > { %v1793_v54 = vrot.slane %v1785_v46, %v11085_v7  ;;  %v1210_v56 = vrot.slane %v1196_v48, %v11085_v7  ;;  %v1211_v57 = vcombine.high %v1203_v49, %v1203_v49  ;;  %v1213_v58 = vcombine.high %v645_v45, %v645_v45  ;;  %v653_v48 = vld [vmem:[%s11082_s13 + $0x168] sm:$0xff] }
  0x55   : > { %9381 = vmatmul.mubr.msk.f32.gmra.mrb[26].mxu1 %vm481_vm2, %v1784_v50  ;;  %v1817_v59 = vrot.slane %v1803_v51, %v11085_v7  ;;  %v1188_v60 = vcombine.high %v1186_v53, %v1186_v53  ;;  %v1819_v61 = vcombine.low %v1187_v47, %v1186_v53  ;;  %v1220_v62 = vrot.slane %v645_v45, %v11085_v7 }
  0x56   : > { %v1801_v0 = vcombine.low %v1793_v54, %v1800_v39  ;;  %v1212_v1 = vcombine.high %v1210_v56, %v1210_v56  ;;  %v1836_v4 = vcombine.low %v1203_v49, %v1211_v57  ;;  %v1227_v5 = vrot.slane %v1213_v58, %v11085_v7  ;;  %v8646_v57 = vld.sshfl [vmem:[%s11082_s13 + $0x160] sm:$0x3 pattern:$0x76325410] }
  0x57   : > { %v1818_v8 = vcombine.low %v1810_v52, %v1817_v59  ;;  %v1820_v9 = vcombine.low %v1188_v60, %v8643_v55  ;;  %v1827_v10 = vrot.slane %v1819_v61, %v11085_v7  ;;  %v1228_v11 = vcombine.high %v1220_v62, %v1220_v62 }
  0x58   : > { %9383 = vmatprep.mubr.msk.f32.mxu1 %vm481_vm2, %v1801_v0  ;;  %v1837_v12 = vcombine.low %v1210_v56, %v1212_v1  ;;  %v1844_v13 = vrot.slane %v1836_v4, %v11085_v7  ;;  %v1229_v14 = vcombine.high %v1227_v5, %v1227_v5  ;;  %v1237_v16 = vcombine.high %v647_v63, %v647_v63  ;;  %v654_v1 = vld [vmem:[%s11082_s13 + $0x170] sm:$0xff] }
  0x59   : > { %9384 = vmatmul.mubr.msk.f32.gmra.mrb[28].mxu1 %vm481_vm2, %v1818_v8  ;;  %v1834_v17 = vrot.slane %v1820_v9, %v11085_v7  ;;  %v1853_v18 = vcombine.low %v1220_v62, %v1228_v11  ;;  %v1244_v19 = vrot.slane %v647_v63, %v11085_v7  ;;  %v1254_v20 = vcombine.high %v648_v6, %v648_v6 }
  0x5a   : > { %v1851_v21 = vrot.slane %v1837_v12, %v11085_v7  ;;  %v1854_v22 = vcombine.low %v1227_v5, %v1229_v14  ;;  %v1251_v23 = vrot.slane %v1237_v16, %v11085_v7  ;;  %v1261_v24 = vrot.slane %v648_v6, %v11085_v7 }
  0x5b   : > { %v1835_v26 = vcombine.low %v1827_v10, %v1834_v17  ;;  %v1861_v27 = vrot.slane %v1853_v18, %v11085_v7  ;;  %v1252_v28 = vcombine.high %v1244_v19, %v1244_v19  ;;  %v1870_v29 = vcombine.low %v8644_v15, %v1244_v19 }
  0x5c   : > { %v1852_v30 = vcombine.low %v1844_v13, %v1851_v21  ;;  %v1868_v31 = vrot.slane %v1854_v22, %v11085_v7  ;;  %v1253_v32 = vcombine.high %v1251_v23, %v1251_v23  ;;  %v1268_v33 = vrot.slane %v1254_v20, %v11085_v7 }
  0x5d   : > { %9386 = vmatprep.mubr.msk.f32.mxu1 %vm481_vm2, %v1835_v26  ;;  %v1871_v35 = vcombine.low %v1252_v28, %v1251_v23  ;;  %v1878_v36 = vrot.slane %v1870_v29, %v11085_v7  ;;  %v1269_v37 = vcombine.high %v1261_v24, %v1261_v24  ;;  %v1285_v39 = vrot.slane %v650_v25, %v11085_v7  ;;  %v8647_v26 = vld.sshfl [vmem:[%s11082_s13 + $0x178] sm:$0x3 pattern:$0x76325410] }
  0x5e   : > { %9387 = vmatmul.mubr.msk.f32.gmra.mrb[30].mxu1 %vm481_vm2, %v1852_v30  ;;  %v1869_v40 = vcombine.low %v1861_v27, %v1868_v31  ;;  %v1887_v41 = vcombine.low %v1253_v32, %v1261_v24  ;;  %v1270_v42 = vcombine.high %v1268_v33, %v1268_v33  ;;  %v1278_v43 = vcombine.high %v650_v25, %v650_v25 }
  0x5f   : > { %v1885_v44 = vrot.slane %v1871_v35, %v11085_v7  ;;  %v1888_v45 = vcombine.low %v1269_v37, %v1268_v33  ;;  %v1293_v46 = vcombine.high %v1285_v39, %v1285_v39  ;;  %v1302_v47 = vrot.slane %v651_v34, %v11085_v7 }
  0x60   : > { %9389 = vmatprep.mubr.msk.f32.mxu1 %vm481_vm2, %v1869_v40  ;;  %v1895_v49 = vrot.slane %v1887_v41, %v11085_v7  ;;  %v1904_v50 = vcombine.low %v1270_v42, %v8645_v38  ;;  %v1292_v51 = vrot.slane %v1278_v43, %v11085_v7  ;;  %v1295_v52 = vcombine.high %v651_v34, %v651_v34 }
  0x61   : > { %v1886_v53 = vcombine.low %v1878_v36, %v1885_v44  ;;  %v1902_v54 = vrot.slane %v1888_v45, %v11085_v7  ;;  %v1905_v55 = vcombine.low %v1285_v39, %v1293_v46  ;;  %v1310_v56 = vcombine.high %v1302_v47, %v1302_v47  ;;  %v8627_v36 = vld [vmem:[%s13954_s4] ss:$0 sm:$0xff] }
  0x62   : > { %v1912_v58 = vrot.slane %v1904_v50, %v11085_v7  ;;  %v1294_v59 = vcombine.high %v1292_v51, %v1292_v51  ;;  %v1309_v60 = vrot.slane %v1295_v52, %v11085_v7  ;;  %v1326_v61 = vrot.slane %v653_v48, %v11085_v7 }
  0x63   : > { %9390 = vmatmul.mubr.msk.f32.gmra.mrb[32].mxu1 %vm481_vm2, %v1886_v53  ;;  %v1903_v62 = vcombine.low %v1895_v49, %v1902_v54  ;;  %v1919_v63 = vrot.slane %v1905_v55, %v11085_v7  ;;  %v1922_v0 = vcombine.low %v1302_v47, %v1310_v56  ;;  %v1319_v4 = vcombine.high %v653_v48, %v653_v48 }
  0x64   : > { %v1921_v5 = vcombine.low %v1292_v51, %v1294_v59  ;;  %v1311_v6 = vcombine.high %v1309_v60, %v1309_v60  ;;  %v1939_v8 = vcombine.low %v8646_v57, %v1326_v61  ;;  %v1334_v9 = vcombine.high %v1326_v61, %v1326_v61 }
  0x65   : > { %9392 = vmatprep.mubr.msk.f32.mxu1 %vm481_vm2, %v1903_v62  ;;  %v1920_v10 = vcombine.low %v1912_v58, %v1919_v63  ;;  %v1936_v11 = vrot.slane %v1922_v0, %v11085_v7  ;;  %v1333_v12 = vrot.slane %v1319_v4, %v11085_v7  ;;  %v1343_v13 = vrot.slane %v654_v1, %v11085_v7 }
  0x66   : > { %v1929_v14 = vrot.slane %v1921_v5, %v11085_v7  ;;  %v1938_v15 = vcombine.low %v1309_v60, %v1311_v6  ;;  %v1953_v16 = vrot.slane %v1939_v8, %v11085_v7  ;;  %v1336_v17 = vcombine.high %v654_v1, %v654_v1 }
  0x67   : > { %9393 = vmatmul.mubr.msk.f32.gmra.mrb[34].mxu1 %vm481_vm2, %v1920_v10  ;;  %v1335_v18 = vcombine.high %v1333_v12, %v1333_v12  ;;  %v1955_v19 = vcombine.low %v1334_v9, %v1333_v12  ;;  %v1351_v20 = vcombine.high %v1343_v13, %v1343_v13  ;;  %v1360_v37 = vcombine.high %v8627_v36, %v8627_v36 }
  0x68   : > { %v1937_v21 = vcombine.low %v1929_v14, %v1936_v11  ;;  %v1946_v22 = vrot.slane %v1938_v15, %v11085_v7  ;;  %v1350_v23 = vrot.slane %v1336_v17, %v11085_v7  ;;  %v1367_v38 = vrot.slane %v8627_v36, %v11085_v7 }
  0x69   : > { %v1956_v24 = vcombine.low %v1335_v18, %v1343_v13  ;;  %v1963_v25 = vrot.slane %v1955_v19, %v11085_v7  ;;  %v1374_v39 = vrot.slane %v1360_v37, %v11085_v7  ;;  %v10991_v49 = vmov 842150450  }
  0x6a   : > { %9395 = vmatprep.mubr.msk.f32.mxu1 %vm481_vm2, %v1937_v21  ;;  %v1954_v27 = vcombine.low %v1946_v22, %v1953_v16  ;;  %v1352_v28 = vcombine.high %v1350_v23, %v1350_v23  ;;  %v1972_v29 = vcombine.low %v1351_v20, %v1350_v23  ;;  %v1375_v40 = vcombine.high %v1367_v38, %v1367_v38 }
  0x6b   : > { %v1970_v30 = vrot.slane %v1956_v24, %v11085_v7  ;;  %v1376_v41 = vcombine.high %v1374_v39, %v1374_v39  ;;  %v4171_v50 = vunpack.c.l.s4 %v10991_v49  ;;  %v10992_v51 = vmov 1414812756  }
  0x6c   : > { %9396 = vmatmul.mubr.msk.f32.gmra.mrb[36].mxu1 %vm481_vm2, %v1954_v27  ;;  %v1973_v31 = vcombine.low %v1352_v28, %v8647_v26  ;;  %v1980_v32 = vrot.slane %v1972_v29, %v11085_v7  ;;  %v1989_v44 = vcombine.low %v1367_v38, %v1375_v40  ;;  %v4178_v52 = vunpack.c.l.s4 %v10992_v51 }
  0x6d   : > { %v1971_v33 = vcombine.low %v1963_v25, %v1970_v30  ;;  %v1990_v53 = vcombine.low %v1374_v39, %v1376_v41  ;;  %v10993_v55 = vmov 1987475062   ;;  %v10994_v58 = vmov 269488144  }
  0x6e   : > { %v1987_v34 = vrot.slane %v1973_v31, %v11085_v7  ;;  %v4185_v56 = vunpack.c.l.s4 %v10993_v55  ;;  %v4164_v59 = vunpack.c.l.s4 %v10994_v58  ;;  %v1997_v61 = vrot.slane %v1989_v44, %v11085_v7 }
  0x6f   : > { %9398 = vmatprep.mubr.msk.f32.mxu1 %vm481_vm2, %v1971_v33  ;;  %v2007_v62 = vcombine.low %v1375_v40, %v1374_v39  ;;  %v2023_v63 = vcombine.low %v1376_v41, %v1367_v38  ;;  %v2006_v6 = vcombine.low %v1367_v38, %v1367_v38  ;;  %v4172_v8 = vunpack.c.0.s8 %v4171_v50 }
  0x70   : > { %v1988_v35 = vcombine.low %v1980_v32, %v1987_v34  ;;  %v4179_v9 = vunpack.c.0.s8 %v4178_v52  ;;  %v452_v10 = vadd.s32 16, %v11063_v3  ;;  %v2004_v11 = vrot.slane %v1990_v53, %v11085_v7 }
  0x71   : > { %v4186_v12 = vunpack.c.0.s8 %v4185_v56  ;;  %v4165_v14 = vunpack.c.0.s8 %v4164_v59  ;;  %v2021_v16 = vrot.slane %v2007_v62, %v11085_v7  ;;  %v2030_v17 = vrot.slane %v2023_v63, %v11085_v7 }
  0x72   : > { %9399 = vmatmul.mubr.msk.f32.gmra.mrb[38].mxu1 %vm481_vm2, %v1988_v35  ;;  %v2014_v18 = vrot.slane %v2006_v6, %v11085_v7  ;;  %v4175_v19 = vsub.s32 %v4172_v8, %v11063_v3  ;;  %v4182_v20 = vsub.s32 %v4179_v9, %v11063_v3  ;;  %v11355_v21 = vcombine.low %v1997_v61, %v2004_v11 }
  0x73   : > { %v4189_v22 = vsub.s32 %v4186_v12, %v11063_v3  ;;  %vm458_vm4 = vcmp.le.s32.totalorder %v452_v10, 16  ;;  %v4168_v23 = vsub.s32 %v4165_v14, %v11063_v3  ;;  %v11360_v24 = vsel %vm453_vm3, 1.0, %v10988_v2 }
  0x74   : > { %13972 = vst [vmem:[#allocation3_spill] sm:$0xff] %v11360_v24  ;;  %v11362_v25 = vcombine.low %v2030_v17, %v2021_v16  ;;  %v11364_v26 = vcombine.low %v2021_v16, %v2030_v17  ;;  %v11366_v27 = vcombine.low %v2014_v18, %v2021_v16  ;;  %v11369_v28 = vrot.slane %v11360_v24, %v4175_v19 }
  0x75   : > { %v11372_v29 = vrot.slane %v11360_v24, %v4182_v20  ;;  %v11375_v30 = vsel %vm458_vm4, 1.0, %v10988_v2  ;;  %v11377_v3 = vcombine.low %v2004_v11, %v1997_v61  ;;  %v11380_v32 = vrot.slane %v11360_v24, %v4189_v22 }
  0x76   : > { %13973 = vst [vmem:[#allocation4_spill] sm:$0xff] %v11362_v25  ;;  %13974 = vst [vmem:[#allocation5_spill] sm:$0xff] %v11366_v27  ;;  %v11383_v33 = vrot.slane %v11360_v24, %v4168_v23  ;;  %v10995_v34 = vmov 1.0   ;;  %v11389_v38 = vrot.slane %v11375_v30, %v4168_v23  ;;  %v11394_v40 = vcombine.low %v2030_v17, %v1997_v61 }
  0x77   : > { %13975 = vst [vmem:[#allocation6_spill] sm:$0xff] %v11375_v30  ;;  %13976 = vst [vmem:[#allocation7_spill] sm:$0xff] %v11377_v3  ;;  %v11385_v35 = vrot.slane %v10995_v34, %v4168_v23  ;;  %v11391_v2 = vrot.slane %v10995_v34, %v4175_v19  ;;  %v11399_v44 = vrot.slane %v10995_v34, %v4182_v20 }
  0x78   : > { %13977 = vst [vmem:[#allocation8_spill] sm:$0xff] %v11394_v40  ;;  %v11406_v53 = vcombine.low %v2004_v11, %v2014_v18 }
  0x7a   : > { %13978 = vst [vmem:[#allocation9_spill] sm:$0xff] %v11406_v53 }
  0xe8   : > { %v561_v42 = vpop.f32.mrb[0].mxu0  ;;  %v566_v43 = vpop.f32.mrb[0].mxu1 }
  0xe9   : > { %v11337_v45 = vadd.f32 %v8627_v36, %v561_v42  ;;  %v11339_v46 = vadd.f32 %v8627_v36, %v566_v43  ;;  %v9341_v47 = vpop.f32.mrb[1].mxu1  ;;  %v9338_v48 = vpop.f32.mrb[1].mxu0 }
  0xea   : > { %v11401_v47 = vrot.slane %v10995_v34, %v4189_v22 }
  0xeb   : > { %v575_v54 = vsub.f32 0.0, %v11337_v45  ;;  %v576_v57 = vsub.f32 0.0, %v11339_v46 }
  0xec   : > { %v571_v60 = vpop.f32.mrb[2].mxu1 }
  0xed   : > { %v578_v0 = vmul.f32 1.442695, %v575_v54  ;;  %v580_v1 = vmul.f32 1.442695, %v576_v57  ;;  %v11344_v4 = vadd.f32 %v8627_v36, %v571_v60  ;;  %v9344_v5 = vpop.f32.mrb[3].mxu1 }
  0xef   : > { %10187 = vpow2.f32 %v578_v0  ;;  %v577_v13 = vsub.f32 0.0, %v11344_v4 }
  0xf0   : > { %10189 = vpow2.f32 %v580_v1 }
  0xf1   : > { %v582_v15 = vmul.f32 1.442695, %v577_v13 }
  0xf3   : > { %10191 = vpow2.f32 %v582_v15 }
  0xf6   : > { %v9349_v31 = vpop.f32.mrb[4].mxu1 }
  0xf7   : > { %v2187_v36 = vadd.f32 %v9349_v31, %v11355_v21  ;;  %v2181_v37 = vpop.f32.mrb[5].mxu1 }
  0xf8   : > { %v2182_v39 = vadd.f32 %v2181_v37, %v11355_v21 }
  0xf9   : > { %v10188_v41 = vpop.eup %10187  ;;  %v2413_v42 = vcombine.high %v2187_v36, %v2187_v36  ;;  %v11397_v43 = vrot.slane %v2187_v36, %v11085_v7 }
  0xfa   : > { %v10190_v48 = vpop.eup %10189  ;;  %v584_v49 = vadd.f32 1.0, %v10188_v41  ;;  %v2396_v50 = vcombine.high %v2182_v39, %v2182_v39  ;;  %v11404_v51 = vrot.slane %v2182_v39, %v11085_v7  ;;  %v9352_v52 = vpop.f32.mrb[6].mxu1 }
  0xfb   : > { %v585_v54 = vadd.f32 1.0, %v10190_v48  ;;  %v11409_v55 = vrot.slane %v2413_v42, %v11085_v7  ;;  %v11413_v56 = vcombine.high %v11397_v43, %v11397_v43  ;;  %v3156_v57 = vsub.f32 0.0, %v11397_v43  ;;  %v2191_v58 = vpop.f32.mrb[7].mxu1 }
  0xfc   : > { %10193 = vrcp.f32 %v584_v49  ;;  %v11417_v59 = vrot.slane %v2396_v50, %v11085_v7  ;;  %v11421_v60 = vcombine.high %v11404_v51, %v11404_v51  ;;  %v3152_v61 = vsub.f32 0.0, %v11404_v51 }
  0xfd   : > { %v10192_v62 = vpop.eup %10191  ;;  %10195 = vrcp.f32 %v585_v54  ;;  %v11426_v63 = vcombine.high %v11409_v55, %v11409_v55  ;;  %v3157_v0 = vsub.f32 0.0, %v11413_v56  ;;  %v3158_v1 = vsub.f32 0.0, %v11409_v55 }
  0xfe   : > { %v586_v5 = vadd.f32 1.0, %v10192_v62  ;;  %v3304_v6 = vmul.f32 1.442695, %v3156_v57  ;;  %v11432_v8 = vcombine.high %v11417_v59, %v11417_v59  ;;  %v3153_v9 = vsub.f32 0.0, %v11421_v60  ;;  %v9355_v10 = vpop.f32.mrb[8].mxu1 }
  0xff   : > { %v3159_v11 = vsub.f32 0.0, %v11426_v63  ;;  %v3306_v12 = vmul.f32 1.442695, %v3157_v0  ;;  %v3308_v13 = vmul.f32 1.442695, %v3158_v1  ;;  %v3154_v14 = vsub.f32 0.0, %v11417_v59 }
 0x100   : > { %10197 = vrcp.f32 %v586_v5  ;;  %v3155_v15 = vsub.f32 0.0, %v11432_v8  ;;  %v3296_v16 = vmul.f32 1.442695, %v3152_v61  ;;  %v3298_v17 = vmul.f32 1.442695, %v3153_v9  ;;  %v2201_v18 = vpop.f32.mrb[9].mxu1 }
 0x101   : > { %10199 = vpow2.f32 %v3304_v6  ;;  %v3310_v19 = vmul.f32 1.442695, %v3159_v11  ;;  %v3300_v20 = vmul.f32 1.442695, %v3154_v14  ;;  %v2197_v22 = vadd.f32 %v9352_v52, %v11362_v25 }
 0x102   : > { %10201 = vpow2.f32 %v3306_v12  ;;  %v3302_v23 = vmul.f32 1.442695, %v3155_v15  ;;  %v2192_v31 = vadd.f32 %v2191_v58, %v11366_v27  ;;  %v11441_v34 = vadd.f32 %v9355_v10, %v11377_v3  ;;  %v11443_v36 = vpop.f32.mrb[10].mxu1 }
 0x103   : > { %10203 = vpow2.f32 %v3308_v13  ;;  %v2447_v37 = vcombine.high %v2197_v22, %v2197_v22  ;;  %v11446_v39 = vrot.slane %v2197_v22, %v11085_v7  ;;  %v11449_v41 = vadd.f32 %v2201_v18, %v11394_v40  ;;  %v11451_v42 = vpop.f32.mrb[11].mxu1 }
 0x104   : > { %10205 = vpow2.f32 %v3310_v19  ;;  %v2430_v48 = vcombine.high %v2192_v31, %v2192_v31  ;;  %v11454_v49 = vrot.slane %v2192_v31, %v11085_v7 }
 0x105   : > { %10207 = vpow2.f32 %v3296_v16  ;;  %v11459_v52 = vrot.slane %v2447_v37, %v11085_v7  ;;  %v11463_v54 = vcombine.high %v11446_v39, %v11446_v39  ;;  %v3164_v57 = vsub.f32 0.0, %v11446_v39 }
 0x106   : > { %v10194_v58 = vpop.eup %10193  ;;  %10209 = vpow2.f32 %v3298_v17  ;;  %v11467_v61 = vrot.slane %v2430_v48, %v11085_v7  ;;  %v11471_v62 = vcombine.high %v11454_v49, %v11454_v49  ;;  %v3160_v0 = vsub.f32 0.0, %v11454_v49 }
 0x107   : > { %v10196_v1 = vpop.eup %10195  ;;  %v593_v5 = vmul.f32 %v10194_v58, %v11337_v45  ;;  %10211 = vpow2.f32 %v3300_v20  ;;  %v11477_v6 = vcombine.high %v11459_v52, %v11459_v52  ;;  %v3165_v9 = vsub.f32 0.0, %v11463_v54  ;;  %v11480_v10 = vpop.f32.mrb[12].mxu1 }
 0x108   : > { %v594_v11 = vmul.f32 %v10196_v1, %v11339_v46  ;;  %10213 = vpow2.f32 %v3302_v23  ;;  %v3166_v12 = vsub.f32 0.0, %v11459_v52  ;;  %v3320_v13 = vmul.f32 1.442695, %v3164_v57  ;;  %v11484_v14 = vpop.f32.mrb[13].mxu1 }
 0x109   : > { %v596_v15 = vmul.f32 %v11360_v24, %v593_v5  ;;  %v3167_v45 = vsub.f32 0.0, %v11477_v6  ;;  %v3322_v16 = vmul.f32 1.442695, %v3165_v9  ;;  %v11490_v17 = vcombine.high %v11467_v61, %v11467_v61 }
 0x10a   : > { %v10198_v18 = vpop.eup %10197  ;;  %v601_v19 = vmul.f32 0.0, %v594_v11  ;;  %10215 = vpow2.f32 %v3320_v13  ;;  %v3324_v20 = vmul.f32 1.442695, %v3166_v12  ;;  %v3161_v46 = vsub.f32 0.0, %v11471_v62 }
 0x10b   : > { %v10200_v22 = vpop.eup %10199  ;;  %v600_v23 = vmul.f32 0.0, %v596_v15  ;;  %v595_v31 = vmul.f32 %v10198_v18, %v11344_v4  ;;  %10217 = vpow2.f32 %v3322_v16  ;;  %v3326_v37 = vmul.f32 1.442695, %v3167_v45  ;;  %v11494_v48 = vpop.f32.mrb[14].mxu1 }
 0x10c   : > { %13979 = vst [vmem:[#allocation10_spill] sm:$0xff] %v11494_v48  ;;  %v10202_v57 = vpop.eup %10201  ;;  %605 = vst.msk [vmem:[#allocation2 + $0x8] sm:$0xff] %vm603_vm5, %v601_v19  ;;  %v3588_v58 = vadd.f32 1.0, %v10200_v22  ;;  %10219 = vpow2.f32 %v3324_v20  ;;  %v3162_v1 = vsub.f32 0.0, %v11467_v61  ;;  %v3163_v5 = vsub.f32 0.0, %v11490_v17  ;;  %v11499_v9 = vpop.f32.mrb[15].mxu1 }
 0x10d   : > { %13980 = vst [vmem:[#allocation11_spill] sm:$0xff] %v11499_v9  ;;  %v10204_v11 = vpop.eup %10203  ;;  %604 = vst.msk [vmem:[#allocation2] sm:$0xff] %vm603_vm5, %v600_v23  ;;  %v598_v4 = vmul.f32 %v11375_v30, %v595_v31  ;;  %v3589_v12 = vadd.f32 1.0, %v10202_v57  ;;  %10221 = vpow2.f32 %v3326_v37  ;;  %v3312_v13 = vmul.f32 1.442695, %v3160_v0 }
 0x10e   : > { %v10206_v15 = vpop.eup %10205  ;;  %v3590_v45 = vadd.f32 1.0, %v10204_v11  ;;  %10223 = vrcp.f32 %v3588_v58  ;;  %v11503_v16 = vmul.f32 1.442695, %v3161_v46  ;;  %v11505_v18 = vmul.f32 1.442695, %v3162_v1 }
 0x10f   : > { %v10208_v19 = vpop.eup %10207  ;;  %v602_v20 = vmul.f32 0.0, %v598_v4  ;;  %v3591_v22 = vadd.f32 1.0, %v10206_v15  ;;  %10225 = vrcp.f32 %v3589_v12  ;;  %v11507_v50 = vmul.f32 1.442695, %v3163_v5 }
 0x110   : > { %v10210_v24 = vpop.eup %10209  ;;  %10227 = vrcp.f32 %v3590_v45  ;;  %v3584_v23 = vadd.f32 1.0, %v10208_v19  ;;  %v11511_v31 = vrot.slane %v11441_v34, %v11085_v7  ;;  %v13981_v0 = vcombine.high %v11441_v34, %v11441_v34  ;;  %v11519_v37 = vpop.f32.mrb[16].mxu1 }
 0x111   : > { %13982 = vst [vmem:[#allocation12_spill] sm:$0xff] %v11519_v37  ;;  %v10212_v57 = vpop.eup %10211  ;;  %607 = vst.msk [vmem:[#allocation2 + $0x10] sm:$0x3] %vm606_vm6, %v602_v20  ;;  %10229 = vrcp.f32 %v3591_v22  ;;  %v3585_v58 = vadd.f32 1.0, %v10210_v24  ;;  %v2464_v1 = vcombine.high %v11449_v41, %v11449_v41  ;;  %v11526_v5 = vrot.slane %v11449_v41, %v11085_v7  ;;  %v11528_v11 = vpop.f32.mrb[17].mxu1 }
 0x112   : > { %v11517_v46 = vrot.slane %v13981_v0, %v11085_v7  ;;  %13983 = vst [vmem:[#allocation13_spill] sm:$0xff] %v11528_v11  ;;  %v10214_v4 = vpop.eup %10213  ;;  %v3586_v34 = vadd.f32 1.0, %v10212_v57  ;;  %10231 = vrcp.f32 %v3584_v23  ;;  %v11532_v12 = vcombine.high %v11511_v31, %v11511_v31 }
 0x113   : > { %v3587_v24 = vadd.f32 1.0, %v10214_v4  ;;  %10233 = vrcp.f32 %v3585_v58  ;;  %v3172_v45 = vsub.f32 0.0, %v11511_v31  ;;  %v11543_v23 = vrot.slane %v2464_v1, %v11085_v7 }
 0x114   : > { %v11536_v15 = vcombine.high %v11517_v46, %v11517_v46  ;;  %v3174_v41 = vsub.f32 0.0, %v11517_v46  ;;  %v10216_v19 = vpop.eup %10215  ;;  %10235 = vrcp.f32 %v3586_v34  ;;  %v3173_v20 = vsub.f32 0.0, %v11532_v12 }
 0x115   : > { %v10218_v0 = vpop.eup %10217  ;;  %10237 = vrcp.f32 %v3587_v24  ;;  %v3596_v57 = vadd.f32 1.0, %v10216_v19  ;;  %v3336_v30 = vmul.f32 1.442695, %v3172_v45  ;;  %v11547_v58 = vpop.f32.mrb[18].mxu1  ;;  %v11555_v1 = vcombine.high %v11526_v5, %v11526_v5 }
 0x116   : > { %v3175_v22 = vsub.f32 0.0, %v11536_v15  ;;  %v11545_v3 = vmul.f32 1.442695, %v3174_v41  ;;  %13984 = vst [vmem:[#allocation14_spill] sm:$0xff] %v11547_v58  ;;  %v10220_v4 = vpop.eup %10219  ;;  %v3597_v11 = vadd.f32 1.0, %v10218_v0  ;;  %10239 = vpow2.f32 %v3312_v13  ;;  %v11551_v37 = vpop.f32.mrb[19].mxu1 }
 0x117   : > { %v3338_v25 = vmul.f32 1.442695, %v3173_v20  ;;  %13985 = vst [vmem:[#allocation15_spill] sm:$0xff] %v11551_v37  ;;  %v10222_v40 = vpop.eup %10221  ;;  %v3598_v9 = vadd.f32 1.0, %v10220_v4  ;;  %10241 = vrcp.f32 %v3596_v57  ;;  %v11559_v24 = vcombine.high %v11543_v23, %v11543_v23 }
 0x118   : > { %v11549_v34 = vmul.f32 1.442695, %v3175_v22  ;;  %v10224_v45 = vpop.eup %10223  ;;  %v3599_v41 = vadd.f32 1.0, %v10222_v40  ;;  %10243 = vrcp.f32 %v3597_v11  ;;  %v3168_v13 = vsub.f32 0.0, %v11526_v5 }
 0x119   : > { %13986 = vst [vmem:[#allocation16_spill] sm:$0xff] %v11559_v24  ;;  %v3170_v19 = vsub.f32 0.0, %v11543_v23  ;;  %v10226_v20 = vpop.eup %10225  ;;  %v4020_v22 = vmul.f32 %v10224_v45, %v11397_v43  ;;  %10245 = vrcp.f32 %v3598_v9  ;;  %v3169_v0 = vsub.f32 0.0, %v11555_v1 }
 0x11a   : > { %v3171_v57 = vsub.f32 0.0, %v11559_v24  ;;  %v10228_v4 = vpop.eup %10227  ;;  %v4021_v37 = vmul.f32 %v10226_v20, %v11413_v56  ;;  %10247 = vrcp.f32 %v3599_v41  ;;  %v11567_v58 = vmul.f32 1.442695, %v3168_v13  ;;  %v11571_v11 = vpop.f32.mrb[20].mxu1 }
 0x11b   : > { %v11569_v40 = vmul.f32 1.442695, %v3170_v19  ;;  %v10230_v48 = vpop.eup %10229  ;;  %v4022_v27 = vmul.f32 %v10228_v4, %v11409_v55  ;;  %v4239_v43 = vmul.f32 %v11385_v35, %v4020_v22  ;;  %10249 = vpow2.f32 %v11503_v16  ;;  %v11576_v45 = vpop.f32.mrb[21].mxu1 }
 0x11c   : > { %v3330_v9 = vmul.f32 1.442695, %v3169_v0  ;;  %v10232_v24 = vpop.eup %10231  ;;  %v4023_v56 = vmul.f32 %v10230_v48, %v11426_v63  ;;  %v4240_v41 = vmul.f32 %v11391_v2, %v4021_v37  ;;  %10251 = vpow2.f32 %v11505_v18 }
 0x11d   : > { %v11581_v13 = vmul.f32 1.442695, %v3171_v57  ;;  %v10234_v19 = vpop.eup %10233  ;;  %v4241_v20 = vmul.f32 %v11399_v44, %v4022_v27  ;;  %v4016_v55 = vmul.f32 %v10232_v24, %v11404_v51  ;;  %10253 = vpow2.f32 %v11507_v50 }
 0x11e   : > { %v2217_v16 = vadd.f32 %v11443_v36, %v11364_v26  ;;  %v10236_v22 = vpop.eup %10235  ;;  %v4242_v0 = vmul.f32 %v11401_v47, %v4023_v56  ;;  %v4540_v63 = vcombine.low %v4239_v43, %v4240_v41  ;;  %v4017_v48 = vmul.f32 %v10234_v19, %v11421_v60 }
 0x11f   : > { %10255 = vpow2.f32 %v3336_v30  ;;  %v10238_v18 = vpop.eup %10237  ;;  %v4018_v37 = vmul.f32 %v10236_v22, %v11417_v59  ;;  %v4235_v57 = vmul.f32 %v11383_v33, %v4016_v55  ;;  %v11592_v51 = vpop.f32.mrb[22].mxu1 }
 0x120   : > { %10257 = vpow2.f32 %v3338_v25  ;;  %v2515_v27 = vcombine.high %v2217_v16, %v2217_v16  ;;  %v10240_v50 = vpop.eup %10239  ;;  %v4541_v24 = vcombine.low %v4241_v20, %v4242_v0  ;;  %v4548_v36 = vrot.slane %v4540_v63, %v11085_v7  ;;  %v11597_v56 = vpop.f32.mrb[23].mxu1 }
 0x121   : > { %v4019_v4 = vmul.f32 %v10238_v18, %v11432_v8  ;;  %v4236_v43 = vmul.f32 %v11369_v28, %v4017_v48  ;;  %v10242_v30 = vpop.eup %10241  ;;  %v4237_v60 = vmul.f32 %v11372_v29, %v4018_v37  ;;  %v3592_v59 = vadd.f32 1.0, %v10240_v50 }
 0x122   : > { %10259 = vpow2.f32 %v11545_v3  ;;  %v11602_v25 = vrot.slane %v2217_v16, %v11085_v7  ;;  %v10244_v41 = vpop.eup %10243  ;;  %v4555_v19 = vrot.slane %v4541_v24, %v11085_v7  ;;  %v4028_v8 = vmul.f32 %v10242_v30, %v11446_v39 }
 0x123   : > { %v4238_v20 = vmul.f32 %v11380_v32, %v4019_v4  ;;  %v4523_v55 = vcombine.low %v4235_v57, %v4236_v43  ;;  %v10246_v22 = vpop.eup %10245  ;;  %v4029_v0 = vmul.f32 %v10244_v41, %v11463_v54  ;;  %10261 = vrcp.f32 %v3592_v59 }
 0x124   : > { %v11609_v63 = vrot.slane %v2515_v27, %v11085_v7  ;;  %v11613_v3 = vcombine.high %v11602_v25, %v11602_v25  ;;  %v10248_v16 = vpop.eup %10247  ;;  %v4556_v48 = vcombine.low %v4548_v36, %v4555_v19  ;;  %v4030_v57 = vmul.f32 %v10246_v22, %v11459_v52 }
 0x125   : > { %v4524_v18 = vcombine.low %v4237_v60, %v4238_v20  ;;  %v4531_v37 = vrot.slane %v4523_v55, %v11085_v7  ;;  %v10250_v50 = vpop.eup %10249  ;;  %v4031_v39 = vmul.f32 %v10248_v16, %v11477_v6  ;;  %v11619_v54 = vmul.f32 %v11380_v32, %v4028_v8  ;;  %v11641_v16 = vpop.f32.mrb[24].mxu1 }
 0x126   : > { %v4248_v27 = vmul.f32 %v11385_v35, %v4029_v0  ;;  %10263 = vpow2.f32 %v11549_v34  ;;  %v10252_v24 = vpop.eup %10251  ;;  %5229 = vst.msk [vmem:[#allocation2 + $0x20] sm:$0xff] %vm603_vm5, %v4556_v48  ;;  %v4249_v4 = vmul.f32 %v11391_v2, %v4030_v57  ;;  %v3593_v43 = vadd.f32 1.0, %v10250_v50 }
 0x127   : > { %v4538_v36 = vrot.slane %v4524_v18, %v11085_v7  ;;  %10265 = vpow2.f32 %v11567_v58  ;;  %v10254_v52 = vpop.eup %10253  ;;  %v3594_v30 = vadd.f32 1.0, %v10252_v24  ;;  %v11628_v6 = vmul.f32 %v11399_v44, %v4031_v39 }
 0x128   : > { %10267 = vpow2.f32 %v3330_v9  ;;  %v11632_v60 = vcombine.high %v11609_v63, %v11609_v63  ;;  %v4581_v41 = vcombine.low %v4248_v27, %v4249_v4  ;;  %v3595_v19 = vadd.f32 1.0, %v10254_v52 }
 0x129   : > { %v10256_v34 = vpop.eup %10255  ;;  %v4539_v59 = vcombine.low %v4531_v37, %v4538_v36  ;;  %10269 = vrcp.f32 %v3593_v43  ;;  %v3180_v58 = vsub.f32 0.0, %v11602_v25  ;;  %v3181_v8 = vsub.f32 0.0, %v11613_v3 }
 0x12a   : > { %v10258_v20 = vpop.eup %10257  ;;  %10271 = vrcp.f32 %v3594_v30  ;;  %v3604_v55 = vadd.f32 1.0, %v10256_v34  ;;  %v11638_v9 = vrot.slane %v4581_v41, %v11085_v7  ;;  %v3182_v0 = vsub.f32 0.0, %v11609_v63 }
 0x12b   : > { %5228 = vst.msk [vmem:[#allocation2 + $0x18] sm:$0xff] %vm603_vm5, %v4539_v59  ;;  %10273 = vrcp.f32 %v3595_v19  ;;  %v3605_v22 = vadd.f32 1.0, %v10258_v20  ;;  %v3183_v18 = vsub.f32 0.0, %v11632_v60  ;;  %v3352_v37 = vmul.f32 1.442695, %v3180_v58  ;;  %v11672_v20 = vpop.f32.mrb[25].mxu1 }
 0x12c   : > { %v10260_v48 = vpop.eup %10259  ;;  %10275 = vrcp.f32 %v3604_v55  ;;  %v3354_v57 = vmul.f32 1.442695, %v3181_v8  ;;  %v3356_v39 = vmul.f32 1.442695, %v3182_v0  ;;  %v2212_v27 = vadd.f32 %v11451_v42, %v11406_v53 }
 0x12d   : > { %v3606_v50 = vadd.f32 1.0, %v10260_v48  ;;  %10277 = vrcp.f32 %v3605_v22  ;;  %v10262_v24 = vpop.eup %10261  ;;  %v3358_v36 = vmul.f32 1.442695, %v3183_v18  ;;  %v11649_v4 = vadd.f32 %v11480_v10, %v11355_v21 }
 0x12e   : > { %10279 = vpow2.f32 %v11569_v40  ;;  %v11653_v43 = vadd.f32 %v11484_v14, %v11364_v26  ;;  %v4024_v52 = vmul.f32 %v10262_v24, %v11454_v49  ;;  %v2498_v30 = vcombine.high %v2212_v27, %v2212_v27 }
 0x12f   : > { %10281 = vrcp.f32 %v3606_v50  ;;  %v11657_v34 = vrot.slane %v2212_v27, %v11085_v7  ;;  %v2549_v40 = vcombine.high %v11649_v4, %v11649_v4  ;;  %v11664_v10 = vrot.slane %v11649_v4, %v11085_v7 }
 0x130   : > { %v10264_v42 = vpop.eup %10263  ;;  %10283 = vpow2.f32 %v11581_v13  ;;  %v2532_v14 = vcombine.high %v11653_v43, %v11653_v43  ;;  %v4243_v49 = vmul.f32 %v11389_v38, %v4024_v52  ;;  %v11670_v19 = vrot.slane %v2498_v30, %v11085_v7 }
 0x131   : > { %v10266_v59 = vpop.eup %10265  ;;  %v3607_v41 = vadd.f32 1.0, %v10264_v42  ;;  %10285 = vpow2.f32 %v3352_v37  ;;  %v11676_v58 = vcombine.high %v11657_v34, %v11657_v34  ;;  %v3176_v8 = vsub.f32 0.0, %v11657_v34 }
 0x132   : > { %v10268_v13 = vpop.eup %10267  ;;  %v3600_v55 = vadd.f32 1.0, %v10266_v59  ;;  %10287 = vpow2.f32 %v3354_v57  ;;  %v4563_v0 = vrot.slane %v4243_v49, %v11085_v7  ;;  %v11682_v18 = vcombine.high %v11670_v19, %v11670_v19 }
 0x133   : > { %v10270_v22 = vpop.eup %10269  ;;  %10289 = vrcp.f32 %v3607_v41  ;;  %v3601_v48 = vadd.f32 1.0, %v10268_v13  ;;  %v3177_v57 = vsub.f32 0.0, %v11676_v58  ;;  %v3178_v27 = vsub.f32 0.0, %v11670_v19 }
 0x134   : > { %v10272_v37 = vpop.eup %10271  ;;  %v4025_v50 = vmul.f32 %v10270_v22, %v11471_v62  ;;  %10291 = vrcp.f32 %v3600_v55  ;;  %5230 = vst.msk [vmem:[#allocation2 + $0x28] sm:$0x3] %vm606_vm6, %v4563_v0  ;;  %v3179_v52 = vsub.f32 0.0, %v11682_v18  ;;  %v3344_v30 = vmul.f32 1.442695, %v3176_v8 }
 0x135   : > { %v10274_v24 = vpop.eup %10273  ;;  %v4026_v4 = vmul.f32 %v10272_v37, %v11467_v61  ;;  %10293 = vrcp.f32 %v3601_v48  ;;  %v3346_v62 = vmul.f32 1.442695, %v3177_v57  ;;  %v3348_v61 = vmul.f32 1.442695, %v3178_v27 }
 0x136   : > { %v10276_v42 = vpop.eup %10275  ;;  %v4027_v59 = vmul.f32 %v10274_v24, %v11490_v17  ;;  %v4244_v49 = vmul.f32 %v11383_v33, %v4025_v50  ;;  %10295 = vpow2.f32 %v3356_v39  ;;  %v3350_v8 = vmul.f32 1.442695, %v3179_v52 }
 0x137   : > { %v10278_v41 = vpop.eup %10277  ;;  %v4245_v13 = vmul.f32 %v11369_v28, %v4026_v4  ;;  %v4036_v55 = vmul.f32 %v10276_v42, %v11511_v31  ;;  %10297 = vpow2.f32 %v3358_v36  ;;  %v11702_v52 = vrot.slane %v2549_v40, %v11085_v7 }
 0x138   : > { %v10280_v22 = vpop.eup %10279  ;;  %v4246_v0 = vmul.f32 %v11372_v29, %v4027_v59  ;;  %v4037_v48 = vmul.f32 %v10278_v41, %v11532_v12  ;;  %10299 = vpow2.f32 %v3344_v30  ;;  %v11708_v41 = vcombine.high %v11664_v10, %v11664_v10 }
 0x139   : > { %v10282_v37 = vpop.eup %10281  ;;  %v4564_v17 = vcombine.low %v4244_v49, %v4245_v13  ;;  %v4255_v50 = vmul.f32 %v11372_v29, %v4036_v55  ;;  %v3602_v39 = vadd.f32 1.0, %v10280_v22  ;;  %10301 = vpow2.f32 %v3346_v62 }
 0x13a   : > { %v10284_v57 = vpop.eup %10283  ;;  %v4565_v24 = vcombine.low %v4246_v0, %v11619_v54  ;;  %v4038_v31 = vmul.f32 %v10282_v37, %v11517_v46  ;;  %v4256_v36 = vmul.f32 %v11380_v32, %v4037_v48  ;;  %10303 = vpow2.f32 %v3348_v61 }
 0x13b   : > { %v10286_v27 = vpop.eup %10285  ;;  %v4572_v4 = vrot.slane %v4564_v17, %v11085_v7  ;;  %v3603_v12 = vadd.f32 1.0, %v10284_v57  ;;  %10305 = vrcp.f32 %v3602_v39  ;;  %v11712_v13 = vcombine.high %v11702_v52, %v11702_v52 }
 0x13c   : > { %v10288_v30 = vpop.eup %10287  ;;  %v4579_v42 = vrot.slane %v4565_v24, %v11085_v7  ;;  %v4257_v59 = vmul.f32 %v11385_v35, %v4038_v31  ;;  %v4606_v49 = vcombine.low %v4255_v50, %v4256_v36  ;;  %v3612_v54 = vadd.f32 1.0, %v10286_v27  ;;  %v11725_v24 = vpop.f32.mrb[26].mxu1 }
 0x13d   : > { %v10290_v62 = vpop.eup %10289  ;;  %10307 = vrcp.f32 %v3603_v12  ;;  %v3613_v46 = vadd.f32 1.0, %v10288_v30  ;;  %v3188_v37 = vsub.f32 0.0, %v11664_v10  ;;  %v3189_v17 = vsub.f32 0.0, %v11708_v41 }
 0x13e   : > { %v10292_v40 = vpop.eup %10291  ;;  %v4580_v55 = vcombine.low %v4572_v4, %v4579_v42  ;;  %v4039_v61 = vmul.f32 %v10290_v62, %v11536_v15  ;;  %v11716_v22 = vrot.slane %v4606_v49, %v11085_v7  ;;  %10309 = vrcp.f32 %v3612_v54 }
 0x13f   : > { %v10294_v0 = vpop.eup %10293  ;;  %v4032_v48 = vmul.f32 %v10292_v40, %v11526_v5  ;;  %10311 = vrcp.f32 %v3613_v46  ;;  %v3190_v15 = vsub.f32 0.0, %v11702_v52  ;;  %v3191_v27 = vsub.f32 0.0, %v11712_v13 }
 0x140   : > { %v10296_v50 = vpop.eup %10295  ;;  %5231 = vst.msk [vmem:[#allocation2 + $0x30] sm:$0xff] %vm603_vm5, %v4580_v55  ;;  %v4258_v39 = vmul.f32 %v11391_v2, %v4039_v61  ;;  %v4033_v57 = vmul.f32 %v10294_v0, %v11555_v1  ;;  %10313 = vpow2.f32 %v3350_v8  ;;  %v3368_v4 = vmul.f32 1.442695, %v3188_v37 }
 0x141   : > { %v10298_v31 = vpop.eup %10297  ;;  %v4251_v5 = vmul.f32 %v11401_v47, %v4032_v48  ;;  %v3614_v36 = vadd.f32 1.0, %v10296_v50  ;;  %v3370_v54 = vmul.f32 1.442695, %v3189_v17  ;;  %v3372_v46 = vmul.f32 1.442695, %v3190_v15  ;;  %v11736_v50 = vpop.f32.mrb[27].mxu1 }
 0x142   : > { %v10300_v12 = vpop.eup %10299  ;;  %v4622_v30 = vcombine.low %v4257_v59, %v4258_v39  ;;  %v4252_v42 = vmul.f32 %v11389_v38, %v4033_v57  ;;  %v3615_v49 = vadd.f32 1.0, %v10298_v31  ;;  %v3374_v17 = vmul.f32 1.442695, %v3191_v27  ;;  %v13989_v27 = vld [vmem:[#allocation11_spill] sm:$0xff] }
 0x143   : > { %v10302_v62 = vpop.eup %10301  ;;  %v4582_v1 = vcombine.low %v11628_v6, %v4251_v5  ;;  %10315 = vrcp.f32 %v3614_v36  ;;  %v3608_v8 = vadd.f32 1.0, %v10300_v12  ;;  %v11742_v39 = vrot.slane %v11653_v43, %v11085_v7  ;;  %v13987_v5 = vld [vmem:[#allocation5_spill] sm:$0xff]  ;;  %v13988_v36 = vld [vmem:[#allocation10_spill] sm:$0xff] }
 0x144   : > { %v10304_v40 = vpop.eup %10303  ;;  %v11732_v55 = vrot.slane %v4622_v30, %v11085_v7  ;;  %v4604_v61 = vrot.slane %v4252_v42, %v11085_v7  ;;  %10317 = vrcp.f32 %v3615_v49  ;;  %v3609_v0 = vadd.f32 1.0, %v10302_v62  ;;  %v13990_v42 = vld [vmem:[#allocation16_spill] sm:$0xff] }
 0x145   : > { %v10306_v48 = vpop.eup %10305  ;;  %v4596_v59 = vrot.slane %v4582_v1, %v11085_v7  ;;  %v3610_v37 = vadd.f32 1.0, %v10304_v40  ;;  %10319 = vrcp.f32 %v3608_v8  ;;  %v11748_v57 = vrot.slane %v2532_v14, %v11085_v7 }
 0x146   : > { %v4034_v6 = vmul.f32 %v10306_v48, %v11543_v23  ;;  %5233 = vst.msk [vmem:[#allocation2 + $0x40] sm:$0x3] %vm606_vm6, %v4604_v61  ;;  %10321 = vrcp.f32 %v3609_v0  ;;  %v2237_v23 = vadd.f32 %v13988_v36, %v13987_v5  ;;  %v11755_v12 = vadd.f32 %v13989_v27, %v11355_v21 }
 0x147   : > { %v10308_v15 = vpop.eup %10307  ;;  %v4597_v31 = vcombine.low %v11638_v9, %v4596_v59  ;;  %10323 = vrcp.f32 %v3610_v37  ;;  %v11761_v43 = vcombine.high %v11742_v39, %v11742_v39  ;;  %v11767_v1 = vcombine.high %v11748_v57, %v11748_v57 }
 0x148   : > { %v10310_v30 = vpop.eup %10309  ;;  %v4035_v49 = vmul.f32 %v10308_v15, %v13990_v42  ;;  %v4253_v62 = vmul.f32 %v11383_v33, %v4034_v6  ;;  %10325 = vpow2.f32 %v3368_v4  ;;  %v3184_v8 = vsub.f32 0.0, %v11742_v39 }
 0x149   : > { %v10312_v14 = vpop.eup %10311  ;;  %5232 = vst.msk [vmem:[#allocation2 + $0x38] sm:$0xff] %vm603_vm5, %v4597_v31  ;;  %v4044_v9 = vmul.f32 %v10310_v30, %v11602_v25  ;;  %10327 = vpow2.f32 %v3370_v54  ;;  %v3185_v0 = vsub.f32 0.0, %v11761_v43  ;;  %v3186_v25 = vsub.f32 0.0, %v11748_v57 }
 0x14a   : > { %v10314_v40 = vpop.eup %10313  ;;  %v4254_v61 = vmul.f32 %v11369_v28, %v4035_v49  ;;  %v4045_v4 = vmul.f32 %v10312_v14, %v11613_v3  ;;  %10329 = vpow2.f32 %v3372_v46  ;;  %v3187_v6 = vsub.f32 0.0, %v11767_v1 }
 0x14b   : > { %v11774_v48 = vmul.f32 %v11369_v28, %v4044_v9  ;;  %v3611_v59 = vadd.f32 1.0, %v10314_v40  ;;  %10331 = vpow2.f32 %v3374_v17  ;;  %v3360_v15 = vmul.f32 1.442695, %v3184_v8 }
 0x14c   : > { %v4605_v54 = vcombine.low %v4253_v62, %v4254_v61  ;;  %v4264_v37 = vmul.f32 %v11372_v29, %v4045_v4  ;;  %v3362_v36 = vmul.f32 1.442695, %v3185_v0  ;;  %v3364_v3 = vmul.f32 1.442695, %v3186_v25 }
 0x14d   : > { %v10316_v31 = vpop.eup %10315  ;;  %10333 = vrcp.f32 %v3611_v59  ;;  %v2583_v46 = vcombine.high %v2237_v23, %v2237_v23  ;;  %v3366_v17 = vmul.f32 1.442695, %v3187_v6  ;;  %v11783_v14 = vrot.slane %v2237_v23, %v11085_v7 }
 0x14e   : > { %v10318_v27 = vpop.eup %10317  ;;  %v4613_v30 = vrot.slane %v4605_v54, %v11085_v7  ;;  %v4046_v42 = vmul.f32 %v10316_v31, %v11609_v63  ;;  %10335 = vpow2.f32 %v3360_v15 }
 0x14f   : > { %v10320_v49 = vpop.eup %10319  ;;  %v4047_v62 = vmul.f32 %v10318_v27, %v11632_v60  ;;  %10337 = vpow2.f32 %v3362_v36  ;;  %v11786_v9 = vrot.slane %v2583_v46, %v11085_v7  ;;  %v11797_v23 = vcombine.high %v11783_v14, %v11783_v14 }
 0x150   : > { %v10322_v8 = vpop.eup %10321  ;;  %v4621_v40 = vcombine.low %v4613_v30, %v11716_v22  ;;  %v4265_v61 = vmul.f32 %v11380_v32, %v4046_v42  ;;  %v4040_v4 = vmul.f32 %v10320_v49, %v11657_v34  ;;  %10339 = vpow2.f32 %v3364_v3 }
 0x151   : > { %v10324_v63 = vpop.eup %10323  ;;  %v4041_v0 = vmul.f32 %v10322_v8, %v11676_v58  ;;  %10341 = vpow2.f32 %v3366_v17  ;;  %v11793_v60 = vmul.f32 %v11385_v35, %v4047_v62  ;;  %v11804_v54 = vcombine.high %v11786_v9, %v11786_v9  ;;  %v11815_v62 = vpop.f32.mrb[28].mxu1 }
 0x152   : > { %v10326_v59 = vpop.eup %10325  ;;  %5234 = vst.msk [vmem:[#allocation2 + $0x48] sm:$0xff] %vm603_vm5, %v4621_v40  ;;  %v4647_v22 = vcombine.low %v4264_v37, %v4265_v61  ;;  %v4042_v25 = vmul.f32 %v10324_v63, %v11670_v19  ;;  %v4259_v34 = vmul.f32 %v11399_v44, %v4040_v4  ;;  %v3196_v31 = vsub.f32 0.0, %v11783_v14  ;;  %13991 = vst [vmem:[#allocation5_spill] sm:$0xff] %v11815_v62 }
 0x153   : > { %v10328_v58 = vpop.eup %10327  ;;  %v4260_v6 = vmul.f32 %v11401_v47, %v4041_v0  ;;  %v3620_v15 = vadd.f32 1.0, %v10326_v59  ;;  %v3197_v36 = vsub.f32 0.0, %v11797_v23  ;;  %v3198_v27 = vsub.f32 0.0, %v11786_v9 }
 0x154   : > { %v10330_v3 = vpop.eup %10329  ;;  %v11810_v46 = vrot.slane %v4647_v22, %v11085_v7  ;;  %v4261_v19 = vmul.f32 %v11389_v38, %v4042_v25  ;;  %v3621_v37 = vadd.f32 1.0, %v10328_v58  ;;  %v3199_v49 = vsub.f32 0.0, %v11804_v54 }
 0x155   : > { %v10332_v30 = vpop.eup %10331  ;;  %v4623_v42 = vcombine.low %v4259_v34, %v4260_v6  ;;  %v3622_v17 = vadd.f32 1.0, %v10330_v3  ;;  %10343 = vrcp.f32 %v3620_v15  ;;  %v3384_v61 = vmul.f32 1.442695, %v3196_v31 }
 0x156   : > { %v4645_v8 = vrot.slane %v4261_v19, %v11085_v7  ;;  %v3623_v40 = vadd.f32 1.0, %v10332_v30  ;;  %10345 = vrcp.f32 %v3621_v37  ;;  %v3386_v0 = vmul.f32 1.442695, %v3197_v36  ;;  %v11828_v36 = vpop.f32.mrb[29].mxu1 }
 0x157   : > { %v10334_v4 = vpop.eup %10333  ;;  %v4637_v63 = vrot.slane %v4623_v42, %v11085_v7  ;;  %10347 = vrcp.f32 %v3622_v17  ;;  %v3388_v59 = vmul.f32 1.442695, %v3198_v27  ;;  %v3390_v34 = vmul.f32 1.442695, %v3199_v49  ;;  %13992 = vst [vmem:[#allocation10_spill] sm:$0xff] %v11828_v36 }
 0x158   : > { %v10336_v22 = vpop.eup %10335  ;;  %v4043_v25 = vmul.f32 %v10334_v4, %v11682_v18  ;;  %5236 = vst.msk [vmem:[#allocation2 + $0x58] sm:$0x3] %vm606_vm6, %v4645_v8  ;;  %10349 = vrcp.f32 %v3623_v40  ;;  %v2566_v58 = vcombine.high %v11755_v12, %v11755_v12  ;;  %v11826_v3 = vrot.slane %v11755_v12, %v11085_v7 }
 0x159   : > { %v10338_v6 = vpop.eup %10337  ;;  %v4638_v15 = vcombine.low %v11732_v55, %v4637_v63  ;;  %v3616_v31 = vadd.f32 1.0, %v10336_v22  ;;  %10351 = vpow2.f32 %v3384_v61  ;;  %v13993_v22 = vld [vmem:[#allocation8_spill] sm:$0xff] }
 0x15a   : > { %v10340_v19 = vpop.eup %10339  ;;  %v4262_v18 = vmul.f32 %v11383_v33, %v4043_v25  ;;  %v3617_v37 = vadd.f32 1.0, %v10338_v6  ;;  %10353 = vpow2.f32 %v3386_v0  ;;  %v11832_v27 = vrot.slane %v2566_v58, %v11085_v7  ;;  %v13994_v25 = vld [vmem:[#allocation12_spill] sm:$0xff] }
 0x15b   : > { %v10342_v30 = vpop.eup %10341  ;;  %5235 = vst.msk [vmem:[#allocation2 + $0x50] sm:$0xff] %vm603_vm5, %v4638_v15  ;;  %v3618_v55 = vadd.f32 1.0, %v10340_v19  ;;  %10355 = vrcp.f32 %v3616_v31  ;;  %v11837_v42 = vcombine.high %v11826_v3, %v11826_v3  ;;  %v3192_v12 = vsub.f32 0.0, %v11826_v3  ;;  %v13995_v31 = vld [vmem:[#allocation4_spill] sm:$0xff]  ;;  %v13996_v19 = vld [vmem:[#allocation13_spill] sm:$0xff] }
 0x15c   : > { %v4646_v17 = vcombine.low %v4262_v18, %v11774_v48  ;;  %v3619_v49 = vadd.f32 1.0, %v10342_v30  ;;  %10357 = vrcp.f32 %v3617_v37  ;;  %v11843_v8 = vcombine.high %v11832_v27, %v11832_v27 }
 0x15d   : > { %10359 = vrcp.f32 %v3618_v55  ;;  %v3193_v40 = vsub.f32 0.0, %v11837_v42  ;;  %v3194_v61 = vsub.f32 0.0, %v11832_v27  ;;  %v3376_v4 = vmul.f32 1.442695, %v3192_v12 }
 0x15e   : > { %v4654_v63 = vrot.slane %v4646_v17, %v11085_v7  ;;  %10361 = vrcp.f32 %v3619_v49  ;;  %v3195_v0 = vsub.f32 0.0, %v11843_v8  ;;  %v2247_v48 = vadd.f32 %v13994_v25, %v13993_v22 }
 0x15f   : > { %v10344_v58 = vpop.eup %10343  ;;  %10363 = vpow2.f32 %v3388_v59  ;;  %v3378_v6 = vmul.f32 1.442695, %v3193_v40  ;;  %v3380_v15 = vmul.f32 1.442695, %v3194_v61  ;;  %v11853_v18 = vadd.f32 %v13996_v19, %v13995_v31 }
 0x160   : > { %v10346_v37 = vpop.eup %10345  ;;  %v4662_v30 = vcombine.low %v4654_v63, %v11810_v46  ;;  %v4052_v55 = vmul.f32 %v10344_v58, %v11664_v10  ;;  %10365 = vpow2.f32 %v3390_v34  ;;  %v3382_v12 = vmul.f32 1.442695, %v3195_v0 }
 0x161   : > { %v10348_v17 = vpop.eup %10347  ;;  %v4053_v49 = vmul.f32 %v10346_v37, %v11708_v41  ;;  %10367 = vpow2.f32 %v3376_v4  ;;  %v2617_v25 = vcombine.high %v2247_v48, %v2247_v48  ;;  %v11859_v59 = vrot.slane %v2247_v48, %v11085_v7 }
 0x162   : > { %v10350_v40 = vpop.eup %10349  ;;  %5237 = vst.msk [vmem:[#allocation2 + $0x60] sm:$0xff] %vm603_vm5, %v4662_v30  ;;  %v4054_v61 = vmul.f32 %v10348_v17, %v11702_v52  ;;  %v4271_v19 = vmul.f32 %v11383_v33, %v4052_v55  ;;  %10369 = vpow2.f32 %v3378_v6 }
 0x163   : > { %v10352_v46 = vpop.eup %10351  ;;  %v4055_v34 = vmul.f32 %v10350_v40, %v11712_v13  ;;  %v4272_v41 = vmul.f32 %v11369_v28, %v4053_v49  ;;  %10371 = vpow2.f32 %v3380_v15  ;;  %v11869_v4 = vrot.slane %v2617_v25, %v11085_v7 }
 0x164   : > { %v10354_v63 = vpop.eup %10353  ;;  %v4273_v0 = vmul.f32 %v11372_v29, %v4054_v61  ;;  %v3628_v48 = vadd.f32 1.0, %v10352_v46  ;;  %10373 = vpow2.f32 %v3382_v12  ;;  %v11874_v52 = vcombine.high %v11859_v59, %v11859_v59 }
 0x165   : > { %v10356_v58 = vpop.eup %10355  ;;  %v4274_v6 = vmul.f32 %v11380_v32, %v4055_v34  ;;  %v4687_v37 = vcombine.low %v4271_v19, %v4272_v41  ;;  %v3629_v13 = vadd.f32 1.0, %v10354_v63  ;;  %v11879_v15 = vcombine.high %v11869_v4, %v11869_v4  ;;  %v11890_v63 = vpop.f32.mrb[30].mxu1 }
 0x166   : > { %v10358_v30 = vpop.eup %10357  ;;  %v4048_v55 = vmul.f32 %v10356_v58, %v11742_v39  ;;  %10375 = vrcp.f32 %v3628_v48  ;;  %v3204_v17 = vsub.f32 0.0, %v11859_v59  ;;  %v3205_v12 = vsub.f32 0.0, %v11874_v52  ;;  %13997 = vst [vmem:[#allocation11_spill] sm:$0xff] %v11890_v63  ;;  %v11898_v62 = vpop.f32.mrb[31].mxu1 }
 0x167   : > { %v10360_v49 = vpop.eup %10359  ;;  %v4688_v25 = vcombine.low %v4273_v0, %v4274_v6  ;;  %v4695_v40 = vrot.slane %v4687_v37, %v11085_v7  ;;  %v4049_v61 = vmul.f32 %v10358_v30, %v11761_v43  ;;  %10377 = vrcp.f32 %v3629_v13  ;;  %13998 = vst [vmem:[#allocation16_spill] sm:$0xff] %v11898_v62 }
 0x168   : > { %v10362_v19 = vpop.eup %10361  ;;  %v4050_v46 = vmul.f32 %v10360_v49, %v11748_v57  ;;  %v4267_v34 = vmul.f32 %v11391_v2, %v4048_v55  ;;  %v3206_v41 = vsub.f32 0.0, %v11869_v4  ;;  %v3207_v39 = vsub.f32 0.0, %v11879_v15 }
 0x169   : > { %v10364_v48 = vpop.eup %10363  ;;  %v4702_v58 = vrot.slane %v4688_v25, %v11085_v7  ;;  %v4051_v0 = vmul.f32 %v10362_v19, %v11767_v1  ;;  %v4268_v6 = vmul.f32 %v11399_v44, %v4049_v61  ;;  %v3400_v43 = vmul.f32 1.442695, %v3204_v17 }
 0x16a   : > { %v10366_v37 = vpop.eup %10365  ;;  %v4269_v13 = vmul.f32 %v11401_v47, %v4050_v46  ;;  %v4663_v57 = vcombine.low %v11793_v60, %v4267_v34  ;;  %v3630_v30 = vadd.f32 1.0, %v10364_v48  ;;  %v3402_v55 = vmul.f32 1.442695, %v3205_v12 }
 0x16b   : > { %v10368_v49 = vpop.eup %10367  ;;  %v4703_v10 = vcombine.low %v4695_v40, %v4702_v58  ;;  %v4270_v36 = vmul.f32 %v11389_v38, %v4051_v0  ;;  %v3631_v63 = vadd.f32 1.0, %v10366_v37  ;;  %10379 = vpow2.f32 %v3400_v43  ;;  %v14000_v43 = vld [vmem:[#allocation14_spill] sm:$0xff]  ;;  %v14001_v37 = vld [vmem:[#allocation7_spill] sm:$0xff] }
 0x16c   : > { %v10370_v25 = vpop.eup %10369  ;;  %v4664_v1 = vcombine.low %v4268_v6, %v4269_v13  ;;  %v4671_v61 = vrot.slane %v4663_v57, %v11085_v7  ;;  %10381 = vrcp.f32 %v3630_v30  ;;  %v3624_v17 = vadd.f32 1.0, %v10368_v49  ;;  %v14002_v13 = vld [vmem:[#allocation15_spill] sm:$0xff] }
 0x16d   : > { %v10372_v19 = vpop.eup %10371  ;;  %5240 = vst.msk [vmem:[#allocation2 + $0x78] sm:$0xff] %vm603_vm5, %v4703_v10  ;;  %v4686_v60 = vrot.slane %v4270_v36, %v11085_v7  ;;  %10383 = vrcp.f32 %v3631_v63  ;;  %v3625_v12 = vadd.f32 1.0, %v10370_v25  ;;  %v3404_v40 = vmul.f32 1.442695, %v3206_v41 }
 0x16e   : > { %v10374_v46 = vpop.eup %10373  ;;  %v4678_v34 = vrot.slane %v4664_v1, %v11085_v7  ;;  %v3626_v48 = vadd.f32 1.0, %v10372_v19  ;;  %10385 = vrcp.f32 %v3624_v17  ;;  %v3406_v58 = vmul.f32 1.442695, %v3207_v39 }
 0x16f   : > { %5239 = vst.msk [vmem:[#allocation2 + $0x70] sm:$0x3] %vm606_vm6, %v4686_v60  ;;  %v3627_v0 = vadd.f32 1.0, %v10374_v46  ;;  %10387 = vrcp.f32 %v3625_v12  ;;  %v11907_v6 = vrot.slane %v11853_v18, %v11085_v7  ;;  %v13999_v36 = vcombine.high %v11853_v18, %v11853_v18 }
 0x170   : > { %v10376_v41 = vpop.eup %10375  ;;  %v4679_v63 = vcombine.low %v4671_v61, %v4678_v34  ;;  %10389 = vrcp.f32 %v3626_v48  ;;  %v2257_v39 = vadd.f32 %v14000_v43, %v11406_v53  ;;  %v11919_v57 = vadd.f32 %v14002_v13, %v14001_v37 }
 0x171   : > { %v11913_v10 = vrot.slane %v13999_v36, %v11085_v7  ;;  %v10378_v30 = vpop.eup %10377  ;;  %v4060_v49 = vmul.f32 %v10376_v41, %v11783_v14  ;;  %10391 = vrcp.f32 %v3627_v0  ;;  %v11924_v25 = vcombine.high %v11907_v6, %v11907_v6 }
 0x172   : > { %5238 = vst.msk [vmem:[#allocation2 + $0x68] sm:$0xff] %vm603_vm5, %v4679_v63  ;;  %v4061_v1 = vmul.f32 %v10378_v30, %v11797_v23  ;;  %10393 = vpow2.f32 %v3402_v55  ;;  %v3200_v61 = vsub.f32 0.0, %v11907_v6  ;;  %v2651_v36 = vcombine.high %v2257_v39, %v2257_v39 }
 0x173   : > { %v11928_v18 = vcombine.high %v11913_v10, %v11913_v10  ;;  %v3202_v17 = vsub.f32 0.0, %v11913_v10  ;;  %v4279_v14 = vmul.f32 %v11389_v38, %v4060_v49  ;;  %10395 = vpow2.f32 %v3404_v40 }
 0x174   : > { %v3201_v19 = vsub.f32 0.0, %v11924_v25  ;;  %v4280_v12 = vmul.f32 %v11383_v33, %v4061_v1  ;;  %10397 = vpow2.f32 %v3406_v58  ;;  %v3392_v46 = vmul.f32 1.442695, %v3200_v61 }
 0x175   : > { %v3203_v60 = vsub.f32 0.0, %v11928_v18  ;;  %v3396_v34 = vmul.f32 1.442695, %v3202_v17  ;;  %v10380_v48 = vpop.eup %10379  ;;  %v4727_v23 = vrot.slane %v4279_v14, %v11085_v7  ;;  %v11940_v40 = vrot.slane %v2257_v39, %v11085_v7 }
 0x176   : > { %v3394_v55 = vmul.f32 1.442695, %v3201_v19  ;;  %v10382_v41 = vpop.eup %10381  ;;  %v3636_v63 = vadd.f32 1.0, %v10380_v48  ;;  %10399 = vpow2.f32 %v3392_v46  ;;  %v2634_v43 = vcombine.high %v11919_v57, %v11919_v57 }
 0x177   : > { %v3398_v0 = vmul.f32 1.442695, %v3203_v60  ;;  %v10384_v13 = vpop.eup %10383  ;;  %v4062_v58 = vmul.f32 %v10382_v41, %v11786_v9  ;;  %5242 = vst.msk [vmem:[#allocation2 + $0x88] sm:$0x3] %vm606_vm6, %v4727_v23  ;;  %v11947_v30 = vrot.slane %v2651_v36, %v11085_v7  ;;  %v11951_v49 = vrot.slane %v11919_v57, %v11085_v7  ;;  %v11965_v60 = vpop.f32.mrb[32].mxu1 }
 0x178   : > { %10401 = vpow2.f32 %v3394_v55  ;;  %v10386_v1 = vpop.eup %10385  ;;  %v4063_v39 = vmul.f32 %v10384_v13, %v11804_v54  ;;  %v11956_v61 = vcombine.high %v11940_v40, %v11940_v40  ;;  %v3212_v9 = vsub.f32 0.0, %v11940_v40  ;;  %14003 = vst [vmem:[#allocation8_spill] sm:$0xff] %v11965_v60 }
 0x179   : > { %10403 = vrcp.f32 %v3636_v63  ;;  %v10388_v17 = vpop.eup %10387  ;;  %v4281_v14 = vmul.f32 %v11369_v28, %v4062_v58  ;;  %v4056_v19 = vmul.f32 %v10386_v1, %v11826_v3  ;;  %v11963_v57 = vcombine.high %v11947_v30, %v11947_v30 }
 0x17a   : > { %10405 = vpow2.f32 %v3396_v34  ;;  %v10390_v54 = vpop.eup %10389  ;;  %v4057_v46 = vmul.f32 %v10388_v17, %v11837_v42  ;;  %v11969_v48 = vmul.f32 %v11372_v29, %v4063_v39  ;;  %v3213_v23 = vsub.f32 0.0, %v11956_v61 }
 0x17b   : > { %10407 = vpow2.f32 %v3398_v0  ;;  %v10392_v55 = vpop.eup %10391  ;;  %v4728_v36 = vcombine.low %v4280_v12, %v4281_v14  ;;  %v4058_v3 = vmul.f32 %v10390_v54, %v11832_v27  ;;  %v4275_v34 = vmul.f32 %v11385_v35, %v4056_v19 }
 0x17c   : > { %v3214_v41 = vsub.f32 0.0, %v11947_v30  ;;  %v10394_v63 = vpop.eup %10393  ;;  %v4059_v13 = vmul.f32 %v10392_v55, %v11843_v8  ;;  %v4276_v58 = vmul.f32 %v11391_v2, %v4057_v46  ;;  %v3215_v42 = vsub.f32 0.0, %v11963_v57 }
 0x17d   : > { %v3416_v0 = vmul.f32 1.442695, %v3212_v9  ;;  %v10396_v1 = vpop.eup %10395  ;;  %v11979_v39 = vrot.slane %v4728_v36, %v11085_v7  ;;  %v4277_v12 = vmul.f32 %v11399_v44, %v4058_v3  ;;  %v3637_v17 = vadd.f32 1.0, %v10394_v63  ;;  %v5411_v3 = vld [vmem:[#allocation2 + $0x18] sm:$0xff] }
 0x17e   : > { %v3418_v27 = vmul.f32 1.442695, %v3213_v23  ;;  %v10398_v14 = vpop.eup %10397  ;;  %v4278_v19 = vmul.f32 %v11401_v47, %v4059_v13  ;;  %v4704_v54 = vcombine.low %v4275_v34, %v4276_v58  ;;  %v3638_v60 = vadd.f32 1.0, %v10396_v1  ;;  %v6272_v23 = vld [vmem:[#allocation2 + $0x19] sm:$0xff]  ;;  %9414 = vmatprep.mubr.msk.f32.mxu1 %vm603_vm5, %v5411_v3 }
 0x17f   : > { %10409 = vpow2.f32 %v3416_v0  ;;  %v3639_v8 = vadd.f32 1.0, %v10398_v14  ;;  %v3420_v46 = vmul.f32 1.442695, %v3214_v41  ;;  %v3422_v55 = vmul.f32 1.442695, %v3215_v42  ;;  %9614 = vmatprep.mubr.msk.f32.mxu0 %vm603_vm5, %v6272_v23 }
 0x180   : > { %10411 = vrcp.f32 %v3637_v17  ;;  %v10400_v62 = vpop.eup %10399  ;;  %v4705_v9 = vcombine.low %v4277_v12, %v4278_v19  ;;  %v4712_v53 = vrot.slane %v4704_v54, %v11085_v7  ;;  %v11985_v36 = vrot.slane %v2634_v43, %v11085_v7 }
 0x181   : > { %10413 = vrcp.f32 %v3638_v60  ;;  %v3632_v13 = vadd.f32 1.0, %v10400_v62  ;;  %v11989_v34 = vcombine.high %v11951_v49, %v11951_v49  ;;  %v3208_v41 = vsub.f32 0.0, %v11951_v49  ;;  %v11999_v62 = vpop.f32.mrb[33].mxu1 }
 0x182   : > { %v10402_v63 = vpop.eup %10401  ;;  %10415 = vrcp.f32 %v3639_v8  ;;  %v4719_v60 = vrot.slane %v4705_v9, %v11085_v7  ;;  %v11997_v42 = vcombine.high %v11985_v36, %v11985_v36  ;;  %v3210_v17 = vsub.f32 0.0, %v11985_v36 }
 0x183   : > { %v10404_v58 = vpop.eup %10403  ;;  %v3633_v43 = vadd.f32 1.0, %v10402_v63  ;;  %10417 = vpow2.f32 %v3418_v27  ;;  %v3209_v12 = vsub.f32 0.0, %v11989_v34  ;;  %v3408_v3 = vmul.f32 1.442695, %v3208_v41 }
 0x184   : > { %v10406_v0 = vpop.eup %10405  ;;  %v4068_v1 = vmul.f32 %v10404_v58, %v11859_v59  ;;  %10419 = vrcp.f32 %v3632_v13  ;;  %v4720_v19 = vcombine.low %v4712_v53, %v4719_v60  ;;  %v3211_v27 = vsub.f32 0.0, %v11997_v42 }
 0x185   : > { %v10408_v14 = vpop.eup %10407  ;;  %v3634_v54 = vadd.f32 1.0, %v10406_v0  ;;  %10421 = vrcp.f32 %v3633_v43  ;;  %v3410_v59 = vmul.f32 1.442695, %v3209_v12  ;;  %v3412_v23 = vmul.f32 1.442695, %v3210_v17 }
 0x186   : > { %v12006_v8 = vmul.f32 %v11401_v47, %v4068_v1  ;;  %v3635_v9 = vadd.f32 1.0, %v10408_v14  ;;  %10423 = vpow2.f32 %v3420_v46  ;;  %5241 = vst.msk [vmem:[#allocation2 + $0x80] sm:$0xff] %vm603_vm5, %v4720_v19  ;;  %v3414_v63 = vmul.f32 1.442695, %v3211_v27 }
 0x187   : > { %10425 = vrcp.f32 %v3634_v54  ;;  %v2267_v53 = vadd.f32 %v11571_v11, %v11364_v26  ;;  %v12013_v13 = vadd.f32 %v11576_v45, %v11364_v26  ;;  %v12017_v58 = vadd.f32 %v11592_v51, %v11355_v21 }
 0x188   : > { %10427 = vrcp.f32 %v3635_v9  ;;  %v12021_v41 = vadd.f32 %v11597_v56, %v11355_v21  ;;  %v12025_v60 = vadd.f32 %v11641_v16, %v13995_v31  ;;  %v12029_v11 = vadd.f32 %v11672_v20, %v13987_v5  ;;  %v12052_v9 = vpop.f32.mrb[34].mxu1 }
 0x189   : > { %v10410_v46 = vpop.eup %10409  ;;  %10429 = vpow2.f32 %v3422_v55  ;;  %v2685_v0 = vcombine.high %v2267_v53, %v2267_v53  ;;  %v12032_v51 = vrot.slane %v2267_v53, %v11085_v7  ;;  %v2668_v56 = vcombine.high %v12013_v13, %v12013_v13  ;;  %14004 = vst [vmem:[#allocation12_spill] sm:$0xff] %v12052_v9 }
 0x18a   : > { %v10412_v45 = vpop.eup %10411  ;;  %v3644_v43 = vadd.f32 1.0, %v10410_v46  ;;  %10431 = vpow2.f32 %v3408_v3  ;;  %v12039_v16 = vrot.slane %v12013_v13, %v11085_v7 }
 0x18b   : > { %v10414_v55 = vpop.eup %10413  ;;  %v4069_v1 = vmul.f32 %v10412_v45, %v11874_v52  ;;  %10433 = vpow2.f32 %v3410_v59  ;;  %v12043_v17 = vrot.slane %v2685_v0, %v11085_v7  ;;  %v12047_v14 = vcombine.high %v12032_v51, %v12032_v51 }
 0x18c   : > { %v10416_v20 = vpop.eup %10415  ;;  %v4070_v12 = vmul.f32 %v10414_v55, %v11869_v4  ;;  %10435 = vrcp.f32 %v3644_v43  ;;  %v3220_v27 = vsub.f32 0.0, %v12032_v51 }
 0x18d   : > { %v10418_v52 = vpop.eup %10417  ;;  %v4071_v19 = vmul.f32 %v10416_v20, %v11879_v15  ;;  %v4288_v54 = vmul.f32 %v11389_v38, %v4069_v1  ;;  %10437 = vpow2.f32 %v3412_v23  ;;  %v12057_v53 = vcombine.high %v12043_v17, %v12043_v17 }
 0x18e   : > { %v10420_v3 = vpop.eup %10419  ;;  %v4289_v4 = vmul.f32 %v11383_v33, %v4070_v12  ;;  %v3645_v59 = vadd.f32 1.0, %v10418_v52  ;;  %10439 = vpow2.f32 %v3414_v63  ;;  %v3221_v45 = vsub.f32 0.0, %v12047_v14 }
 0x18f   : > { %v10422_v13 = vpop.eup %10421  ;;  %v4290_v46 = vmul.f32 %v11369_v28, %v4071_v19  ;;  %v4768_v15 = vrot.slane %v4288_v54, %v11085_v7  ;;  %v4064_v23 = vmul.f32 %v10420_v3, %v11907_v6  ;;  %v3222_v55 = vsub.f32 0.0, %v12043_v17 }
 0x190   : > { %v10424_v43 = vpop.eup %10423  ;;  %v4065_v0 = vmul.f32 %v10422_v13, %v11924_v25  ;;  %10441 = vrcp.f32 %v3645_v59  ;;  %v3223_v63 = vsub.f32 0.0, %v12057_v53  ;;  %v3432_v19 = vmul.f32 1.442695, %v3220_v27 }
 0x191   : > { %v10426_v1 = vpop.eup %10425  ;;  %v4769_v20 = vcombine.low %v4289_v4, %v4290_v46  ;;  %5245 = vst.msk [vmem:[#allocation2 + $0xa0] sm:$0x3] %vm606_vm6, %v4768_v15  ;;  %v4283_v12 = vmul.f32 %v11380_v32, %v4064_v23  ;;  %v3646_v52 = vadd.f32 1.0, %v10424_v43  ;;  %v3434_v31 = vmul.f32 1.442695, %v3221_v45 }
 0x192   : > { %v10428_v54 = vpop.eup %10427  ;;  %v4066_v6 = vmul.f32 %v10426_v1, %v11913_v10  ;;  %v4284_v3 = vmul.f32 %v11385_v35, %v4065_v0  ;;  %v3436_v25 = vmul.f32 1.442695, %v3222_v55  ;;  %v3438_v23 = vmul.f32 1.442695, %v3223_v63 }
 0x193   : > { %v10430_v59 = vpop.eup %10429  ;;  %v12071_v13 = vrot.slane %v4769_v20, %v11085_v7  ;;  %v4067_v9 = vmul.f32 %v10428_v54, %v11928_v18  ;;  %v4729_v4 = vcombine.low %v11969_v48, %v4283_v12  ;;  %10443 = vrcp.f32 %v3646_v52 }
 0x194   : > { %v10432_v46 = vpop.eup %10431  ;;  %v4285_v15 = vmul.f32 %v11391_v2, %v4066_v6  ;;  %v3647_v27 = vadd.f32 1.0, %v10430_v59  ;;  %10445 = vpow2.f32 %v3432_v19  ;;  %v12079_v48 = vrot.slane %v2668_v56, %v11085_v7  ;;  %v12089_v6 = vpop.f32.mrb[35].mxu1 }
 0x195   : > { %v10434_v10 = vpop.eup %10433  ;;  %v4286_v43 = vmul.f32 %v11399_v44, %v4067_v9  ;;  %v4743_v45 = vrot.slane %v4729_v4, %v11085_v7  ;;  %v3640_v0 = vadd.f32 1.0, %v10432_v46  ;;  %10447 = vpow2.f32 %v3434_v31 }
 0x196   : > { %v10436_v55 = vpop.eup %10435  ;;  %v4745_v1 = vcombine.low %v4284_v3, %v4285_v15  ;;  %10449 = vrcp.f32 %v3647_v27  ;;  %v3641_v18 = vadd.f32 1.0, %v10434_v10  ;;  %v12087_v31 = vcombine.high %v12039_v16, %v12039_v16 }
 0x197   : > { %v10438_v20 = vpop.eup %10437  ;;  %v4744_v12 = vcombine.low %v11979_v39, %v4743_v45  ;;  %v4746_v52 = vcombine.low %v4286_v43, %v12006_v8  ;;  %v4076_v63 = vmul.f32 %v10436_v55, %v11940_v40  ;;  %10451 = vrcp.f32 %v3640_v0 }
 0x198   : > { %v10440_v9 = vpop.eup %10439  ;;  %v4753_v19 = vrot.slane %v4745_v1, %v11085_v7  ;;  %v3642_v54 = vadd.f32 1.0, %v10438_v20  ;;  %10453 = vrcp.f32 %v3641_v18  ;;  %v12096_v3 = vcombine.high %v12079_v48, %v12079_v48 }
 0x199   : > { %v4760_v56 = vrot.slane %v4746_v52, %v11085_v7  ;;  %5243 = vst.msk [vmem:[#allocation2 + $0x90] sm:$0xff] %vm603_vm5, %v4744_v12  ;;  %v4295_v39 = vmul.f32 %v11399_v44, %v4076_v63  ;;  %v3643_v8 = vadd.f32 1.0, %v10440_v9  ;;  %10455 = vpow2.f32 %v3436_v25 }
 0x19a   : > { %v10442_v40 = vpop.eup %10441  ;;  %10457 = vrcp.f32 %v3642_v54  ;;  %v3216_v59 = vsub.f32 0.0, %v12039_v16  ;;  %v3217_v4 = vsub.f32 0.0, %v12087_v31  ;;  %v3218_v27 = vsub.f32 0.0, %v12079_v48 }
 0x19b   : > { %v4761_v46 = vcombine.low %v4753_v19, %v4760_v56  ;;  %v4077_v15 = vmul.f32 %v10442_v40, %v11956_v61  ;;  %10459 = vrcp.f32 %v3643_v8  ;;  %v3219_v10 = vsub.f32 0.0, %v12096_v3  ;;  %v12122_v8 = vpop.f32.mrb[36].mxu1 }
 0x19c   : > { %10461 = vpow2.f32 %v3438_v23  ;;  %v3424_v25 = vmul.f32 1.442695, %v3216_v59  ;;  %v3426_v43 = vmul.f32 1.442695, %v3217_v4  ;;  %v3428_v55 = vmul.f32 1.442695, %v3218_v27 }
 0x19d   : > { %v10444_v45 = vpop.eup %10443  ;;  %5244 = vst.msk [vmem:[#allocation2 + $0x98] sm:$0xff] %vm603_vm5, %v4761_v46  ;;  %v4296_v0 = vmul.f32 %v11401_v47, %v4077_v15  ;;  %v2719_v1 = vcombine.high %v12017_v58, %v12017_v58  ;;  %v12109_v61 = vrot.slane %v12017_v58, %v11085_v7  ;;  %v3430_v20 = vmul.f32 1.442695, %v3219_v10 }
 0x19e   : > { %v10446_v18 = vpop.eup %10445  ;;  %v4078_v23 = vmul.f32 %v10444_v45, %v11947_v30  ;;  %10463 = vpow2.f32 %v3424_v25  ;;  %v2702_v12 = vcombine.high %v12021_v41, %v12021_v41 }
 0x19f   : > { %v10448_v52 = vpop.eup %10447  ;;  %v4787_v63 = vcombine.low %v4295_v39, %v4296_v0  ;;  %v3652_v9 = vadd.f32 1.0, %v10446_v18  ;;  %10465 = vpow2.f32 %v3426_v43  ;;  %v12115_v19 = vrot.slane %v2719_v1, %v11085_v7 }
 0x1a0   : > { %v10450_v54 = vpop.eup %10449  ;;  %v4297_v56 = vmul.f32 %v11389_v38, %v4078_v23  ;;  %v3653_v58 = vadd.f32 1.0, %v10448_v52  ;;  %10467 = vpow2.f32 %v3428_v55  ;;  %v12120_v30 = vcombine.high %v12109_v61, %v12109_v61 }
 0x1a1   : > { %v10452_v40 = vpop.eup %10451  ;;  %v4079_v59 = vmul.f32 %v10450_v54, %v11963_v57  ;;  %v12126_v39 = vrot.slane %v4787_v63, %v11085_v7  ;;  %10469 = vrcp.f32 %v3652_v9  ;;  %v12130_v4 = vcombine.high %v12115_v19, %v12115_v19 }
 0x1a2   : > { %v10454_v46 = vpop.eup %10453  ;;  %v4809_v15 = vrot.slane %v4297_v56, %v11085_v7  ;;  %v4072_v27 = vmul.f32 %v10452_v40, %v11951_v49  ;;  %10471 = vrcp.f32 %v3653_v58  ;;  %v3228_v10 = vsub.f32 0.0, %v12109_v61 }
 0x1a3   : > { %v10456_v25 = vpop.eup %10455  ;;  %v4073_v43 = vmul.f32 %v10454_v46, %v11989_v34  ;;  %10473 = vpow2.f32 %v3430_v20  ;;  %v12137_v57 = vmul.f32 %v11383_v33, %v4079_v59  ;;  %v3229_v45 = vsub.f32 0.0, %v12120_v30 }
 0x1a4   : > { %v10458_v0 = vpop.eup %10457  ;;  %5248 = vst.msk [vmem:[#allocation2 + $0xb8] sm:$0x3] %vm606_vm6, %v4809_v15  ;;  %v4291_v55 = vmul.f32 %v11372_v29, %v4072_v27  ;;  %v3654_v1 = vadd.f32 1.0, %v10456_v25  ;;  %v3230_v49 = vsub.f32 0.0, %v12115_v19  ;;  %v3231_v18 = vsub.f32 0.0, %v12130_v4 }
 0x1a5   : > { %v10460_v23 = vpop.eup %10459  ;;  %v4074_v52 = vmul.f32 %v10458_v0, %v11985_v36  ;;  %v4292_v34 = vmul.f32 %v11380_v32, %v4073_v43  ;;  %v3448_v20 = vmul.f32 1.442695, %v3228_v10  ;;  %v3450_v63 = vmul.f32 1.442695, %v3229_v45 }
 0x1a6   : > { %v10462_v9 = vpop.eup %10461  ;;  %v4075_v54 = vmul.f32 %v10460_v23, %v11997_v42  ;;  %10475 = vrcp.f32 %v3654_v1  ;;  %v3452_v56 = vmul.f32 1.442695, %v3230_v49  ;;  %v3454_v58 = vmul.f32 1.442695, %v3231_v18 }
 0x1a7   : > { %v4293_v40 = vmul.f32 %v11385_v35, %v4074_v52  ;;  %v4770_v59 = vcombine.low %v4291_v55, %v4292_v34  ;;  %v3655_v46 = vadd.f32 1.0, %v10462_v9  ;;  %10477 = vpow2.f32 %v3448_v20 }
 0x1a8   : > { %v10464_v15 = vpop.eup %10463  ;;  %v4294_v27 = vmul.f32 %v11391_v2, %v4075_v54  ;;  %10479 = vpow2.f32 %v3450_v63  ;;  %v12151_v36 = vrot.slane %v12021_v41, %v11085_v7  ;;  %v12154_v10 = vrot.slane %v2702_v12, %v11085_v7 }
 0x1a9   : > { %v10466_v42 = vpop.eup %10465  ;;  %v4784_v25 = vrot.slane %v4770_v59, %v11085_v7  ;;  %10481 = vrcp.f32 %v3655_v46  ;;  %v3648_v43 = vadd.f32 1.0, %v10464_v15  ;;  %v2753_v45 = vcombine.high %v12025_v60, %v12025_v60 }
 0x1aa   : > { %v10468_v0 = vpop.eup %10467  ;;  %v4786_v55 = vcombine.low %v4293_v40, %v4294_v27  ;;  %v3649_v1 = vadd.f32 1.0, %v10466_v42  ;;  %10483 = vpow2.f32 %v3452_v56  ;;  %v12161_v49 = vcombine.high %v12151_v36, %v12151_v36  ;;  %v12175_v40 = vpop.f32.mrb[37].mxu1 }
 0x1ab   : > { %v10470_v41 = vpop.eup %10469  ;;  %v4785_v12 = vcombine.low %v12071_v13, %v4784_v25  ;;  %v3650_v18 = vadd.f32 1.0, %v10468_v0  ;;  %10485 = vrcp.f32 %v3648_v43  ;;  %v12166_v23 = vcombine.high %v12154_v10, %v12154_v10 }
 0x1ac   : > { %v10472_v52 = vpop.eup %10471  ;;  %v4794_v34 = vrot.slane %v4786_v55, %v11085_v7  ;;  %v4084_v20 = vmul.f32 %v10470_v41, %v12032_v51  ;;  %10487 = vrcp.f32 %v3649_v1  ;;  %v3224_v63 = vsub.f32 0.0, %v12151_v36 }
 0x1ad   : > { %v10474_v9 = vpop.eup %10473  ;;  %5246 = vst.msk [vmem:[#allocation2 + $0xa8] sm:$0xff] %vm603_vm5, %v4785_v12  ;;  %v4085_v54 = vmul.f32 %v10472_v52, %v12047_v14  ;;  %10489 = vrcp.f32 %v3650_v18  ;;  %v3225_v13 = vsub.f32 0.0, %v12161_v49  ;;  %v3226_v56 = vsub.f32 0.0, %v12154_v10 }
 0x1ae   : > { %v4802_v59 = vcombine.low %v4794_v34, %v12126_v39  ;;  %v12179_v46 = vmul.f32 %v11391_v2, %v4084_v20  ;;  %v3651_v51 = vadd.f32 1.0, %v10474_v9  ;;  %10491 = vpow2.f32 %v3454_v58 }
 0x1af   : > { %v4304_v15 = vmul.f32 %v11399_v44, %v4085_v54  ;;  %v3227_v27 = vsub.f32 0.0, %v12166_v23  ;;  %v3440_v42 = vmul.f32 1.442695, %v3224_v63  ;;  %v3442_v14 = vmul.f32 1.442695, %v3225_v13  ;;  %v12204_v63 = vpop.f32.mrb[38].mxu1 }
 0x1b0   : > { %v10476_v25 = vpop.eup %10475  ;;  %5247 = vst.msk [vmem:[#allocation2 + $0xb0] sm:$0xff] %vm603_vm5, %v4802_v59  ;;  %10493 = vrcp.f32 %v3651_v51  ;;  %v3444_v43 = vmul.f32 1.442695, %v3226_v56  ;;  %v12186_v0 = vrot.slane %v12025_v60, %v11085_v7  ;;  %v12189_v39 = vrot.slane %v2753_v45, %v11085_v7 }
 0x1b1   : > { %v10478_v55 = vpop.eup %10477  ;;  %v4086_v58 = vmul.f32 %v10476_v25, %v12043_v17  ;;  %10495 = vpow2.f32 %v3440_v42  ;;  %v3446_v1 = vmul.f32 1.442695, %v3227_v27  ;;  %v2736_v41 = vcombine.high %v12029_v11, %v12029_v11 }
 0x1b2   : > { %v10480_v12 = vpop.eup %10479  ;;  %v3660_v18 = vadd.f32 1.0, %v10478_v55  ;;  %10497 = vpow2.f32 %v3442_v14  ;;  %v12196_v52 = vcombine.high %v12186_v0, %v12186_v0  ;;  %v12200_v60 = vcombine.high %v12189_v39, %v12189_v39 }
 0x1b3   : > { %v10482_v45 = vpop.eup %10481  ;;  %v4305_v34 = vmul.f32 %v11401_v47, %v4086_v58  ;;  %v3661_v17 = vadd.f32 1.0, %v10480_v12  ;;  %10499 = vpow2.f32 %v3444_v43  ;;  %v3236_v20 = vsub.f32 0.0, %v12186_v0 }
 0x1b4   : > { %v10484_v9 = vpop.eup %10483  ;;  %v4087_v54 = vmul.f32 %v10482_v45, %v12057_v53  ;;  %10501 = vrcp.f32 %v3660_v18  ;;  %v3237_v13 = vsub.f32 0.0, %v12196_v52  ;;  %v3238_v56 = vsub.f32 0.0, %v12189_v39 }
 0x1b5   : > { %v10486_v59 = vpop.eup %10485  ;;  %v4828_v51 = vcombine.low %v4304_v15, %v4305_v34  ;;  %v3662_v27 = vadd.f32 1.0, %v10484_v9  ;;  %10503 = vrcp.f32 %v3661_v17  ;;  %v3239_v42 = vsub.f32 0.0, %v12200_v60  ;;  %v12219_v9 = vpop.f32.mrb[39].mxu1 }
 0x1b6   : > { %v10488_v14 = vpop.eup %10487  ;;  %v4306_v25 = vmul.f32 %v11389_v38, %v4087_v54  ;;  %v4080_v43 = vmul.f32 %v10486_v59, %v12039_v16  ;;  %10505 = vpow2.f32 %v3446_v1  ;;  %v3464_v55 = vmul.f32 1.442695, %v3236_v20 }
 0x1b7   : > { %v10490_v58 = vpop.eup %10489  ;;  %v12213_v53 = vrot.slane %v4828_v51, %v11085_v7  ;;  %v4081_v12 = vmul.f32 %v10488_v14, %v12087_v31  ;;  %10507 = vrcp.f32 %v3662_v27  ;;  %v3466_v18 = vmul.f32 1.442695, %v3237_v13 }
 0x1b8   : > { %v10492_v15 = vpop.eup %10491  ;;  %v4850_v45 = vrot.slane %v4306_v25, %v11085_v7  ;;  %v4082_v34 = vmul.f32 %v10490_v58, %v12079_v48  ;;  %v4299_v17 = vmul.f32 %v11369_v28, %v4080_v43  ;;  %10509 = vpow2.f32 %v3464_v55 }
 0x1b9   : > { %v4300_v16 = vmul.f32 %v11372_v29, %v4081_v12  ;;  %v3663_v1 = vadd.f32 1.0, %v10492_v15  ;;  %10511 = vpow2.f32 %v3466_v18  ;;  %v3468_v20 = vmul.f32 1.442695, %v3238_v56 }
 0x1ba   : > { %v10494_v54 = vpop.eup %10493  ;;  %5251 = vst.msk [vmem:[#allocation2 + $0xd0] sm:$0x3] %vm606_vm6, %v4850_v45  ;;  %v4301_v31 = vmul.f32 %v11380_v32, %v4082_v34  ;;  %v4810_v13 = vcombine.low %v12137_v57, %v4299_v17  ;;  %v3470_v59 = vmul.f32 1.442695, %v3239_v42  ;;  %v12227_v48 = vrot.slane %v12029_v11, %v11085_v7 }
 0x1bb   : > { %v10496_v51 = vpop.eup %10495  ;;  %v4083_v27 = vmul.f32 %v10494_v54, %v12096_v3  ;;  %10513 = vrcp.f32 %v3663_v1  ;;  %v12231_v14 = vrot.slane %v2736_v41, %v11085_v7  ;;  %v2297_v56 = vadd.f32 %v11725_v24, %v14001_v37 }
 0x1bc   : > { %v10498_v25 = vpop.eup %10497  ;;  %v4811_v43 = vcombine.low %v4300_v16, %v4301_v31  ;;  %v4818_v55 = vrot.slane %v4810_v13, %v11085_v7  ;;  %v3656_v57 = vadd.f32 1.0, %v10496_v51  ;;  %10515 = vpow2.f32 %v3468_v20 }
 0x1bd   : > { %v10500_v42 = vpop.eup %10499  ;;  %v4302_v11 = vmul.f32 %v11385_v35, %v4083_v27  ;;  %v3657_v58 = vadd.f32 1.0, %v10498_v25  ;;  %10517 = vpow2.f32 %v3470_v59  ;;  %v12239_v3 = vcombine.high %v12227_v48, %v12227_v48 }
 0x1be   : > { %v10502_v41 = vpop.eup %10501  ;;  %v4825_v12 = vrot.slane %v4811_v43, %v11085_v7  ;;  %v3658_v18 = vadd.f32 1.0, %v10500_v42  ;;  %10519 = vrcp.f32 %v3656_v57  ;;  %v12244_v24 = vcombine.high %v12231_v14, %v12231_v14 }
 0x1bf   : > { %v10504_v15 = vpop.eup %10503  ;;  %v4827_v45 = vcombine.low %v4302_v11, %v12179_v46  ;;  %v4092_v34 = vmul.f32 %v10502_v41, %v12109_v61  ;;  %10521 = vrcp.f32 %v3657_v58  ;;  %v3232_v17 = vsub.f32 0.0, %v12227_v48 }
 0x1c0   : > { %v10506_v16 = vpop.eup %10505  ;;  %v4826_v1 = vcombine.low %v4818_v55, %v4825_v12  ;;  %v4093_v20 = vmul.f32 %v10504_v15, %v12120_v30  ;;  %10523 = vrcp.f32 %v3658_v18  ;;  %v3233_v54 = vsub.f32 0.0, %v12239_v3 }
 0x1c1   : > { %v10508_v31 = vpop.eup %10507  ;;  %v4835_v13 = vrot.slane %v4827_v45, %v11085_v7  ;;  %v4311_v59 = vmul.f32 %v11385_v35, %v4092_v34  ;;  %v3659_v51 = vadd.f32 1.0, %v10506_v16  ;;  %v3234_v46 = vsub.f32 0.0, %v12231_v14 }
 0x1c2   : > { %v10510_v27 = vpop.eup %10509  ;;  %5249 = vst.msk [vmem:[#allocation2 + $0xc0] sm:$0xff] %vm603_vm5, %v4826_v1  ;;  %v4094_v61 = vmul.f32 %v10508_v31, %v12115_v19  ;;  %v4312_v25 = vmul.f32 %v11391_v2, %v4093_v20  ;;  %v3235_v30 = vsub.f32 0.0, %v12244_v24  ;;  %v3456_v43 = vmul.f32 1.442695, %v3232_v17 }
 0x1c3   : > { %v10512_v55 = vpop.eup %10511  ;;  %v4843_v57 = vcombine.low %v4835_v13, %v12213_v53  ;;  %10525 = vrcp.f32 %v3659_v51  ;;  %v3668_v42 = vadd.f32 1.0, %v10510_v27  ;;  %v3458_v11 = vmul.f32 1.442695, %v3233_v54 }
 0x1c4   : > { %v4313_v58 = vmul.f32 %v11399_v44, %v4094_v61  ;;  %v4868_v41 = vcombine.low %v4311_v59, %v4312_v25  ;;  %v3669_v12 = vadd.f32 1.0, %v10512_v55  ;;  %10527 = vpow2.f32 %v3456_v43 }
 0x1c5   : > { %v10514_v18 = vpop.eup %10513  ;;  %5250 = vst.msk [vmem:[#allocation2 + $0xc8] sm:$0xff] %vm603_vm5, %v4843_v57  ;;  %10529 = vrcp.f32 %v3668_v42  ;;  %v3460_v19 = vmul.f32 1.442695, %v3234_v46  ;;  %v3462_v15 = vmul.f32 1.442695, %v3235_v30  ;;  %v2787_v45 = vcombine.high %v2297_v56, %v2297_v56 }
 0x1c6   : > { %v10516_v34 = vpop.eup %10515  ;;  %v4095_v17 = vmul.f32 %v10514_v18, %v12130_v4  ;;  %v4876_v53 = vrot.slane %v4868_v41, %v11085_v7  ;;  %10531 = vrcp.f32 %v3669_v12  ;;  %v12264_v16 = vrot.slane %v2297_v56, %v11085_v7 }
 0x1c7   : > { %v10518_v1 = vpop.eup %10517  ;;  %v3670_v20 = vadd.f32 1.0, %v10516_v34  ;;  %10533 = vpow2.f32 %v3458_v11  ;;  %v12267_v54 = vrot.slane %v2787_v45, %v11085_v7  ;;  %v2292_v31 = vadd.f32 %v11736_v50, %v13993_v22 }
 0x1c8   : > { %v10520_v13 = vpop.eup %10519  ;;  %v4314_v59 = vmul.f32 %v11401_v47, %v4095_v17  ;;  %v3671_v51 = vadd.f32 1.0, %v10518_v1  ;;  %10535 = vpow2.f32 %v3460_v19  ;;  %v12274_v4 = vcombine.high %v12264_v16, %v12264_v16 }
 0x1c9   : > { %v10522_v56 = vpop.eup %10521  ;;  %v4088_v46 = vmul.f32 %v10520_v13, %v12151_v36  ;;  %10537 = vrcp.f32 %v3670_v20  ;;  %v12279_v27 = vcombine.high %v12267_v54, %v12267_v54  ;;  %v3244_v61 = vsub.f32 0.0, %v12264_v16 }
 0x1ca   : > { %v10524_v50 = vpop.eup %10523  ;;  %v4869_v25 = vcombine.low %v4313_v58, %v4314_v59  ;;  %v4089_v30 = vmul.f32 %v10522_v56, %v12161_v49  ;;  %10539 = vrcp.f32 %v3671_v51  ;;  %v3245_v43 = vsub.f32 0.0, %v12274_v4 }
 0x1cb   : > { %v4090_v55 = vmul.f32 %v10524_v50, %v12154_v10  ;;  %v4307_v57 = vmul.f32 %v11383_v33, %v4088_v46  ;;  %10541 = vpow2.f32 %v3462_v15  ;;  %v3246_v36 = vsub.f32 0.0, %v12267_v54 }
 0x1cc   : > { %v4883_v42 = vrot.slane %v4869_v25, %v11085_v7  ;;  %v4308_v11 = vmul.f32 %v11369_v28, %v4089_v30  ;;  %v3247_v41 = vsub.f32 0.0, %v12279_v27  ;;  %v3480_v12 = vmul.f32 1.442695, %v3244_v61 }
 0x1cd   : > { %v10526_v58 = vpop.eup %10525  ;;  %v4309_v49 = vmul.f32 %v11372_v29, %v4090_v55  ;;  %v3482_v18 = vmul.f32 1.442695, %v3245_v43  ;;  %v3484_v19 = vmul.f32 1.442695, %v3246_v36  ;;  %v2770_v45 = vcombine.high %v2292_v31, %v2292_v31 }
 0x1ce   : > { %v10528_v34 = vpop.eup %10527  ;;  %v4884_v10 = vcombine.low %v4876_v53, %v4883_v42  ;;  %v4091_v17 = vmul.f32 %v10526_v58, %v12166_v23  ;;  %v4851_v15 = vcombine.low %v4307_v57, %v4308_v11  ;;  %10543 = vpow2.f32 %v3480_v12 }
 0x1cf   : > { %v10530_v1 = vpop.eup %10529  ;;  %v3664_v20 = vadd.f32 1.0, %v10528_v34  ;;  %10545 = vpow2.f32 %v3482_v18  ;;  %v3486_v13 = vmul.f32 1.442695, %v3247_v41  ;;  %v12293_v59 = vrot.slane %v2292_v31, %v11085_v7  ;;  %v5404_v34 = vld [vmem:[%s13955_s5 + $0x8] sm:$0x3] }
 0x1d0   : > { %v10532_v51 = vpop.eup %10531  ;;  %5253 = vst.msk [vmem:[#allocation2 + $0xe0] sm:$0xff] %vm603_vm5, %v4884_v10  ;;  %v4310_v56 = vmul.f32 %v11380_v32, %v4091_v17  ;;  %v4859_v46 = vrot.slane %v4851_v15, %v11085_v7  ;;  %v4100_v53 = vmul.f32 %v10530_v1, %v12186_v0  ;;  %10547 = vpow2.f32 %v3484_v19  ;;  %v5403_v1 = vld [vmem:[%s13955_s5 + $0x6] sm:$0x3]  ;;  %9612 = vmatprep.subr.msk.mxu0 %vm5541_vm7, %v5404_v34 }
 0x1d1   : > { %v10534_v23 = vpop.eup %10533  ;;  %v4101_v61 = vmul.f32 %v10532_v51, %v12196_v52  ;;  %10549 = vrcp.f32 %v3664_v20  ;;  %v12301_v50 = vrot.slane %v2770_v45, %v11085_v7  ;;  %v12305_v31 = vcombine.high %v12293_v59, %v12293_v59  ;;  %9412 = vmatprep.subr.msk.mxu1 %vm5541_vm7, %v5403_v1  ;;  %9613 = vmatpush3.msk.msra.mxu0 %vm5541_vm7, %v5404_v34 }
 0x1d2   : > { %v10536_v25 = vpop.eup %10535  ;;  %v4852_v30 = vcombine.low %v4309_v49, %v4310_v56  ;;  %v12308_v43 = vmul.f32 %v11380_v32, %v4100_v53  ;;  %v3665_v55 = vadd.f32 1.0, %v10534_v23  ;;  %10551 = vpow2.f32 %v3486_v13  ;;  %9413 = vmatpush3.msk.msra.mxu1 %vm5541_vm7, %v5403_v1 }
 0x1d3   : > { %v10538_v0 = vpop.eup %10537  ;;  %v4320_v57 = vmul.f32 %v11385_v35, %v4101_v61  ;;  %v3666_v36 = vadd.f32 1.0, %v10536_v25  ;;  %v12313_v52 = vcombine.high %v12301_v50, %v12301_v50  ;;  %v3240_v42 = vsub.f32 0.0, %v12293_v59  ;;  %v14006_v61 = vld [vmem:[#allocation9_spill] sm:$0xff]  ;;  %v14007_v25 = vld [vmem:[#allocation10_spill] sm:$0xff] }
 0x1d4   : > { %v10540_v11 = vpop.eup %10539  ;;  %v4866_v41 = vrot.slane %v4852_v30, %v11085_v7  ;;  %v4102_v12 = vmul.f32 %v10538_v0, %v12189_v39  ;;  %10553 = vrcp.f32 %v3665_v55  ;;  %v3241_v58 = vsub.f32 0.0, %v12305_v31 }
 0x1d5   : > { %v10542_v49 = vpop.eup %10541  ;;  %v4103_v18 = vmul.f32 %v10540_v11, %v12200_v60  ;;  %10555 = vrcp.f32 %v3666_v36  ;;  %v3242_v19 = vsub.f32 0.0, %v12301_v50  ;;  %v3243_v45 = vsub.f32 0.0, %v12313_v52  ;;  %v14008_v36 = vld [vmem:[#allocation11_spill] sm:$0xff] }
 0x1d6   : > { %v4867_v10 = vcombine.low %v4859_v46, %v4866_v41  ;;  %v4321_v17 = vmul.f32 %v11391_v2, %v4102_v12  ;;  %v3667_v15 = vadd.f32 1.0, %v10542_v49  ;;  %v3472_v39 = vmul.f32 1.442695, %v3240_v42  ;;  %v14005_v46 = vld [vmem:[#allocation5_spill] sm:$0xff]  ;;  %v6274_v49 = vld [vmem:[#allocation2 + $0x31] sm:$0xff] }
 0x1d7   : > { %v3474_v20 = vmul.f32 1.442695, %v3241_v58  ;;  %v3476_v60 = vmul.f32 1.442695, %v3242_v19  ;;  %v12329_v13 = vmul.f32 1.442695, %v3243_v45  ;;  %v12332_v51 = vmul.f32 %v11399_v44, %v4103_v18 }
 0x1d8   : > { %v10544_v56 = vpop.eup %10543  ;;  %5252 = vst.msk [vmem:[#allocation2 + $0xd8] sm:$0xff] %vm603_vm5, %v4867_v10  ;;  %v4909_v53 = vcombine.low %v4320_v57, %v4321_v17  ;;  %10557 = vrcp.f32 %v3667_v15  ;;  %v2307_v23 = vadd.f32 %v14005_v46, %v11364_v26  ;;  %v12339_v30 = vadd.f32 %v14007_v25, %v14006_v61  ;;  %v5413_v58 = vld [vmem:[#allocation2 + $0x30] sm:$0xff]  ;;  %v5412_v17 = vld [vmem:[#allocation2 + $0x20] sm:$0xff] }
 0x1d9   : > { %v10546_v55 = vpop.eup %10545  ;;  %v3676_v0 = vadd.f32 1.0, %v10544_v56  ;;  %10559 = vpow2.f32 %v3472_v39  ;;  %v12343_v42 = vadd.f32 %v14008_v36, %v11355_v21  ;;  %v6273_v15 = vld [vmem:[#allocation2 + $0x21] sm:$0xff]  ;;  %v5407_v39 = vld [vmem:[%s13955_s5 + $0xe] sm:$0x3]  ;;  %9415 = vmatmul.mubr.msk.f32.vlgmr.msra.gmra.mrb[40].mxu1 %vm603_vm5, %v5412_v17  ;;  %v6275_v25 = vld [vmem:[#allocation2 + $0x39] sm:$0xff] }
 0x1da   : > { %v10548_v11 = vpop.eup %10547  ;;  %v12346_v41 = vrot.slane %v4909_v53, %v11085_v7  ;;  %v3677_v57 = vadd.f32 1.0, %v10546_v55  ;;  %10561 = vpow2.f32 %v3474_v20  ;;  %v2821_v12 = vcombine.high %v2307_v23, %v2307_v23  ;;  %9615 = vmatmul.mubr.msk.f32.vlgmr.msra.gmra.mrb[8].mxu0 %vm603_vm5, %v6273_v15  ;;  %9417 = vmatprep.mubr.msk.f32.mxu1 %vm603_vm5, %v5413_v58 }
 0x1db   : > { %v10550_v18 = vpop.eup %10549  ;;  %v3678_v19 = vadd.f32 1.0, %v10548_v11  ;;  %10563 = vrcp.f32 %v3676_v0  ;;  %v12351_v45 = vrot.slane %v2307_v23, %v11085_v7  ;;  %v2804_v10 = vcombine.high %v12339_v30, %v12339_v30  ;;  %9617 = vmatprep.mubr.msk.f32.mxu0 %vm603_vm5, %v6274_v49  ;;  %v5414_v23 = vld [vmem:[#allocation2 + $0x38] sm:$0xff]  ;;  %v5415_v11 = vld [vmem:[#allocation2 + $0x48] sm:$0xff]  ;;  %9662 = vmatprep.subr.msk.mxu0 %vm5541_vm7, %v5407_v39 }
 0x1dc   : > { %v10552_v20 = vpop.eup %10551  ;;  %v4096_v56 = vmul.f32 %v10550_v18, %v12227_v48  ;;  %10565 = vrcp.f32 %v3677_v57  ;;  %v12362_v53 = vrot.slane %v2821_v12, %v11085_v7  ;;  %v12366_v46 = vrot.slane %v12339_v30, %v11085_v7  ;;  %v6276_v57 = vld [vmem:[#allocation2 + $0x49] sm:$0xff]  ;;  %9663 = vmatpush3.msk.msra.mxu0 %vm5541_vm7, %v5407_v39 }
 0x1dd   : > { %v3679_v34 = vadd.f32 1.0, %v10552_v20  ;;  %10567 = vrcp.f32 %v3678_v19  ;;  %v12372_v1 = vcombine.high %v12351_v45, %v12351_v45  ;;  %v3252_v48 = vsub.f32 0.0, %v12351_v45  ;;  %9418 = vmatmul.mubr.msk.f32.gmra.mrb[42].mxu1 %vm603_vm5, %v5414_v23  ;;  %v5416_v39 = vld [vmem:[#allocation2 + $0x50] sm:$0xff] }
 0x1de   : > { %v10554_v30 = vpop.eup %10553  ;;  %v4315_v55 = vmul.f32 %v11389_v38, %v4096_v56  ;;  %10569 = vpow2.f32 %v3476_v60  ;;  %v12380_v0 = vcombine.high %v12362_v53, %v12362_v53  ;;  %v3254_v36 = vsub.f32 0.0, %v12362_v53  ;;  %9618 = vmatmul.mubr.msk.f32.gmra.mrb[10].mxu0 %vm603_vm5, %v6275_v25  ;;  %9420 = vmatprep.mubr.msk.f32.mxu1 %vm603_vm5, %v5415_v11  ;;  %v5417_v25 = vld [vmem:[#allocation2 + $0x60] sm:$0xff] }
 0x1df   : > { %v10556_v12 = vpop.eup %10555  ;;  %v4097_v58 = vmul.f32 %v10554_v30, %v12239_v3  ;;  %10571 = vrcp.f32 %v3679_v34  ;;  %v3253_v49 = vsub.f32 0.0, %v12372_v1  ;;  %v3496_v18 = vmul.f32 1.442695, %v3252_v48  ;;  %9620 = vmatprep.mubr.msk.f32.mxu0 %vm603_vm5, %v6276_v57  ;;  %v6278_v30 = vld [vmem:[#allocation2 + $0x61] sm:$0xff] }
 0x1e0   : > { %v4098_v60 = vmul.f32 %v10556_v12, %v12231_v14  ;;  %v4891_v19 = vrot.slane %v4315_v55, %v11085_v7  ;;  %10573 = vpow2.f32 %v12329_v13  ;;  %v3255_v17 = vsub.f32 0.0, %v12380_v0  ;;  %v6277_v14 = vld [vmem:[#allocation2 + $0x51] sm:$0xff] }
 0x1e1   : > { %v4316_v3 = vmul.f32 %v11383_v33, %v4097_v58  ;;  %10575 = vpow2.f32 %v3496_v18  ;;  %v3498_v15 = vmul.f32 1.442695, %v3253_v49  ;;  %v3500_v20 = vmul.f32 1.442695, %v3254_v36  ;;  %9421 = vmatmul.mubr.msk.f32.gmra.mrb[44].mxu1 %vm603_vm5, %v5416_v39 }
 0x1e2   : > { %v10558_v56 = vpop.eup %10557  ;;  %v4317_v13 = vmul.f32 %v11369_v28, %v4098_v60  ;;  %5254 = vst.msk [vmem:[#allocation2 + $0xe8] sm:$0x3] %vm606_vm6, %v4891_v19  ;;  %v3502_v34 = vmul.f32 1.442695, %v3255_v17  ;;  %v12399_v48 = vrot.slane %v2804_v10, %v11085_v7  ;;  %v12403_v23 = vcombine.high %v12366_v46, %v12366_v46  ;;  %9621 = vmatmul.mubr.msk.f32.gmra.mrb[12].mxu0 %vm603_vm5, %v6277_v14  ;;  %v5418_v17 = vld [vmem:[#allocation2 + $0x68] sm:$0xff] }
 0x1e3   : > { %v10560_v55 = vpop.eup %10559  ;;  %v4099_v36 = vmul.f32 %v10558_v56, %v12244_v24  ;;  %10577 = vpow2.f32 %v3498_v15  ;;  %v3248_v11 = vsub.f32 0.0, %v12366_v46  ;;  %9423 = vmatprep.mubr.msk.f32.mxu1 %vm603_vm5, %v5417_v25  ;;  %9623 = vmatprep.mubr.msk.f32.mxu0 %vm603_vm5, %v6278_v30  ;;  %v5419_v56 = vld [vmem:[#allocation2 + $0x78] sm:$0xff] }
 0x1e4   : > { %v10562_v12 = vpop.eup %10561  ;;  %v4892_v58 = vcombine.low %v4316_v3, %v4317_v13  ;;  %v3672_v49 = vadd.f32 1.0, %v10560_v55  ;;  %10579 = vpow2.f32 %v3500_v20  ;;  %v12411_v10 = vcombine.high %v12399_v48, %v12399_v48  ;;  %v6279_v3 = vld [vmem:[#allocation2 + $0x69] sm:$0xff]  ;;  %v6280_v13 = vld [vmem:[#allocation2 + $0x79] sm:$0xff] }
 0x1e5   : > { %v10564_v18 = vpop.eup %10563  ;;  %v4318_v24 = vmul.f32 %v11372_v29, %v4099_v36  ;;  %v3673_v60 = vadd.f32 1.0, %v10562_v12  ;;  %10581 = vpow2.f32 %v3502_v34  ;;  %v3249_v19 = vsub.f32 0.0, %v12403_v23  ;;  %9424 = vmatmul.mubr.msk.f32.gmra.mrb[46].mxu1 %vm603_vm5, %v5418_v17 }
 0x1e6   : > { %v10566_v15 = vpop.eup %10565  ;;  %v4900_v20 = vrot.slane %v4892_v58, %v11085_v7  ;;  %v4108_v39 = vmul.f32 %v10564_v18, %v12264_v16  ;;  %10583 = vrcp.f32 %v3672_v49  ;;  %v3250_v14 = vsub.f32 0.0, %v12399_v48  ;;  %9624 = vmatmul.mubr.msk.f32.gmra.mrb[14].mxu0 %vm603_vm5, %v6279_v3  ;;  %9426 = vmatprep.mubr.msk.f32.mxu1 %vm603_vm5, %v5419_v56  ;;  %v5421_v3 = vld [vmem:[#allocation2 + $0x90] sm:$0xff] }
 0x1e7   : > { %v10568_v55 = vpop.eup %10567  ;;  %v4893_v34 = vcombine.low %v4318_v24, %v12308_v43  ;;  %v4109_v36 = vmul.f32 %v10566_v15, %v12274_v4  ;;  %10585 = vrcp.f32 %v3673_v60  ;;  %v3251_v25 = vsub.f32 0.0, %v12411_v10  ;;  %v5420_v60 = vld [vmem:[#allocation2 + $0x80] sm:$0xff]  ;;  %9626 = vmatprep.mubr.msk.f32.mxu0 %vm603_vm5, %v6280_v13 }
 0x1e8   : > { %v10570_v30 = vpop.eup %10569  ;;  %v4110_v12 = vmul.f32 %v10568_v55, %v12267_v54  ;;  %v4327_v58 = vmul.f32 %v11372_v29, %v4108_v39  ;;  %v3488_v57 = vmul.f32 1.442695, %v3248_v11  ;;  %v3490_v16 = vmul.f32 1.442695, %v3249_v19  ;;  %v6281_v54 = vld [vmem:[#allocation2 + $0x81] sm:$0xff]  ;;  %v6282_v39 = vld [vmem:[#allocation2 + $0x91] sm:$0xff] }
 0x1e9   : > { %v10572_v49 = vpop.eup %10571  ;;  %v4907_v18 = vrot.slane %v4893_v34, %v11085_v7  ;;  %v4328_v43 = vmul.f32 %v11380_v32, %v4109_v36  ;;  %v3674_v4 = vadd.f32 1.0, %v10570_v30  ;;  %v3492_v24 = vmul.f32 1.442695, %v3250_v14  ;;  %9427 = vmatmul.mubr.msk.f32.gmra.mrb[48].mxu1 %vm603_vm5, %v5420_v60 }
 0x1ea   : > { %v10574_v15 = vpop.eup %10573  ;;  %v4111_v11 = vmul.f32 %v10572_v49, %v12279_v27  ;;  %v4329_v19 = vmul.f32 %v11385_v35, %v4110_v12  ;;  %10587 = vpow2.f32 %v3488_v57  ;;  %v12435_v17 = vmul.f32 1.442695, %v3251_v25  ;;  %9627 = vmatmul.mubr.msk.f32.gmra.mrb[16].mxu0 %vm603_vm5, %v6281_v54  ;;  %v12444_v27 = vpop.f32.mrb[2].mxu0  ;;  %9429 = vmatprep.mubr.msk.f32.mxu1 %vm603_vm5, %v5421_v3  ;;  %v5422_v49 = vld [vmem:[#allocation2 + $0x98] sm:$0xff] }
 0x1eb   : > { %v10576_v55 = vpop.eup %10575  ;;  %v4908_v34 = vcombine.low %v4900_v20, %v4907_v18  ;;  %v4934_v36 = vcombine.low %v4327_v58, %v4328_v43  ;;  %v3675_v14 = vadd.f32 1.0, %v10574_v15  ;;  %10589 = vrcp.f32 %v3674_v4  ;;  %14009 = vst [vmem:[#allocation13_spill] sm:$0xff] %v12444_v27  ;;  %v14011_v58 = vld [vmem:[#allocation16_spill] sm:$0xff]  ;;  %9629 = vmatprep.mubr.msk.f32.mxu0 %vm603_vm5, %v6282_v39  ;;  %v9405_v43 = vpop.f32.mrb[3].mxu0  ;;  %v5423_v15 = vld [vmem:[#allocation2 + $0xa8] sm:$0xff] }
 0x1ec   : > { %v4330_v56 = vmul.f32 %v11391_v2, %v4111_v11  ;;  %v3684_v30 = vadd.f32 1.0, %v10576_v55  ;;  %10591 = vpow2.f32 %v3490_v16  ;;  %v12440_v13 = vrot.slane %v12343_v42, %v11085_v7  ;;  %v6283_v18 = vld [vmem:[#allocation2 + $0x99] sm:$0xff]  ;;  %v6284_v11 = vld [vmem:[#allocation2 + $0xa9] sm:$0xff]  ;;  %v12466_v55 = vpop.f32.mrb[4].mxu0 }
 0x1ed   : > { %v10578_v57 = vpop.eup %10577  ;;  %5255 = vst.msk [vmem:[#allocation2 + $0xf0] sm:$0xff] %vm603_vm5, %v4908_v34  ;;  %v12448_v20 = vrot.slane %v4934_v36, %v11085_v7  ;;  %10593 = vrcp.f32 %v3675_v14  ;;  %v14010_v25 = vcombine.high %v12343_v42, %v12343_v42  ;;  %v12458_v16 = vadd.f32 %v14011_v58, %v11364_v26  ;;  %14012 = vst [vmem:[#allocation14_spill] sm:$0xff] %v12466_v55  ;;  %v6286_v55 = vld [vmem:[#allocation2 + $0xc1] sm:$0xff] }
 0x1ee   : > { %v10580_v4 = vpop.eup %10579  ;;  %v4950_v60 = vcombine.low %v4329_v19, %v4330_v56  ;;  %v3685_v54 = vadd.f32 1.0, %v10578_v57  ;;  %10595 = vrcp.f32 %v3684_v30  ;;  %v12464_v42 = vcombine.high %v12440_v13, %v12440_v13  ;;  %v9408_v19 = vpop.f32.mrb[5].mxu0  ;;  %9430 = vmatmul.mubr.msk.f32.gmra.mrb[50].mxu1 %vm603_vm5, %v5422_v49  ;;  %9630 = vmatmul.mubr.msk.f32.gmra.mrb[18].mxu0 %vm603_vm5, %v6283_v18 }
 0x1ef   : > { %v12454_v12 = vrot.slane %v14010_v25, %v11085_v7  ;;  %v10582_v34 = vpop.eup %10581  ;;  %v3686_v36 = vadd.f32 1.0, %v10580_v4  ;;  %10597 = vpow2.f32 %v3492_v24  ;;  %v3260_v39 = vsub.f32 0.0, %v12440_v13  ;;  %v12479_v24 = vpop.f32.mrb[6].mxu0  ;;  %9432 = vmatprep.mubr.msk.f32.mxu1 %vm603_vm5, %v5423_v15  ;;  %9632 = vmatprep.mubr.msk.f32.mxu0 %vm603_vm5, %v6284_v11 }
 0x1f0   : > { %v10584_v14 = vpop.eup %10583  ;;  %v12474_v56 = vrot.slane %v4950_v60, %v11085_v7  ;;  %v3687_v30 = vadd.f32 1.0, %v10582_v34  ;;  %10599 = vrcp.f32 %v3685_v54  ;;  %v3261_v57 = vsub.f32 0.0, %v12464_v42  ;;  %14013 = vst [vmem:[#allocation7_spill] sm:$0xff] %v12479_v24  ;;  %v5424_v60 = vld [vmem:[#allocation2 + $0xb0] sm:$0xff]  ;;  %v9411_v34 = vpop.f32.mrb[7].mxu0  ;;  %v5425_v24 = vld [vmem:[#allocation2 + $0xc0] sm:$0xff] }
 0x1f1   : > { %v12470_v3 = vcombine.high %v12454_v12, %v12454_v12  ;;  %v10586_v25 = vpop.eup %10585  ;;  %v4104_v58 = vmul.f32 %v10584_v14, %v12293_v59  ;;  %10601 = vrcp.f32 %v3686_v36  ;;  %v3262_v43 = vsub.f32 0.0, %v12454_v12  ;;  %v6285_v54 = vld [vmem:[#allocation2 + $0xb1] sm:$0xff] }
 0x1f2   : > { %v4105_v49 = vmul.f32 %v10586_v25, %v12305_v31  ;;  %10603 = vrcp.f32 %v3687_v30  ;;  %v3512_v18 = vmul.f32 1.442695, %v3260_v39  ;;  %v3514_v19 = vmul.f32 1.442695, %v3261_v57  ;;  %9433 = vmatmul.mubr.msk.f32.gmra.mrb[52].mxu1 %vm603_vm5, %v5424_v60  ;;  %9633 = vmatmul.mubr.msk.f32.gmra.mrb[20].mxu0 %vm603_vm5, %v6285_v54  ;;  %v14014_v57 = vld [vmem:[#allocation8_spill] sm:$0xff] }
 0x1f3   : > { %v3263_v4 = vsub.f32 0.0, %v12470_v3  ;;  %v4323_v59 = vmul.f32 %v11401_v47, %v4104_v58  ;;  %10605 = vpow2.f32 %v12435_v17  ;;  %v3516_v36 = vmul.f32 1.442695, %v3262_v43  ;;  %9435 = vmatprep.mubr.msk.f32.mxu1 %vm603_vm5, %v5425_v24  ;;  %v5426_v58 = vld [vmem:[#allocation2 + $0xc8] sm:$0xff]  ;;  %9635 = vmatprep.mubr.msk.f32.mxu0 %vm603_vm5, %v6286_v55  ;;  %v6288_v54 = vld [vmem:[#allocation2 + $0xd9] sm:$0xff] }
 0x1f4   : > { %v10588_v27 = vpop.eup %10587  ;;  %v4324_v15 = vmul.f32 %v11389_v38, %v4105_v49  ;;  %10607 = vpow2.f32 %v3512_v18  ;;  %v2838_v11 = vcombine.high %v12458_v16, %v12458_v16  ;;  %v12494_v31 = vrot.slane %v12458_v16, %v11085_v7  ;;  %v6287_v16 = vld [vmem:[#allocation2 + $0xc9] sm:$0xff] }
 0x1f5   : > { %v3518_v14 = vmul.f32 1.442695, %v3263_v4  ;;  %v10590_v39 = vpop.eup %10589  ;;  %v4910_v17 = vcombine.low %v12332_v51, %v4323_v59  ;;  %v3680_v30 = vadd.f32 1.0, %v10588_v27  ;;  %10609 = vpow2.f32 %v3514_v19  ;;  %v5427_v27 = vld [vmem:[#allocation2 + $0xd8] sm:$0xff] }
 0x1f6   : > { %v12501_v25 = vadd.f32 %v14014_v57, %v13987_v5  ;;  %v10592_v43 = vpop.eup %10591  ;;  %v4106_v4 = vmul.f32 %v10590_v39, %v12301_v50  ;;  %v4932_v60 = vrot.slane %v4324_v15, %v11085_v7  ;;  %10611 = vpow2.f32 %v3516_v36  ;;  %9436 = vmatmul.mubr.msk.f32.gmra.mrb[54].mxu1 %vm603_vm5, %v5426_v58  ;;  %9636 = vmatmul.mubr.msk.f32.gmra.mrb[22].mxu0 %vm603_vm5, %v6287_v16  ;;  %v5429_v57 = vld [vmem:[#allocation2 + $0xf0] sm:$0xff] }
 0x1f7   : > { %v12508_v51 = vrot.slane %v2838_v11, %v11085_v7  ;;  %v10594_v34 = vpop.eup %10593  ;;  %v4924_v5 = vrot.slane %v4910_v17, %v11085_v7  ;;  %v3681_v49 = vadd.f32 1.0, %v10592_v43  ;;  %10613 = vrcp.f32 %v3680_v30  ;;  %9438 = vmatprep.mubr.msk.f32.mxu1 %vm603_vm5, %v5427_v27  ;;  %9638 = vmatprep.mubr.msk.f32.mxu0 %vm603_vm5, %v6288_v54 }
 0x1f8   : > { %v12513_v55 = vcombine.high %v12494_v31, %v12494_v31  ;;  %v10596_v24 = vpop.eup %10595  ;;  %v4107_v50 = vmul.f32 %v10594_v34, %v12313_v52  ;;  %v4325_v18 = vmul.f32 %v11383_v33, %v4106_v4  ;;  %5257 = vst.msk [vmem:[#allocation2 + $0x100] sm:$0x3] %vm606_vm6, %v4932_v60  ;;  %10615 = vpow2.f32 %v3518_v14  ;;  %v5428_v4 = vld [vmem:[#allocation2 + $0xe0] sm:$0xff] }
 0x1f9   : > { %v12520_v19 = vcombine.high %v12508_v51, %v12508_v51  ;;  %v10598_v59 = vpop.eup %10597  ;;  %v4925_v36 = vcombine.low %v12346_v41, %v4924_v5  ;;  %v4116_v15 = vmul.f32 %v10596_v24, %v12351_v45  ;;  %10617 = vrcp.f32 %v3681_v49  ;;  %v6289_v60 = vld [vmem:[#allocation2 + $0xe1] sm:$0xff] }
 0x1fa   : > { %v3256_v52 = vsub.f32 0.0, %v12494_v31  ;;  %v10600_v14 = vpop.eup %10599  ;;  %v4326_v11 = vmul.f32 %v11369_v28, %v4107_v50  ;;  %v3682_v39 = vadd.f32 1.0, %v10598_v59  ;;  %v3257_v17 = vsub.f32 0.0, %v12513_v55  ;;  %9439 = vmatmul.mubr.msk.f32.gmra.mrb[56].mxu1 %vm603_vm5, %v5428_v4  ;;  %9639 = vmatmul.mubr.msk.f32.gmra.mrb[24].mxu0 %vm603_vm5, %v6289_v60  ;;  %v5402_v4 = vld [vmem:[%s13955_s5 + $0x4] sm:$0x3] }
 0x1fb   : > { %v3258_v30 = vsub.f32 0.0, %v12508_v51  ;;  %v10602_v58 = vpop.eup %10601  ;;  %5256 = vst.msk [vmem:[#allocation2 + $0xf8] sm:$0xff] %vm603_vm5, %v4925_v36  ;;  %v4117_v41 = vmul.f32 %v10600_v14, %v12372_v1  ;;  %v12535_v45 = vmul.f32 %v11369_v28, %v4116_v15  ;;  %v3259_v16 = vsub.f32 0.0, %v12520_v19  ;;  %9441 = vmatprep.mubr.msk.f32.mxu1 %vm603_vm5, %v5429_v57  ;;  %v5400_v15 = vld [vmem:[%s13955_s5] sm:$0x3]  ;;  %9712 = vmatprep.subr.msk.mxu0 %vm5541_vm7, %v5402_v4 }
 0x1fc   : > { %v3504_v43 = vmul.f32 1.442695, %v3256_v52  ;;  %v10604_v27 = vpop.eup %10603  ;;  %v4933_v54 = vcombine.low %v4325_v18, %v4326_v11  ;;  %v4118_v34 = vmul.f32 %v10602_v58, %v12362_v53  ;;  %10619 = vrcp.f32 %v3682_v39  ;;  %9462 = vmatprep.subr.msk.mxu1 %vm5541_vm7, %v5400_v15 }
 0x1fd   : > { %v3506_v5 = vmul.f32 1.442695, %v3257_v17  ;;  %v10606_v49 = vpop.eup %10605  ;;  %v4119_v1 = vmul.f32 %v10604_v27, %v12380_v0  ;;  %v4336_v24 = vmul.f32 %v11372_v29, %v4117_v41  ;;  %v3508_v50 = vmul.f32 1.442695, %v3258_v30  ;;  %9463 = vmatpush3.msk.msra.mxu1 %vm5541_vm7, %v5400_v15 }
 0x1fe   : > { %10621 = vpow2.f32 %v3504_v43  ;;  %v10608_v59 = vpop.eup %10607  ;;  %v4941_v18 = vrot.slane %v4933_v54, %v11085_v7  ;;  %v4337_v53 = vmul.f32 %v11380_v32, %v4118_v34  ;;  %v3683_v36 = vadd.f32 1.0, %v10606_v49 }
 0x1ff   : > { %10623 = vpow2.f32 %v3506_v5  ;;  %v10610_v52 = vpop.eup %10609  ;;  %v3692_v14 = vadd.f32 1.0, %v10608_v59  ;;  %v3510_v0 = vmul.f32 1.442695, %v3259_v16  ;;  %v12550_v11 = vmul.f32 %v11385_v35, %v4119_v1 }
 0x200   : > { %10625 = vpow2.f32 %v3508_v50  ;;  %v10612_v39 = vpop.eup %10611  ;;  %v4949_v17 = vcombine.low %v4941_v18, %v12448_v20  ;;  %v4975_v30 = vcombine.low %v4336_v24, %v4337_v53  ;;  %v3693_v57 = vadd.f32 1.0, %v10610_v52 }
 0x201   : > { %10627 = vrcp.f32 %v3683_v36  ;;  %v10614_v58 = vpop.eup %10613  ;;  %v3694_v41 = vadd.f32 1.0, %v10612_v39  ;;  %v2889_v43 = vcombine.high %v12501_v25, %v12501_v25  ;;  %v12559_v16 = vrot.slane %v12501_v25, %v11085_v7 }
 0x202   : > { %10629 = vrcp.f32 %v3692_v14  ;;  %v10616_v20 = vpop.eup %10615  ;;  %5258 = vst.msk [vmem:[#allocation2 + $0x108] sm:$0xff] %vm603_vm5, %v4949_v17  ;;  %v12566_v60 = vrot.slane %v4975_v30, %v11085_v7  ;;  %v4112_v27 = vmul.f32 %v10614_v58, %v12366_v46  ;;  %v2322_v54 = vadd.f32 %v11999_v62, %v11355_v21  ;;  %v6290_v34 = vld [vmem:[#allocation2 + $0xf1] sm:$0xff]  ;;  %v6291_v25 = vld [vmem:[#allocation2 + $0xf9] sm:$0xff] }
 0x203   : > { %10631 = vrcp.f32 %v3693_v57  ;;  %v5430_v5 = vld [vmem:[#allocation2 + $0xf8] sm:$0xff]  ;;  %v10618_v49 = vpop.eup %10617  ;;  %v3695_v1 = vadd.f32 1.0, %v10616_v20  ;;  %v12573_v24 = vrot.slane %v2889_v43, %v11085_v7  ;;  %v12577_v50 = vcombine.high %v12559_v16, %v12559_v16  ;;  %9641 = vmatprep.mubr.msk.f32.mxu0 %vm603_vm5, %v6290_v34 }
 0x204   : > { %10633 = vrcp.f32 %v3694_v41  ;;  %9442 = vmatmul.mubr.msk.f32.gmra.mrb[58].mxu1 %vm603_vm5, %v5430_v5  ;;  %v4113_v21 = vmul.f32 %v10618_v49, %v12403_v23  ;;  %v4331_v62 = vmul.f32 %v11399_v44, %v4112_v27  ;;  %v3268_v46 = vsub.f32 0.0, %v12559_v16  ;;  %9642 = vmatmul.mubr.msk.f32.gmra.mrb[26].mxu0 %vm603_vm5, %v6291_v25 }
 0x205   : > { %10635 = vpow2.f32 %v3510_v0  ;;  %v12587_v59 = vcombine.high %v12573_v24, %v12573_v24  ;;  %v3269_v18 = vsub.f32 0.0, %v12577_v50  ;;  %v3270_v53 = vsub.f32 0.0, %v12573_v24 }
 0x206   : > { %10637 = vrcp.f32 %v3695_v1  ;;  %v10620_v36 = vpop.eup %10619  ;;  %v4332_v15 = vmul.f32 %v11401_v47, %v4113_v21  ;;  %v3528_v23 = vmul.f32 1.442695, %v3268_v46  ;;  %v2872_v52 = vcombine.high %v2322_v54, %v2322_v54 }
 0x207   : > { %v12593_v14 = vrot.slane %v2322_v54, %v11085_v7  ;;  %v4114_v39 = vmul.f32 %v10620_v36, %v12399_v48  ;;  %v3271_v17 = vsub.f32 0.0, %v12587_v59  ;;  %v3530_v30 = vmul.f32 1.442695, %v3269_v18 }
 0x208   : > { %v10622_v0 = vpop.eup %10621  ;;  %v3532_v57 = vmul.f32 1.442695, %v3270_v53  ;;  %v4951_v41 = vcombine.low %v4331_v62, %v4332_v15  ;;  %10639 = vpow2.f32 %v3528_v23  ;;  %v12598_v4 = vrot.slane %v2872_v52, %v11085_v7 }
 0x209   : > { %v10624_v58 = vpop.eup %10623  ;;  %v3688_v43 = vadd.f32 1.0, %v10622_v0  ;;  %v4333_v27 = vmul.f32 %v11389_v38, %v4114_v39  ;;  %10641 = vpow2.f32 %v3530_v30  ;;  %v3534_v54 = vmul.f32 1.442695, %v3271_v17  ;;  %v5431_v5 = vld [vmem:[#allocation2 + $0x108] sm:$0xff] }
 0x20a   : > { %v10626_v20 = vpop.eup %10625  ;;  %v3689_v34 = vadd.f32 1.0, %v10624_v58  ;;  %v4965_v48 = vrot.slane %v4951_v41, %v11085_v7  ;;  %v12604_v1 = vcombine.high %v12593_v14, %v12593_v14  ;;  %9444 = vmatprep.mubr.msk.f32.mxu1 %vm603_vm5, %v5431_v5  ;;  %v12611_v18 = vcombine.high %v12598_v4, %v12598_v4 }
 0x20b   : > { %v10628_v25 = vpop.eup %10627  ;;  %v3690_v49 = vadd.f32 1.0, %v10626_v20  ;;  %10643 = vrcp.f32 %v3688_v43  ;;  %v4973_v46 = vrot.slane %v4333_v27, %v11085_v7  ;;  %v3264_v23 = vsub.f32 0.0, %v12593_v14 }
 0x20c   : > { %v10630_v21 = vpop.eup %10629  ;;  %v4115_v62 = vmul.f32 %v10628_v25, %v12411_v10  ;;  %10645 = vrcp.f32 %v3689_v34  ;;  %v4966_v36 = vcombine.low %v12474_v56, %v4965_v48  ;;  %v3265_v39 = vsub.f32 0.0, %v12604_v1 }
 0x20d   : > { %v10632_v53 = vpop.eup %10631  ;;  %v4124_v15 = vmul.f32 %v10630_v21, %v12440_v13  ;;  %10647 = vrcp.f32 %v3690_v49  ;;  %5260 = vst.msk [vmem:[#allocation2 + $0x118] sm:$0x3] %vm606_vm6, %v4973_v46  ;;  %v3266_v30 = vsub.f32 0.0, %v12598_v4  ;;  %v3520_v34 = vmul.f32 1.442695, %v3264_v23  ;;  %v14015_v21 = vld [vmem:[#allocation12_spill] sm:$0xff] }
 0x20e   : > { %v10634_v52 = vpop.eup %10633  ;;  %v4334_v0 = vmul.f32 %v11383_v33, %v4115_v62  ;;  %v4125_v10 = vmul.f32 %v10632_v53, %v12464_v42  ;;  %10649 = vpow2.f32 %v3532_v57  ;;  %5259 = vst.msk [vmem:[#allocation2 + $0x110] sm:$0xff] %vm603_vm5, %v4966_v36  ;;  %v3267_v42 = vsub.f32 0.0, %v12611_v18 }
 0x20f   : > { %v10636_v17 = vpop.eup %10635  ;;  %v4126_v56 = vmul.f32 %v10634_v52, %v12454_v12  ;;  %v4343_v13 = vmul.f32 %v11383_v33, %v4124_v15  ;;  %10651 = vpow2.f32 %v3534_v54  ;;  %v3522_v5 = vmul.f32 1.442695, %v3265_v39 }
 0x210   : > { %v10638_v58 = vpop.eup %10637  ;;  %v4974_v41 = vcombine.low %v4334_v0, %v12535_v45  ;;  %v4344_v43 = vmul.f32 %v11369_v28, %v4125_v10  ;;  %v3691_v20 = vadd.f32 1.0, %v10636_v17  ;;  %v3524_v54 = vmul.f32 1.442695, %v3266_v30  ;;  %v14016_v17 = vld [vmem:[#allocation4_spill] sm:$0xff] }
 0x211   : > { %v4127_v57 = vmul.f32 %v10638_v58, %v12470_v3  ;;  %v4345_v27 = vmul.f32 %v11372_v29, %v4126_v56  ;;  %v3526_v45 = vmul.f32 1.442695, %v3267_v42  ;;  %v2337_v62 = vadd.f32 %v14015_v21, %v13993_v22 }
 0x212   : > { %v4982_v12 = vrot.slane %v4974_v41, %v11085_v7  ;;  %v5015_v25 = vcombine.low %v4343_v13, %v4344_v43  ;;  %10653 = vrcp.f32 %v3691_v20  ;;  %v10640_v48 = vpop.eup %10639 }
 0x213   : > { %v4346_v49 = vmul.f32 %v11380_v32, %v4127_v57  ;;  %10655 = vpow2.f32 %v3520_v34  ;;  %v10642_v46 = vpop.eup %10641  ;;  %v3700_v36 = vadd.f32 1.0, %v10640_v48  ;;  %v2923_v0 = vcombine.high %v2337_v62, %v2337_v62 }
 0x214   : > { %v4990_v3 = vcombine.low %v4982_v12, %v12566_v60  ;;  %v5023_v53 = vrot.slane %v5015_v25, %v11085_v7  ;;  %10657 = vpow2.f32 %v3522_v5  ;;  %v3701_v52 = vadd.f32 1.0, %v10642_v46 }
 0x215   : > { %v10644_v15 = vpop.eup %10643  ;;  %v5016_v23 = vcombine.low %v4345_v27, %v4346_v49  ;;  %10659 = vpow2.f32 %v3524_v54  ;;  %v12638_v22 = vrot.slane %v2337_v62, %v11085_v7  ;;  %v2332_v60 = vadd.f32 %v12089_v6, %v14016_v17  ;;  %v12642_v56 = vld [vmem:[#allocation2 + $0x110] sm:$0xff] }
 0x216   : > { %v10646_v10 = vpop.eup %10645  ;;  %5261 = vst.msk [vmem:[#allocation2 + $0x120] sm:$0xff] %vm603_vm5, %v4990_v3  ;;  %v4120_v39 = vmul.f32 %v10644_v15, %v12494_v31  ;;  %10661 = vrcp.f32 %v3700_v36  ;;  %v12644_v13 = vld [vmem:[#allocation2 + $0x109] sm:$0xff]  ;;  %v12646_v30 = vld [vmem:[#allocation2 + $0x111] sm:$0xff]  ;;  %v12651_v31 = vrot.slane %v2923_v0, %v11085_v7  ;;  %9445 = vmatmul.mubr.msk.f32.gmra.mrb[60].mxu1 %vm603_vm5, %v12642_v56 }
 0x217   : > { %v10648_v58 = vpop.eup %10647  ;;  %v5030_v41 = vrot.slane %v5016_v23, %v11085_v7  ;;  %v4121_v43 = vmul.f32 %v10646_v10, %v12513_v55  ;;  %10663 = vrcp.f32 %v3701_v52  ;;  %9644 = vmatprep.mubr.msk.f32.mxu0 %vm603_vm5, %v12644_v13  ;;  %v12661_v57 = vcombine.high %v12638_v22, %v12638_v22 }
 0x218   : > { %v10650_v6 = vpop.eup %10649  ;;  %v4122_v20 = vmul.f32 %v10648_v58, %v12508_v51  ;;  %v4339_v42 = vmul.f32 %v11391_v2, %v4120_v39  ;;  %10665 = vpow2.f32 %v3526_v45  ;;  %9645 = vmatmul.mubr.msk.f32.gmra.mrb[28].mxu0 %vm603_vm5, %v12646_v30  ;;  %v12668_v12 = vcombine.high %v12651_v31, %v12651_v31 }
 0x219   : > { %v10652_v55 = vpop.eup %10651  ;;  %v5031_v27 = vcombine.low %v5023_v53, %v5030_v41  ;;  %v4340_v34 = vmul.f32 %v11399_v44, %v4121_v43  ;;  %v3702_v5 = vadd.f32 1.0, %v10650_v6  ;;  %v3276_v48 = vsub.f32 0.0, %v12638_v22 }
 0x21a   : > { %v4341_v51 = vmul.f32 %v11401_v47, %v4122_v20  ;;  %v4991_v25 = vcombine.low %v12550_v11, %v4339_v42  ;;  %v3703_v54 = vadd.f32 1.0, %v10652_v55  ;;  %v3277_v49 = vsub.f32 0.0, %v12661_v57 }
 0x21b   : > { %5264 = vst.msk [vmem:[#allocation2 + $0x138] sm:$0xff] %vm603_vm5, %v5031_v27  ;;  %10667 = vrcp.f32 %v3702_v5  ;;  %v3278_v45 = vsub.f32 0.0, %v12651_v31  ;;  %v3279_v21 = vsub.f32 0.0, %v12668_v12  ;;  %v3544_v53 = vmul.f32 1.442695, %v3276_v48 }
 0x21c   : > { %v10654_v62 = vpop.eup %10653  ;;  %v4992_v46 = vcombine.low %v4340_v34, %v4341_v51  ;;  %v4999_v3 = vrot.slane %v4991_v25, %v11085_v7  ;;  %10669 = vrcp.f32 %v3703_v54  ;;  %v3546_v15 = vmul.f32 1.442695, %v3277_v49 }
 0x21d   : > { %v10656_v36 = vpop.eup %10655  ;;  %v4123_v11 = vmul.f32 %v10654_v62, %v12520_v19  ;;  %v3548_v23 = vmul.f32 1.442695, %v3278_v45  ;;  %v3550_v52 = vmul.f32 1.442695, %v3279_v21  ;;  %10671 = vpow2.f32 %v3544_v53  ;;  %v12680_v58 = vld [vmem:[#allocation2 + $0x120] sm:$0xff] }
 0x21e   : > { %v10658_v0 = vpop.eup %10657  ;;  %v5006_v10 = vrot.slane %v4992_v46, %v11085_v7  ;;  %v3696_v39 = vadd.f32 1.0, %v10656_v36  ;;  %v2906_v17 = vcombine.high %v2332_v60, %v2332_v60  ;;  %10673 = vpow2.f32 %v3546_v15  ;;  %9447 = vmatprep.mubr.msk.f32.mxu1 %vm603_vm5, %v12680_v58 }
 0x21f   : > { %v10660_v41 = vpop.eup %10659  ;;  %v4342_v43 = vmul.f32 %v11389_v38, %v4123_v11  ;;  %v3697_v6 = vadd.f32 1.0, %v10658_v0  ;;  %v12684_v20 = vrot.slane %v2332_v60, %v11085_v7 }
 0x220   : > { %v10662_v19 = vpop.eup %10661  ;;  %v5007_v42 = vcombine.low %v4999_v3, %v5006_v10  ;;  %v3698_v55 = vadd.f32 1.0, %v10660_v41  ;;  %10675 = vrcp.f32 %v3696_v39  ;;  %v12689_v27 = vrot.slane %v2906_v17, %v11085_v7 }
 0x221   : > { %v10664_v34 = vpop.eup %10663  ;;  %v5014_v5 = vrot.slane %v4342_v43, %v11085_v7  ;;  %v4132_v51 = vmul.f32 %v10662_v19, %v12559_v16  ;;  %10677 = vrcp.f32 %v3697_v6  ;;  %v12695_v60 = vcombine.high %v12684_v20, %v12684_v20 }
 0x222   : > { %v10666_v25 = vpop.eup %10665  ;;  %5262 = vst.msk [vmem:[#allocation2 + $0x128] sm:$0xff] %vm603_vm5, %v5007_v42  ;;  %v4133_v54 = vmul.f32 %v10664_v34, %v12577_v50  ;;  %10679 = vrcp.f32 %v3698_v55  ;;  %v12701_v48 = vcombine.high %v12689_v27, %v12689_v27  ;;  %v3272_v49 = vsub.f32 0.0, %v12684_v20  ;;  %v12721_v43 = vld [vmem:[#allocation2 + $0x138] sm:$0xff] }
 0x223   : > { %5263 = vst.msk [vmem:[#allocation2 + $0x130] sm:$0x3] %vm606_vm6, %v5014_v5  ;;  %v4351_v16 = vmul.f32 %v11389_v38, %v4132_v51  ;;  %v3699_v45 = vadd.f32 1.0, %v10666_v25  ;;  %10681 = vpow2.f32 %v3548_v23  ;;  %v3273_v21 = vsub.f32 0.0, %v12695_v60 }
 0x224   : > { %10683 = vpow2.f32 %v3550_v52  ;;  %v3274_v62 = vsub.f32 0.0, %v12689_v27  ;;  %v3275_v50 = vsub.f32 0.0, %v12701_v48  ;;  %v3536_v53 = vmul.f32 1.442695, %v3272_v49 }
 0x225   : > { %v10668_v46 = vpop.eup %10667  ;;  %v5055_v3 = vrot.slane %v4351_v16, %v11085_v7  ;;  %10685 = vrcp.f32 %v3699_v45  ;;  %v3538_v36 = vmul.f32 1.442695, %v3273_v21  ;;  %v2347_v10 = vadd.f32 %v12122_v8, %v14006_v61 }
 0x226   : > { %v10670_v11 = vpop.eup %10669  ;;  %v3540_v15 = vmul.f32 1.442695, %v3274_v62  ;;  %v3542_v0 = vmul.f32 1.442695, %v3275_v50  ;;  %v12713_v23 = vmul.f32 %v11383_v33, %v4133_v54  ;;  %10687 = vpow2.f32 %v3536_v53 }
 0x227   : > { %5266 = vst.msk [vmem:[#allocation2 + $0x148] sm:$0x3] %vm606_vm6, %v5055_v3  ;;  %v10672_v52 = vpop.eup %10671  ;;  %10689 = vpow2.f32 %v3538_v36  ;;  %v2957_v39 = vcombine.high %v2347_v10, %v2347_v10  ;;  %v12717_v17 = vrot.slane %v2347_v10, %v11085_v7  ;;  %v2342_v41 = vadd.f32 %v12175_v40, %v14001_v37 }
 0x228   : > { %v10674_v6 = vpop.eup %10673  ;;  %v4134_v8 = vmul.f32 %v10668_v46, %v12573_v24  ;;  %v12725_v61 = vmul.f32 %v10670_v11, %v12587_v59  ;;  %v3708_v19 = vadd.f32 1.0, %v10672_v52  ;;  %10691 = vpow2.f32 %v3540_v15 }
 0x229   : > { %v12727_v42 = vld [vmem:[#allocation2 + $0x128] sm:$0xff]  ;;  %v3709_v5 = vadd.f32 1.0, %v10674_v6  ;;  %10693 = vpow2.f32 %v3542_v0  ;;  %v12732_v51 = vrot.slane %v2957_v39, %v11085_v7  ;;  %v12736_v37 = vadd.f32 %v12204_v63, %v11364_v26 }
 0x22a   : > { %v12729_v55 = vld [vmem:[#allocation2 + $0x121] sm:$0xff]  ;;  %v10676_v34 = vpop.eup %10675  ;;  %9448 = vmatmul.mubr.msk.f32.gmra.mrb[62].mxu1 %vm603_vm5, %v12727_v42  ;;  %v12742_v40 = vld [vmem:[#allocation2 + $0x129] sm:$0xff]  ;;  %10695 = vrcp.f32 %v3708_v19  ;;  %v12747_v25 = vcombine.high %v12717_v17, %v12717_v17  ;;  %v3284_v54 = vsub.f32 0.0, %v12717_v17  ;;  %v2940_v16 = vcombine.high %v2342_v41, %v2342_v41 }
 0x22b   : > { %9647 = vmatprep.mubr.msk.f32.mxu0 %vm603_vm5, %v12729_v55  ;;  %v10678_v24 = vpop.eup %10677  ;;  %v4128_v59 = vmul.f32 %v10676_v34, %v12593_v14  ;;  %9450 = vmatprep.mubr.msk.f32.mxu1 %vm603_vm5, %v12721_v43  ;;  %10697 = vrcp.f32 %v3709_v5  ;;  %v12757_v14 = vcombine.high %v12732_v51, %v12732_v51  ;;  %v3286_v46 = vsub.f32 0.0, %v12732_v51 }
 0x22c   : > { %9648 = vmatmul.mubr.msk.f32.gmra.mrb[30].mxu0 %vm603_vm5, %v12742_v40  ;;  %v10680_v63 = vpop.eup %10679  ;;  %v4129_v49 = vmul.f32 %v10678_v24, %v12604_v1  ;;  %v3285_v50 = vsub.f32 0.0, %v12747_v25  ;;  %v3560_v11 = vmul.f32 1.442695, %v3284_v54  ;;  %v12766_v0 = vmul.f32 %v11369_v28, %v4134_v8 }
 0x22d   : > { %v10682_v45 = vpop.eup %10681  ;;  %v4130_v21 = vmul.f32 %v10680_v63, %v12598_v4  ;;  %v4347_v62 = vmul.f32 %v11385_v35, %v4128_v59  ;;  %v3287_v1 = vsub.f32 0.0, %v12757_v14  ;;  %v3564_v19 = vmul.f32 1.442695, %v3286_v46 }
 0x22e   : > { %v10684_v3 = vpop.eup %10683  ;;  %v4348_v53 = vmul.f32 %v11391_v2, %v4129_v49  ;;  %v3710_v36 = vadd.f32 1.0, %v10682_v45  ;;  %v3562_v52 = vmul.f32 1.442695, %v3285_v50  ;;  %v12771_v24 = vrot.slane %v2342_v41, %v11085_v7 }
 0x22f   : > { %v10686_v15 = vpop.eup %10685  ;;  %v4349_v10 = vmul.f32 %v11399_v44, %v4130_v21  ;;  %v3711_v4 = vadd.f32 1.0, %v10684_v3  ;;  %v3566_v5 = vmul.f32 1.442695, %v3287_v1  ;;  %v12774_v59 = vrot.slane %v2940_v16, %v11085_v7 }
 0x230   : > { %v4131_v39 = vmul.f32 %v10686_v15, %v12611_v18  ;;  %v5032_v6 = vcombine.low %v4347_v62, %v4348_v53  ;;  %10699 = vrcp.f32 %v3710_v36  ;;  %v10688_v34 = vpop.eup %10687  ;;  %v2991_v18 = vcombine.high %v12736_v37, %v12736_v37 }
 0x231   : > { %10701 = vrcp.f32 %v3711_v4  ;;  %v10690_v8 = vpop.eup %10689  ;;  %v3704_v63 = vadd.f32 1.0, %v10688_v34  ;;  %v12781_v21 = vcombine.high %v12771_v24, %v12771_v24  ;;  %v12785_v41 = vcombine.high %v12774_v59, %v12774_v59 }
 0x232   : > { %v4350_v54 = vmul.f32 %v11401_v47, %v4131_v39  ;;  %10703 = vpow2.f32 %v3560_v11  ;;  %v10692_v49 = vpop.eup %10691  ;;  %v3705_v45 = vadd.f32 1.0, %v10690_v8  ;;  %v3280_v46 = vsub.f32 0.0, %v12771_v24 }
 0x233   : > { %10705 = vpow2.f32 %v3562_v52  ;;  %v10694_v16 = vpop.eup %10693  ;;  %v3706_v50 = vadd.f32 1.0, %v10692_v49  ;;  %v3281_v36 = vsub.f32 0.0, %v12781_v21  ;;  %v3282_v1 = vsub.f32 0.0, %v12774_v59 }
 0x234   : > { %v5033_v62 = vcombine.low %v4349_v10, %v4350_v54  ;;  %10707 = vrcp.f32 %v3704_v63  ;;  %v10696_v3 = vpop.eup %10695  ;;  %v3707_v53 = vadd.f32 1.0, %v10694_v16  ;;  %v5040_v15 = vrot.slane %v5032_v6, %v11085_v7 }
 0x235   : > { %10709 = vrcp.f32 %v3705_v45  ;;  %v10698_v11 = vpop.eup %10697  ;;  %v3283_v52 = vsub.f32 0.0, %v12785_v41  ;;  %v3552_v39 = vmul.f32 1.442695, %v3280_v46  ;;  %v3554_v34 = vmul.f32 1.442695, %v3281_v36 }
 0x236   : > { %v5047_v4 = vrot.slane %v5033_v62, %v11085_v7  ;;  %10711 = vrcp.f32 %v3706_v50  ;;  %v4141_v10 = vmul.f32 %v10698_v11, %v12661_v57  ;;  %v5056_v8 = vcombine.low %v12713_v23, %v12766_v0 }
 0x237   : > { %10713 = vrcp.f32 %v3707_v53  ;;  %v3556_v63 = vmul.f32 1.442695, %v3282_v1  ;;  %v3558_v6 = vmul.f32 1.442695, %v3283_v52  ;;  %v12799_v45 = vrot.slane %v12736_v37, %v11085_v7 }
 0x238   : > { %v5048_v54 = vcombine.low %v5040_v15, %v5047_v4  ;;  %10715 = vpow2.f32 %v3564_v19  ;;  %v4360_v49 = vmul.f32 %v11389_v38, %v4141_v10  ;;  %v4140_v57 = vmul.f32 %v10696_v3, %v12638_v22 }
 0x239   : > { %10717 = vpow2.f32 %v3566_v5  ;;  %v12804_v62 = vrot.slane %v2991_v18, %v11085_v7  ;;  %v12809_v19 = vcombine.high %v12799_v45, %v12799_v45  ;;  %v4354_v37 = vmul.f32 %v11372_v29, %v12725_v61 }
 0x23a   : > { %v10700_v16 = vpop.eup %10699  ;;  %5265 = vst.msk [vmem:[#allocation2 + $0x140] sm:$0xff] %vm603_vm5, %v5048_v54  ;;  %10719 = vpow2.f32 %v3552_v39  ;;  %v5096_v0 = vrot.slane %v4360_v49, %v11085_v7  ;;  %v12818_v18 = vrot.slane %v5056_v8, %v11085_v7  ;;  %v4359_v36 = vmul.f32 %v11401_v47, %v4140_v57  ;;  %v12831_v39 = vld [vmem:[%s13955_s5 + $0xc] sm:$0x3] }
 0x23b   : > { %v10702_v23 = vpop.eup %10701  ;;  %10721 = vpow2.f32 %v3554_v34  ;;  %v12815_v22 = vcombine.high %v12804_v62, %v12804_v62  ;;  %v3293_v3 = vsub.f32 0.0, %v12809_v19  ;;  %v3294_v61 = vsub.f32 0.0, %v12804_v62  ;;  %9512 = vmatprep.subr.msk.mxu1 %vm5541_vm7, %v12831_v39 }
 0x23c   : > { %v10704_v5 = vpop.eup %10703  ;;  %10723 = vpow2.f32 %v3556_v63  ;;  %5269 = vst.msk [vmem:[#allocation2 + $0x160] sm:$0x3] %vm606_vm6, %v5096_v0  ;;  %v2352_v10 = vadd.f32 %v12219_v9, %v11364_v26  ;;  %v3292_v54 = vsub.f32 0.0, %v12799_v45  ;;  %v14017_v63 = vld [vmem:[#allocation13_spill] sm:$0xff]  ;;  %v4142_v9 = vmul.f32 %v10700_v16, %v12651_v31 }
 0x23d   : > { %v10706_v50 = vpop.eup %10705  ;;  %v3716_v46 = vadd.f32 1.0, %v10704_v5  ;;  %10725 = vpow2.f32 %v3558_v6  ;;  %v3295_v11 = vsub.f32 0.0, %v12815_v22  ;;  %v3578_v52 = vmul.f32 1.442695, %v3293_v3 }
 0x23e   : > { %v10708_v53 = vpop.eup %10707  ;;  %v3717_v1 = vadd.f32 1.0, %v10706_v50  ;;  %v4143_v3 = vmul.f32 %v10702_v23, %v12668_v12  ;;  %v3576_v23 = vmul.f32 1.442695, %v3292_v54 }
 0x23f   : > { %v10710_v15 = vpop.eup %10709  ;;  %v4136_v4 = vmul.f32 %v10708_v53, %v12684_v20  ;;  %10727 = vrcp.f32 %v3716_v46  ;;  %v12838_v20 = vld [vmem:[%s13954_s4] ss:$0 sm:$0xff]  ;;  %v3582_v57 = vmul.f32 1.442695, %v3295_v11 }
 0x240   : > { %v10712_v34 = vpop.eup %10711  ;;  %v4137_v8 = vmul.f32 %v10710_v15, %v12695_v60  ;;  %10729 = vrcp.f32 %v3717_v1  ;;  %v12842_v49 = vadd.f32 %v12838_v20, %v14017_v63  ;;  %v3580_v15 = vmul.f32 1.442695, %v3294_v61 }
 0x241   : > { %v10714_v26 = vpop.eup %10713  ;;  %v4138_v60 = vmul.f32 %v10712_v34, %v12689_v27  ;;  %v4355_v6 = vmul.f32 %v11380_v32, %v4136_v4  ;;  %v12849_v0 = vld [vmem:[#allocation2 + $0x140] sm:$0xff]  ;;  %10731 = vpow2.f32 %v3578_v52  ;;  %v2974_v61 = vcombine.high %v2352_v10, %v2352_v10 }
 0x242   : > { %v12851_v5 = vld [vmem:[#allocation2 + $0x139] sm:$0xff]  ;;  %v12853_v50 = vld [vmem:[#allocation2 + $0x141] sm:$0xff]  ;;  %v10716_v46 = vpop.eup %10715  ;;  %v4139_v53 = vmul.f32 %v10714_v26, %v12701_v48  ;;  %v4356_v1 = vmul.f32 %v11385_v35, %v4137_v8  ;;  %9451 = vmatmul.mubr.msk.f32.gmra.mrb[64].mxu1 %vm603_vm5, %v12849_v0  ;;  %10733 = vpow2.f32 %v3582_v57  ;;  %v12868_v52 = vrot.slane %v2352_v10, %v11085_v7 }
 0x243   : > { %9650 = vmatprep.mubr.msk.f32.mxu0 %vm603_vm5, %v12851_v5  ;;  %v10718_v31 = vpop.eup %10717  ;;  %v4357_v27 = vmul.f32 %v11391_v2, %v4138_v60  ;;  %v5057_v16 = vcombine.low %v4354_v37, %v4355_v6  ;;  %v3718_v11 = vadd.f32 1.0, %v10716_v46 }
 0x244   : > { %9651 = vmatmul.mubr.msk.f32.gmra.mrb[32].mxu0 %vm603_vm5, %v12853_v50  ;;  %v10720_v12 = vpop.eup %10719  ;;  %v4358_v48 = vmul.f32 %v11399_v44, %v4139_v53  ;;  %v3288_v10 = vsub.f32 0.0, %v12868_v52 }
 0x245   : > { %v10722_v4 = vpop.eup %10721  ;;  %v5071_v34 = vrot.slane %v5057_v16, %v11085_v7  ;;  %v5073_v8 = vcombine.low %v4356_v1, %v4357_v27  ;;  %10735 = vrcp.f32 %v3718_v11  ;;  %v3712_v63 = vadd.f32 1.0, %v10720_v12 }
 0x246   : > { %v10724_v26 = vpop.eup %10723  ;;  %v5074_v60 = vcombine.low %v4358_v48, %v4359_v36  ;;  %v3713_v37 = vadd.f32 1.0, %v10722_v4  ;;  %10737 = vpow2.f32 %v3580_v15  ;;  %v12874_v1 = vrot.slane %v2974_v61, %v11085_v7 }
 0x247   : > { %v10726_v6 = vpop.eup %10725  ;;  %v5072_v46 = vcombine.low %v12818_v18, %v5071_v34  ;;  %v5081_v54 = vrot.slane %v5073_v8, %v11085_v7  ;;  %v3714_v57 = vadd.f32 1.0, %v10724_v26  ;;  %10739 = vrcp.f32 %v3712_v63 }
 0x248   : > { %v5088_v53 = vrot.slane %v5074_v60, %v11085_v7  ;;  %v3715_v16 = vadd.f32 1.0, %v10726_v6  ;;  %10741 = vrcp.f32 %v3713_v37  ;;  %v12877_v15 = vmul.f32 %v11369_v28, %v4143_v3 }
 0x249   : > { %v10728_v36 = vpop.eup %10727  ;;  %5267 = vst.msk [vmem:[#allocation2 + $0x150] sm:$0xff] %vm603_vm5, %v5072_v46  ;;  %10743 = vrcp.f32 %v3714_v57  ;;  %v12882_v18 = vcombine.high %v12868_v52, %v12868_v52  ;;  %v3719_v12 = vadd.f32 1.0, %v10718_v31  ;;  %v12887_v48 = vcombine.high %v12874_v1, %v12874_v1 }
 0x24a   : > { %v10730_v27 = vpop.eup %10729  ;;  %v5089_v11 = vcombine.low %v5081_v54, %v5088_v53  ;;  %10745 = vrcp.f32 %v3715_v16  ;;  %v4148_v3 = vmul.f32 %v10728_v36, %v12717_v17  ;;  %v3290_v4 = vsub.f32 0.0, %v12874_v1 }
 0x24b   : > { %v3289_v61 = vsub.f32 0.0, %v12882_v18  ;;  %v3568_v34 = vmul.f32 1.442695, %v3288_v10  ;;  %v12893_v8 = vmul.f32 %v11383_v33, %v4142_v9  ;;  %10747 = vpow2.f32 %v3576_v23  ;;  %v10732_v26 = vpop.eup %10731  ;;  %v14018_v23 = vld [vmem:[#allocation14_spill] sm:$0xff] }
 0x24c   : > { %5268 = vst.msk [vmem:[#allocation2 + $0x158] sm:$0xff] %vm603_vm5, %v5089_v11  ;;  %v3291_v31 = vsub.f32 0.0, %v12887_v48  ;;  %v5368_v63 = vsub.f32 0.0, %v12842_v49  ;;  %v4149_v60 = vmul.f32 %v10730_v27, %v12747_v25  ;;  %v10734_v17 = vpop.eup %10733  ;;  %v4367_v9 = vmul.f32 %v11399_v44, %v4148_v3  ;;  %v14019_v27 = vld [vmem:[#allocation7_spill] sm:$0xff] }
 0x24d   : > { %10749 = vpow2.f32 %v3568_v34  ;;  %v5097_v37 = vcombine.low %v12893_v8, %v12877_v15  ;;  %v3570_v6 = vmul.f32 1.442695, %v3289_v61  ;;  %v3727_v54 = vadd.f32 1.0, %v10734_v17 }
 0x24e   : > { %10751 = vrcp.f32 %v3719_v12  ;;  %v3572_v57 = vmul.f32 1.442695, %v3290_v4  ;;  %v12904_v53 = vadd.f32 %v12838_v20, %v14018_v23  ;;  %v3574_v25 = vmul.f32 1.442695, %v3291_v31 }
 0x24f   : > { %v10736_v46 = vpop.eup %10735  ;;  %v5371_v10 = vmul.f32 1.442695, %v5368_v63  ;;  %v12909_v11 = vadd.f32 %v12838_v20, %v14019_v27  ;;  %v4368_v3 = vmul.f32 %v11401_v47, %v4149_v60  ;;  %v3725_v61 = vadd.f32 1.0, %v10732_v26 }
 0x250   : > { %v10738_v16 = vpop.eup %10737  ;;  %v4150_v36 = vmul.f32 %v10736_v46, %v12732_v51  ;;  %v12911_v15 = vld [vmem:[#allocation2 + $0x150] sm:$0xff]  ;;  %10753 = vrcp.f32 %v3727_v54  ;;  %v5369_v4 = vsub.f32 0.0, %v12904_v53 }
 0x251   : > { %v10740_v12 = vpop.eup %10739  ;;  %9453 = vmatprep.mubr.msk.f32.mxu1 %vm603_vm5, %v12911_v15  ;;  %10755 = vpow2.f32 %v3570_v6  ;;  %v5370_v20 = vsub.f32 0.0, %v12909_v11  ;;  %v3726_v17 = vadd.f32 1.0, %v10738_v16 }
 0x252   : > { %v10742_v34 = vpop.eup %10741  ;;  %v4369_v51 = vmul.f32 %v11389_v38, %v4150_v36  ;;  %v4144_v8 = vmul.f32 %v10740_v12, %v12771_v24  ;;  %10757 = vpow2.f32 %v3572_v57  ;;  %v5373_v26 = vmul.f32 1.442695, %v5369_v4 }
 0x253   : > { %v10744_v31 = vpop.eup %10743  ;;  %v4145_v63 = vmul.f32 %v10742_v34, %v12781_v21  ;;  %v12921_v60 = vld [vmem:[#allocation2 + $0x158] sm:$0xff]  ;;  %10759 = vpow2.f32 %v3574_v25  ;;  %v5375_v16 = vmul.f32 1.442695, %v5370_v20 }
 0x254   : > { %v12923_v46 = vld [vmem:[#allocation2 + $0x151] sm:$0xff]  ;;  %v12925_v54 = vld [vmem:[#allocation2 + $0x159] sm:$0xff]  ;;  %v10746_v23 = vpop.eup %10745  ;;  %v5137_v36 = vrot.slane %v4369_v51, %v11085_v7  ;;  %v4146_v24 = vmul.f32 %v10744_v31, %v12774_v59  ;;  %v4363_v6 = vmul.f32 %v11372_v29, %v4144_v8  ;;  %9454 = vmatmul.mubr.msk.f32.gmra.mrb[66].mxu1 %vm603_vm5, %v12921_v60  ;;  %10761 = vpow2.f32 %v5371_v10 }
 0x255   : > { %9653 = vmatprep.mubr.msk.f32.mxu0 %vm603_vm5, %v12923_v46  ;;  %v4147_v21 = vmul.f32 %v10746_v23, %v12785_v41  ;;  %v4364_v57 = vmul.f32 %v11380_v32, %v4145_v63  ;;  %v10748_v27 = vpop.eup %10747  ;;  %v5115_v59 = vcombine.low %v4367_v9, %v4368_v3  ;;  %10763 = vpow2.f32 %v5373_v26 }
 0x256   : > { %9654 = vmatmul.mubr.msk.f32.gmra.mrb[34].mxu0 %vm603_vm5, %v12925_v54  ;;  %5272 = vst.msk [vmem:[#allocation2 + $0x178] sm:$0x3] %vm606_vm6, %v5137_v36  ;;  %v4365_v12 = vmul.f32 %v11385_v35, %v4146_v24  ;;  %10765 = vpow2.f32 %v5375_v16  ;;  %v5105_v51 = vrot.slane %v5097_v37, %v11085_v7  ;;  %v3724_v31 = vadd.f32 1.0, %v10748_v27 }
 0x257   : > { %v10750_v25 = vpop.eup %10749  ;;  %v4366_v4 = vmul.f32 %v11391_v2, %v4147_v21  ;;  %v5098_v34 = vcombine.low %v4363_v6, %v4364_v57  ;;  %10767 = vrcp.f32 %v3725_v61  ;;  %v5129_v3 = vrot.slane %v5115_v59, %v11085_v7 }
 0x258   : > { %v10752_v41 = vpop.eup %10751  ;;  %v3720_v10 = vadd.f32 1.0, %v10750_v25  ;;  %10769 = vrcp.f32 %v3726_v17 }
 0x259   : > { %v5112_v8 = vrot.slane %v5098_v34, %v11085_v7  ;;  %v5114_v20 = vcombine.low %v4365_v12, %v4366_v4  ;;  %v4151_v12 = vmul.f32 %v10752_v41, %v12757_v14 }
 0x25a   : > { %10771 = vrcp.f32 %v3720_v10  ;;  %v10754_v9 = vpop.eup %10753 }
 0x25b   : > { %v5113_v63 = vcombine.low %v5105_v51, %v5112_v8  ;;  %v5122_v26 = vrot.slane %v5114_v20, %v11085_v7  ;;  %v10756_v23 = vpop.eup %10755  ;;  %v4159_v36 = vmul.f32 %v10754_v9, %v12815_v22  ;;  %10773 = vrcp.f32 %v3724_v31 }
 0x25c   : > { %v10758_v24 = vpop.eup %10757  ;;  %v3721_v37 = vadd.f32 1.0, %v10756_v23  ;;  %v4370_v31 = vmul.f32 %v11383_v33, %v4151_v12 }
 0x25d   : > { %v5130_v6 = vcombine.low %v5122_v26, %v5129_v3  ;;  %5270 = vst.msk [vmem:[#allocation2 + $0x168] sm:$0xff] %vm603_vm5, %v5113_v63  ;;  %v10760_v61 = vpop.eup %10759  ;;  %v4378_v21 = vmul.f32 %v11389_v38, %v4159_v36  ;;  %v3722_v17 = vadd.f32 1.0, %v10758_v24 }
 0x25e   : > { %v10762_v57 = vpop.eup %10761  ;;  %v3723_v16 = vadd.f32 1.0, %v10760_v61  ;;  %10775 = vrcp.f32 %v3721_v37 }
 0x25f   : > { %5271 = vst.msk [vmem:[#allocation2 + $0x170] sm:$0xff] %vm603_vm5, %v5130_v6  ;;  %v10764_v27 = vpop.eup %10763  ;;  %v5178_v59 = vrot.slane %v4378_v21, %v11085_v7  ;;  %10777 = vrcp.f32 %v3722_v17  ;;  %v5377_v22 = vadd.f32 1.0, %v10762_v57 }
 0x260   : > { %v10766_v25 = vpop.eup %10765  ;;  %10779 = vrcp.f32 %v3723_v16  ;;  %v5378_v4 = vadd.f32 1.0, %v10764_v27 }
 0x261   : > { %v10768_v34 = vpop.eup %10767  ;;  %5275 = vst.msk [vmem:[#allocation2 + $0x190] sm:$0x3] %vm606_vm6, %v5178_v59  ;;  %10781 = vrcp.f32 %v5377_v22  ;;  %v5379_v38 = vadd.f32 1.0, %v10766_v25 }
 0x262   : > { %v10770_v51 = vpop.eup %10769  ;;  %10783 = vrcp.f32 %v5378_v4  ;;  %v4157_v14 = vmul.f32 %v10768_v34, %v12809_v19  ;;  %v14021_v34 = vld [vmem:[#allocation6_spill] sm:$0xff] }
 0x263   : > { %10785 = vrcp.f32 %v5379_v38  ;;  %v4158_v41 = vmul.f32 %v10770_v51, %v12804_v62 }
 0x264   : > { %v10772_v10 = vpop.eup %10771  ;;  %v12952_v8 = vld [vmem:[#allocation2 + $0x168] sm:$0xff]  ;;  %v4376_v36 = vmul.f32 %v11399_v44, %v4157_v14 }
 0x265   : > { %v4152_v20 = vmul.f32 %v10772_v10, %v12868_v52  ;;  %9456 = vmatprep.mubr.msk.f32.mxu1 %vm603_vm5, %v12952_v8  ;;  %v10774_v26 = vpop.eup %10773  ;;  %v4377_v24 = vmul.f32 %v11401_v47, %v4158_v41  ;;  %v13014_v41 = vld [vmem:[#allocation2 + $0x31] sm:$0xff] }
 0x266   : > { %v12960_v9 = vld [vmem:[#allocation2 + $0x170] sm:$0xff]  ;;  %v4156_v52 = vmul.f32 %v10774_v26, %v12799_v45  ;;  %v5410_v26 = vld [vmem:[#allocation2 + $0x8] sm:$0xff] }
 0x267   : > { %v12962_v3 = vld [vmem:[#allocation2 + $0x169] sm:$0xff]  ;;  %v12964_v63 = vld [vmem:[#allocation2 + $0x171] sm:$0xff]  ;;  %v4371_v23 = vmul.f32 %v11369_v28, %v4152_v20  ;;  %9457 = vmatmul.mubr.msk.f32.gmra.mrb[68].mxu1 %vm603_vm5, %v12960_v9  ;;  %v5156_v59 = vcombine.low %v4376_v36, %v4377_v24  ;;  %v5409_v20 = vld [vmem:[#allocation2] sm:$0xff] }
 0x268   : > { %9656 = vmatprep.mubr.msk.f32.mxu0 %vm603_vm5, %v12962_v3  ;;  %v10776_v33 = vpop.eup %10775  ;;  %v4375_v44 = vmul.f32 %v11391_v2, %v4156_v52  ;;  %v10919_v52 = vld [vmem:[%s13955_s5 + $0x4] sm:$0x3]  ;;  %v13038_v36 = vld [vmem:[#allocation2 + $0x49] sm:$0xff] }
 0x269   : > { %9657 = vmatmul.mubr.msk.f32.gmra.mrb[36].mxu0 %vm603_vm5, %v12964_v63  ;;  %v5138_v62 = vcombine.low %v4370_v31, %v4371_v23  ;;  %v10778_v19 = vpop.eup %10777  ;;  %v4153_v28 = vmul.f32 %v10776_v33, %v12882_v18  ;;  %v5170_v2 = vrot.slane %v5156_v59, %v11085_v7  ;;  %v13022_v23 = vld [vmem:[%s13955_s5 + $0xa] sm:$0x3]  ;;  %v10917_v33 = vld [vmem:[#allocation2 + $0x18] sm:$0xff]  ;;  %v10921_v24 = vld [vmem:[#allocation2 + $0x20] sm:$0xff] }
 0x26a   : > { %v10780_v6 = vpop.eup %10779  ;;  %v4154_v37 = vmul.f32 %v10778_v19, %v12874_v1  ;;  %v14020_v1 = vld [vmem:[#allocation3_spill] sm:$0xff]  ;;  %v13032_v19 = vld [vmem:[%s13955_s5 + $0x2] sm:$0x3]  ;;  %v13097_v59 = vld [vmem:[#allocation2 + $0x78] sm:$0xff] }
 0x26b   : > { %v10782_v61 = vpop.eup %10781  ;;  %v4155_v21 = vmul.f32 %v10780_v6, %v12887_v48  ;;  %v4372_v17 = vmul.f32 %v11372_v29, %v4153_v28  ;;  %v5146_v4 = vrot.slane %v5138_v62, %v11085_v7  ;;  %v13025_v62 = vld [vmem:[#allocation2 + $0x39] sm:$0xff]  ;;  %v13049_v28 = vld [vmem:[#allocation2 + $0x30] sm:$0xff] }
 0x26c   : > { %v10784_v57 = vpop.eup %10783  ;;  %v4373_v16 = vmul.f32 %v11380_v32, %v4154_v37  ;;  %v5386_v27 = vmul.f32 %v10782_v61, %v12842_v49  ;;  %v13053_v6 = vld [vmem:[#allocation2 + $0x51] sm:$0xff]  ;;  %v13065_v61 = vld [vmem:[#allocation2 + $0x48] sm:$0xff] }
 0x26d   : > { %v10786_v45 = vpop.eup %10785  ;;  %v4374_v47 = vmul.f32 %v11385_v35, %v4155_v21  ;;  %v5387_v18 = vmul.f32 %v10784_v57, %v12904_v53  ;;  %v13061_v37 = vld [vmem:[#allocation2 + $0x38] sm:$0xff]  ;;  %v13069_v21 = vld [vmem:[#allocation2 + $0x69] sm:$0xff] }
 0x26e   : > { %v5139_v22 = vcombine.low %v4372_v17, %v4373_v16  ;;  %v5389_v25 = vmul.f32 %v14020_v1, %v5386_v27  ;;  %v5388_v48 = vmul.f32 %v10786_v45, %v12909_v11  ;;  %v13073_v17 = vld [vmem:[#allocation2 + $0x79] sm:$0xff]  ;;  %v13077_v57 = vld [vmem:[#allocation2 + $0x50] sm:$0xff]  ;;  %v13085_v27 = vld [vmem:[#allocation2 + $0x81] sm:$0xff] }
 0x26f   : > { %v5155_v12 = vcombine.low %v4374_v47, %v4375_v44  ;;  %v5394_v29 = vmul.f32 0.0, %v5387_v18  ;;  %v13081_v16 = vld [vmem:[#allocation2 + $0x60] sm:$0xff]  ;;  %v13089_v45 = vld [vmem:[#allocation2 + $0x91] sm:$0xff]  ;;  %v13093_v44 = vld [vmem:[#allocation2 + $0x68] sm:$0xff] }
 0x270   : > { %v5153_v32 = vrot.slane %v5139_v22, %v11085_v7  ;;  %v5393_v49 = vmul.f32 0.0, %v5389_v25  ;;  %v5391_v38 = vmul.f32 %v14021_v34, %v5388_v48  ;;  %v13101_v47 = vld [vmem:[#allocation2 + $0x99] sm:$0xff]  ;;  %v13105_v18 = vld [vmem:[#allocation2 + $0xa9] sm:$0xff]  ;;  %v13117_v25 = vld [vmem:[#allocation2 + $0xb1] sm:$0xff] }
 0x271   : > { %v5163_v35 = vrot.slane %v5155_v12, %v11085_v7  ;;  %5398 = vst.msk [vmem:[#allocation2 + $0x1a0] sm:$0xff] %vm603_vm5, %v5394_v29  ;;  %v13109_v22 = vld [vmem:[#allocation2 + $0x80] sm:$0xff]  ;;  %v13113_v1 = vld [vmem:[#allocation2 + $0x90] sm:$0xff]  ;;  %v13125_v12 = vld [vmem:[#allocation2 + $0x98] sm:$0xff] }
 0x272   : > { %v5154_v53 = vcombine.low %v5146_v4, %v5153_v32  ;;  %5397 = vst.msk [vmem:[#allocation2 + $0x198] sm:$0xff] %vm603_vm5, %v5393_v49  ;;  %v5395_v51 = vmul.f32 0.0, %v5391_v38  ;;  %v13121_v48 = vld [vmem:[#allocation2 + $0xc1] sm:$0xff]  ;;  %v13133_v4 = vld [vmem:[#allocation2 + $0xc9] sm:$0xff]  ;;  %v13137_v32 = vld [vmem:[#allocation2 + $0xd9] sm:$0xff] }
 0x273   : > { %v5171_v11 = vcombine.low %v5163_v35, %v5170_v2  ;;  %v13129_v29 = vld [vmem:[#allocation2 + $0xa8] sm:$0xff]  ;;  %v13141_v49 = vld [vmem:[#allocation2 + $0xb0] sm:$0xff]  ;;  %v13145_v34 = vld [vmem:[#allocation2 + $0xc0] sm:$0xff] }
 0x274   : > { %5273 = vst.msk [vmem:[#allocation2 + $0x180] sm:$0xff] %vm603_vm5, %v5154_v53  ;;  %v13149_v38 = vld [vmem:[#allocation2 + $0xe1] sm:$0xff]  ;;  %v13153_v2 = vld [vmem:[#allocation2 + $0xf1] sm:$0xff] }
 0x275   : > { %5399 = vst.msk [vmem:[#allocation2 + $0x1a8] sm:$0x3] %vm606_vm6, %v5395_v51  ;;  %v13157_v35 = vld [vmem:[#allocation2 + $0xc8] sm:$0xff]  ;;  %v13161_v53 = vld [vmem:[#allocation2 + $0xd8] sm:$0xff] }
 0x276   : > { %5274 = vst.msk [vmem:[#allocation2 + $0x188] sm:$0xff] %vm603_vm5, %v5171_v11  ;;  %v13165_v51 = vld [vmem:[#allocation2 + $0xf9] sm:$0xff] }
 0x277   : > { %v13171_v11 = vld [vmem:[#allocation2 + $0xe0] sm:$0xff] }
 0x27b   : > { %v12997_v10 = vld [vmem:[#allocation2 + $0x180] sm:$0xff] }
 0x27c   : > { %9459 = vmatprep.mubr.msk.f32.mxu1 %vm603_vm5, %v12997_v10 }
 0x27d   : > { %v13001_v7 = vld [vmem:[#allocation2 + $0x188] sm:$0xff] }
 0x27e   : > { %v13003_v31 = vld [vmem:[#allocation2 + $0x181] sm:$0xff]  ;;  %v13005_v14 = vld [vmem:[#allocation2 + $0x189] sm:$0xff]  ;;  %9460 = vmatmul.mubr.msk.f32.gmra.mrb[70].mxu1 %vm603_vm5, %v13001_v7 }
 0x27f   : > { %9659 = vmatprep.mubr.msk.f32.mxu0 %vm603_vm5, %v13003_v31  ;;  %9464 = vmatprep.mubr.msk.f32.mxu1 %vm603_vm5, %v5409_v20  ;;  %v13175_v20 = vld [vmem:[#allocation2 + $0xf0] sm:$0xff] }
 0x280   : > { %9660 = vmatmul.mubr.msk.f32.gmra.mrb[38].mxu0 %vm603_vm5, %v13005_v14 }
 0x281   : > { %9664 = vmatprep.mubr.msk.f32.mxu0 %vm603_vm5, %v13014_v41 }
 0x282   : > { %9465 = vmatmul.mubr.msk.f32.vlgmr.msra.gmra.mrb[40].mxu1 %vm603_vm5, %v5410_v26  ;;  %v13183_v26 = vld [vmem:[#allocation2 + $0xf8] sm:$0xff] }
 0x283   : > { %9467 = vmatprep.mubr.msk.f32.mxu1 %vm603_vm5, %v10917_v33  ;;  %9513 = vmatpush3.msk.msra.mxu1 %vm5541_vm7, %v12831_v39  ;;  %v13057_v39 = vld [vmem:[#allocation2 + $0x61] sm:$0xff] }
 0x284   : > { %9665 = vmatmul.mubr.msk.f32.vlgmr.msra.gmra.mrb[8].mxu0 %vm603_vm5, %v13025_v62  ;;  %9562 = vmatprep.subr.msk.mxu1 %vm5541_vm7, %v13032_v19  ;;  %v13266_v33 = vld [vmem:[#allocation2 + $0x3a] sm:$0xff] }
 0x285   : > { %9713 = vmatpush3.msk.msra.mxu0 %vm5541_vm7, %v10919_v52  ;;  %9667 = vmatprep.mubr.msk.f32.mxu0 %vm603_vm5, %v13038_v36  ;;  %v13278_v52 = vld [vmem:[#allocation2 + $0x52] sm:$0xff] }
 0x286   : > { %9762 = vmatprep.subr.msk.mxu0 %vm5541_vm7, %v13022_v23  ;;  %9468 = vmatmul.mubr.msk.f32.gmra.mrb[42].mxu1 %vm603_vm5, %v10921_v24  ;;  %v13284_v24 = vld [vmem:[#allocation2 + $0x62] sm:$0xff] }
 0x287   : > { %9470 = vmatprep.mubr.msk.f32.mxu1 %vm603_vm5, %v13049_v28 }
 0x288   : > { %9668 = vmatmul.mubr.msk.f32.gmra.mrb[10].mxu0 %vm603_vm5, %v13053_v6 }
 0x289   : > { %9670 = vmatprep.mubr.msk.f32.mxu0 %vm603_vm5, %v13057_v39 }
 0x28a   : > { %9471 = vmatmul.mubr.msk.f32.gmra.mrb[44].mxu1 %vm603_vm5, %v13061_v37 }
 0x28b   : > { %9473 = vmatprep.mubr.msk.f32.mxu1 %vm603_vm5, %v13065_v61 }
 0x28c   : > { %9671 = vmatmul.mubr.msk.f32.gmra.mrb[12].mxu0 %vm603_vm5, %v13069_v21 }
 0x28d   : > { %9673 = vmatprep.mubr.msk.f32.mxu0 %vm603_vm5, %v13073_v17 }
 0x28e   : > { %9474 = vmatmul.mubr.msk.f32.gmra.mrb[46].mxu1 %vm603_vm5, %v13077_v57 }
 0x28f   : > { %9476 = vmatprep.mubr.msk.f32.mxu1 %vm603_vm5, %v13081_v16 }
 0x290   : > { %9674 = vmatmul.mubr.msk.f32.gmra.mrb[14].mxu0 %vm603_vm5, %v13085_v27 }
 0x291   : > { %9676 = vmatprep.mubr.msk.f32.mxu0 %vm603_vm5, %v13089_v45 }
 0x292   : > { %9477 = vmatmul.mubr.msk.f32.gmra.mrb[48].mxu1 %vm603_vm5, %v13093_v44 }
 0x293   : > { %9479 = vmatprep.mubr.msk.f32.mxu1 %vm603_vm5, %v13097_v59 }
 0x294   : > { %9677 = vmatmul.mubr.msk.f32.gmra.mrb[16].mxu0 %vm603_vm5, %v13101_v47 }
 0x295   : > { %9679 = vmatprep.mubr.msk.f32.mxu0 %vm603_vm5, %v13105_v18 }
 0x296   : > { %9480 = vmatmul.mubr.msk.f32.gmra.mrb[50].mxu1 %vm603_vm5, %v13109_v22 }
 0x297   : > { %9482 = vmatprep.mubr.msk.f32.mxu1 %vm603_vm5, %v13113_v1 }
 0x298   : > { %9680 = vmatmul.mubr.msk.f32.gmra.mrb[18].mxu0 %vm603_vm5, %v13117_v25 }
 0x299   : > { %9682 = vmatprep.mubr.msk.f32.mxu0 %vm603_vm5, %v13121_v48 }
 0x29a   : > { %9483 = vmatmul.mubr.msk.f32.gmra.mrb[52].mxu1 %vm603_vm5, %v13125_v12 }
 0x29b   : > { %9485 = vmatprep.mubr.msk.f32.mxu1 %vm603_vm5, %v13129_v29 }
 0x29c   : > { %9683 = vmatmul.mubr.msk.f32.gmra.mrb[20].mxu0 %vm603_vm5, %v13133_v4 }
 0x29d   : > { %9685 = vmatprep.mubr.msk.f32.mxu0 %vm603_vm5, %v13137_v32 }
 0x29e   : > { %9486 = vmatmul.mubr.msk.f32.gmra.mrb[54].mxu1 %vm603_vm5, %v13141_v49 }
 0x29f   : > { %9488 = vmatprep.mubr.msk.f32.mxu1 %vm603_vm5, %v13145_v34 }
 0x2a0   : > { %9686 = vmatmul.mubr.msk.f32.gmra.mrb[22].mxu0 %vm603_vm5, %v13149_v38 }
 0x2a1   : > { %9688 = vmatprep.mubr.msk.f32.mxu0 %vm603_vm5, %v13153_v2 }
 0x2a2   : > { %9489 = vmatmul.mubr.msk.f32.gmra.mrb[56].mxu1 %vm603_vm5, %v13157_v35 }
 0x2a3   : > { %9491 = vmatprep.mubr.msk.f32.mxu1 %vm603_vm5, %v13161_v53 }
 0x2a4   : > { %9689 = vmatmul.mubr.msk.f32.gmra.mrb[24].mxu0 %vm603_vm5, %v13165_v51 }
 0x2a5   : > { %9691 = vmatprep.mubr.msk.f32.mxu0 %vm603_vm5, %v12644_v13  ;;  %v13187_v13 = vld [vmem:[#allocation2 + $0x108] sm:$0xff] }
 0x2a6   : > { %9492 = vmatmul.mubr.msk.f32.gmra.mrb[58].mxu1 %vm603_vm5, %v13171_v11 }
 0x2a7   : > { %9494 = vmatprep.mubr.msk.f32.mxu1 %vm603_vm5, %v13175_v20 }
 0x2a8   : > { %9692 = vmatmul.mubr.msk.f32.gmra.mrb[26].mxu0 %vm603_vm5, %v12646_v30  ;;  %v6305_v30 = vld [vmem:[#allocation2 + $0x1a1] sm:$0xff] }
 0x2a9   : > { %9694 = vmatprep.mubr.msk.f32.mxu0 %vm603_vm5, %v12729_v55  ;;  %v7195_v55 = vld [vmem:[#allocation2 + $0xa] sm:$0xff] }
 0x2aa   : > { %9495 = vmatmul.mubr.msk.f32.gmra.mrb[60].mxu1 %vm603_vm5, %v13183_v26 }
 0x2ab   : > { %9497 = vmatprep.mubr.msk.f32.mxu1 %vm603_vm5, %v13187_v13 }
 0x2ac   : > { %9695 = vmatmul.mubr.msk.f32.gmra.mrb[28].mxu0 %vm603_vm5, %v12742_v40  ;;  %v13237_v40 = vld [vmem:[%s13955_s5 + $0x10] sm:$0x3] }
 0x2ad   : > { %9697 = vmatprep.mubr.msk.f32.mxu0 %vm603_vm5, %v12851_v5 }
 0x2ae   : > { %9498 = vmatmul.mubr.msk.f32.gmra.mrb[62].mxu1 %vm603_vm5, %v12642_v56  ;;  %v6304_v56 = vld [vmem:[#allocation2 + $0x199] sm:$0xff] }
 0x2af   : > { %9500 = vmatprep.mubr.msk.f32.mxu1 %vm603_vm5, %v12680_v58  ;;  %v7194_v58 = vld [vmem:[#allocation2 + $0x2] sm:$0xff] }
 0x2b0   : > { %9698 = vmatmul.mubr.msk.f32.gmra.mrb[30].mxu0 %vm603_vm5, %v12853_v50 }
 0x2b1   : > { %9700 = vmatprep.mubr.msk.f32.mxu0 %vm603_vm5, %v12923_v46 }
 0x2b2   : > { %9501 = vmatmul.mubr.msk.f32.gmra.mrb[64].mxu1 %vm603_vm5, %v12727_v42 }
 0x2b3   : > { %9503 = vmatprep.mubr.msk.f32.mxu1 %vm603_vm5, %v12721_v43 }
 0x2b4   : > { %9701 = vmatmul.mubr.msk.f32.gmra.mrb[32].mxu0 %vm603_vm5, %v12925_v54 }
 0x2b5   : > { %9703 = vmatprep.mubr.msk.f32.mxu0 %vm603_vm5, %v12962_v3 }
 0x2b6   : > { %9504 = vmatmul.mubr.msk.f32.gmra.mrb[66].mxu1 %vm603_vm5, %v12849_v0 }
 0x2b7   : > { %9506 = vmatprep.mubr.msk.f32.mxu1 %vm603_vm5, %v12911_v15 }
 0x2b8   : > { %9704 = vmatmul.mubr.msk.f32.gmra.mrb[34].mxu0 %vm603_vm5, %v12964_v63 }
 0x2b9   : > { %9706 = vmatprep.mubr.msk.f32.mxu0 %vm603_vm5, %v13003_v31  ;;  %v13242_v31 = vld [vmem:[#allocation2 + $0x1a] sm:$0xff] }
 0x2ba   : > { %9507 = vmatmul.mubr.msk.f32.gmra.mrb[68].mxu1 %vm603_vm5, %v12921_v60 }
 0x2bb   : > { %9509 = vmatprep.mubr.msk.f32.mxu1 %vm603_vm5, %v12952_v8 }
 0x2bc   : > { %9707 = vmatmul.mubr.msk.f32.gmra.mrb[36].mxu0 %vm603_vm5, %v13005_v14  ;;  %v13254_v14 = vld [vmem:[#allocation2 + $0x22] sm:$0xff] }
 0x2bd   : > { %9709 = vmatprep.mubr.msk.f32.mxu0 %vm603_vm5, %v6304_v56  ;;  %v13418_v56 = vld [vmem:[#allocation2 + $0x172] sm:$0xff] }
 0x2be   : > { %9510 = vmatmul.mubr.msk.f32.gmra.mrb[70].mxu1 %vm603_vm5, %v12960_v9 }
 0x2bf   : > { %9514 = vmatprep.mubr.msk.f32.mxu1 %vm603_vm5, %v13049_v28  ;;  %v13290_v28 = vld [vmem:[#allocation2 + $0x6a] sm:$0xff] }
 0x2c0   : > { %9710 = vmatmul.mubr.msk.f32.gmra.mrb[38].mxu0 %vm603_vm5, %v6305_v30  ;;  %v10958_v30 = vld [vmem:[#allocation2 + $0x19] sm:$0xff] }
 0x2c1   : > { %9714 = vmatprep.mubr.msk.f32.mxu0 %vm603_vm5, %v7194_v58  ;;  %v10959_v58 = vld [vmem:[#allocation2 + $0x21] sm:$0xff] }
 0x2c2   : > { %9515 = vmatmul.mubr.msk.f32.vlgmr.msra.gmra.mrb[40].mxu1 %vm603_vm5, %v13061_v37  ;;  %v13296_v37 = vld [vmem:[#allocation2 + $0x7a] sm:$0xff] }
 0x2c3   : > { %9517 = vmatprep.mubr.msk.f32.mxu1 %vm603_vm5, %v13065_v61  ;;  %9563 = vmatpush3.msk.msra.mxu1 %vm5541_vm7, %v13032_v19  ;;  %v13272_v19 = vld [vmem:[#allocation2 + $0x4a] sm:$0xff]  ;;  %v13302_v61 = vld [vmem:[#allocation2 + $0x82] sm:$0xff] }
 0x2c4   : > { %9715 = vmatmul.mubr.msk.f32.vlgmr.msra.gmra.mrb[8].mxu0 %vm603_vm5, %v7195_v55 }
 0x2c5   : > { %9763 = vmatpush3.msk.msra.mxu0 %vm5541_vm7, %v13022_v23  ;;  %9717 = vmatprep.mubr.msk.f32.mxu0 %vm603_vm5, %v13242_v31  ;;  %v13260_v23 = vld [vmem:[#allocation2 + $0x32] sm:$0xff] }
 0x2c6   : > { %9812 = vmatprep.subr.msk.mxu0 %vm5541_vm7, %v13237_v40  ;;  %9518 = vmatmul.mubr.msk.f32.gmra.mrb[42].mxu1 %vm603_vm5, %v13077_v57  ;;  %v13308_v57 = vld [vmem:[#allocation2 + $0x92] sm:$0xff] }
 0x2c7   : > { %9520 = vmatprep.mubr.msk.f32.mxu1 %vm603_vm5, %v13081_v16  ;;  %v13314_v16 = vld [vmem:[#allocation2 + $0x9a] sm:$0xff] }
 0x2c8   : > { %9718 = vmatmul.mubr.msk.f32.gmra.mrb[10].mxu0 %vm603_vm5, %v13254_v14 }
 0x2c9   : > { %9720 = vmatprep.mubr.msk.f32.mxu0 %vm603_vm5, %v13260_v23 }
 0x2ca   : > { %9521 = vmatmul.mubr.msk.f32.gmra.mrb[44].mxu1 %vm603_vm5, %v13093_v44  ;;  %v13320_v44 = vld [vmem:[#allocation2 + $0xaa] sm:$0xff] }
 0x2cb   : > { %9523 = vmatprep.mubr.msk.f32.mxu1 %vm603_vm5, %v13097_v59  ;;  %v13326_v59 = vld [vmem:[#allocation2 + $0xb2] sm:$0xff] }
 0x2cc   : > { %9721 = vmatmul.mubr.msk.f32.gmra.mrb[12].mxu0 %vm603_vm5, %v13266_v33 }
 0x2cd   : > { %9723 = vmatprep.mubr.msk.f32.mxu0 %vm603_vm5, %v13272_v19 }
 0x2ce   : > { %9524 = vmatmul.mubr.msk.f32.gmra.mrb[46].mxu1 %vm603_vm5, %v13109_v22  ;;  %v13332_v22 = vld [vmem:[#allocation2 + $0xc2] sm:$0xff] }
 0x2cf   : > { %9526 = vmatprep.mubr.msk.f32.mxu1 %vm603_vm5, %v13113_v1  ;;  %v13338_v1 = vld [vmem:[#allocation2 + $0xca] sm:$0xff] }
 0x2d0   : > { %9724 = vmatmul.mubr.msk.f32.gmra.mrb[14].mxu0 %vm603_vm5, %v13278_v52 }
 0x2d1   : > { %9726 = vmatprep.mubr.msk.f32.mxu0 %vm603_vm5, %v13284_v24 }
 0x2d2   : > { %9527 = vmatmul.mubr.msk.f32.gmra.mrb[48].mxu1 %vm603_vm5, %v13125_v12  ;;  %v13344_v12 = vld [vmem:[#allocation2 + $0xda] sm:$0xff] }
 0x2d3   : > { %9529 = vmatprep.mubr.msk.f32.mxu1 %vm603_vm5, %v13129_v29  ;;  %v10956_v29 = vld [vmem:[#allocation2 + $0x110] sm:$0xff] }
 0x2d4   : > { %9727 = vmatmul.mubr.msk.f32.gmra.mrb[16].mxu0 %vm603_vm5, %v13290_v28 }
 0x2d5   : > { %9729 = vmatprep.mubr.msk.f32.mxu0 %vm603_vm5, %v13296_v37 }
 0x2d6   : > { %9530 = vmatmul.mubr.msk.f32.gmra.mrb[50].mxu1 %vm603_vm5, %v13141_v49  ;;  %v13349_v49 = vld [vmem:[#allocation2 + $0xe2] sm:$0xff] }
 0x2d7   : > { %9532 = vmatprep.mubr.msk.f32.mxu1 %vm603_vm5, %v13145_v34  ;;  %v10957_v34 = vld [vmem:[#allocation2 + $0x120] sm:$0xff] }
 0x2d8   : > { %9730 = vmatmul.mubr.msk.f32.gmra.mrb[18].mxu0 %vm603_vm5, %v13302_v61 }
 0x2d9   : > { %9732 = vmatprep.mubr.msk.f32.mxu0 %vm603_vm5, %v13308_v57 }
 0x2da   : > { %9533 = vmatmul.mubr.msk.f32.gmra.mrb[52].mxu1 %vm603_vm5, %v13157_v35  ;;  %v13354_v35 = vld [vmem:[#allocation2 + $0xf2] sm:$0xff] }
 0x2db   : > { %9535 = vmatprep.mubr.msk.f32.mxu1 %vm603_vm5, %v13161_v53  ;;  %v13360_v53 = vld [vmem:[#allocation2 + $0xfa] sm:$0xff] }
 0x2dc   : > { %9733 = vmatmul.mubr.msk.f32.gmra.mrb[20].mxu0 %vm603_vm5, %v13314_v16 }
 0x2dd   : > { %9735 = vmatprep.mubr.msk.f32.mxu0 %vm603_vm5, %v13320_v44 }
 0x2de   : > { %9536 = vmatmul.mubr.msk.f32.gmra.mrb[54].mxu1 %vm603_vm5, %v13171_v11  ;;  %v13366_v11 = vld [vmem:[#allocation2 + $0x10a] sm:$0xff] }
 0x2df   : > { %9538 = vmatprep.mubr.msk.f32.mxu1 %vm603_vm5, %v13175_v20  ;;  %v13372_v20 = vld [vmem:[#allocation2 + $0x112] sm:$0xff] }
 0x2e0   : > { %9736 = vmatmul.mubr.msk.f32.gmra.mrb[22].mxu0 %vm603_vm5, %v13326_v59 }
 0x2e1   : > { %9738 = vmatprep.mubr.msk.f32.mxu0 %vm603_vm5, %v13332_v22 }
 0x2e2   : > { %9539 = vmatmul.mubr.msk.f32.gmra.mrb[56].mxu1 %vm603_vm5, %v13183_v26  ;;  %v13408_v26 = vld [vmem:[#allocation2 + $0x15a] sm:$0xff] }
 0x2e3   : > { %9541 = vmatprep.mubr.msk.f32.mxu1 %vm603_vm5, %v13187_v13  ;;  %v6270_v13 = vld [vmem:[#allocation2 + $0x1] sm:$0xff] }
 0x2e4   : > { %9739 = vmatmul.mubr.msk.f32.gmra.mrb[24].mxu0 %vm603_vm5, %v13338_v1 }
 0x2e5   : > { %9741 = vmatprep.mubr.msk.f32.mxu0 %vm603_vm5, %v13344_v12 }
 0x2e6   : > { %9542 = vmatmul.mubr.msk.f32.gmra.mrb[58].mxu1 %vm603_vm5, %v10956_v29 }
 0x2e7   : > { %9544 = vmatprep.mubr.msk.f32.mxu1 %vm603_vm5, %v10957_v34 }
 0x2e8   : > { %9742 = vmatmul.mubr.msk.f32.gmra.mrb[26].mxu0 %vm603_vm5, %v13349_v49 }
 0x2e9   : > { %9744 = vmatprep.mubr.msk.f32.mxu0 %vm603_vm5, %v13354_v35 }
 0x2ea   : > { %9545 = vmatmul.mubr.msk.f32.gmra.mrb[60].mxu1 %vm603_vm5, %v12727_v42  ;;  %v13384_v42 = vld [vmem:[#allocation2 + $0x12a] sm:$0xff] }
 0x2eb   : > { %9547 = vmatprep.mubr.msk.f32.mxu1 %vm603_vm5, %v12721_v43  ;;  %v13378_v43 = vld [vmem:[#allocation2 + $0x122] sm:$0xff] }
 0x2ec   : > { %9745 = vmatmul.mubr.msk.f32.gmra.mrb[28].mxu0 %vm603_vm5, %v13360_v53 }
 0x2ed   : > { %9747 = vmatprep.mubr.msk.f32.mxu0 %vm603_vm5, %v13366_v11 }
 0x2ee   : > { %9548 = vmatmul.mubr.msk.f32.gmra.mrb[62].mxu1 %vm603_vm5, %v12849_v0  ;;  %v13390_v0 = vld [vmem:[#allocation2 + $0x13a] sm:$0xff] }
 0x2ef   : > { %9550 = vmatprep.mubr.msk.f32.mxu1 %vm603_vm5, %v12911_v15  ;;  %v13396_v15 = vld [vmem:[#allocation2 + $0x142] sm:$0xff] }
 0x2f0   : > { %9748 = vmatmul.mubr.msk.f32.gmra.mrb[30].mxu0 %vm603_vm5, %v13372_v20 }
 0x2f1   : > { %9750 = vmatprep.mubr.msk.f32.mxu0 %vm603_vm5, %v13378_v43 }
 0x2f2   : > { %9551 = vmatmul.mubr.msk.f32.gmra.mrb[64].mxu1 %vm603_vm5, %v12921_v60  ;;  %v13402_v60 = vld [vmem:[#allocation2 + $0x152] sm:$0xff] }
 0x2f3   : > { %9553 = vmatprep.mubr.msk.f32.mxu1 %vm603_vm5, %v12952_v8  ;;  %v5443_v8 = vld [vmem:[#allocation2 + $0x198] sm:$0xff] }
 0x2f4   : > { %9751 = vmatmul.mubr.msk.f32.gmra.mrb[32].mxu0 %vm603_vm5, %v13384_v42 }
 0x2f5   : > { %9753 = vmatprep.mubr.msk.f32.mxu0 %vm603_vm5, %v13390_v0 }
 0x2f6   : > { %9554 = vmatmul.mubr.msk.f32.gmra.mrb[66].mxu1 %vm603_vm5, %v12960_v9  ;;  %v13413_v9 = vld [vmem:[#allocation2 + $0x16a] sm:$0xff] }
 0x2f7   : > { %9556 = vmatprep.mubr.msk.f32.mxu1 %vm603_vm5, %v12997_v10  ;;  %v5444_v10 = vld [vmem:[#allocation2 + $0x1a0] sm:$0xff] }
 0x2f8   : > { %9754 = vmatmul.mubr.msk.f32.gmra.mrb[34].mxu0 %vm603_vm5, %v13396_v15 }
 0x2f9   : > { %9756 = vmatprep.mubr.msk.f32.mxu0 %vm603_vm5, %v13402_v60 }
 0x2fa   : > { %9557 = vmatmul.mubr.msk.f32.gmra.mrb[68].mxu1 %vm603_vm5, %v13001_v7  ;;  %v6271_v7 = vld [vmem:[#allocation2 + $0x9] sm:$0xff] }
 0x2fb   : > { %9559 = vmatprep.mubr.msk.f32.mxu1 %vm603_vm5, %v5443_v8 }
 0x2fc   : > { %9757 = vmatmul.mubr.msk.f32.gmra.mrb[36].mxu0 %vm603_vm5, %v13408_v26 }
 0x2fd   : > { %9759 = vmatprep.mubr.msk.f32.mxu0 %vm603_vm5, %v13413_v9 }
 0x2fe   : > { %9560 = vmatmul.mubr.msk.f32.gmra.mrb[70].mxu1 %vm603_vm5, %v5444_v10 }
 0x2ff   : > { %9564 = vmatprep.mubr.msk.f32.mxu1 %vm603_vm5, %v6270_v13 }
 0x300   : > { %9760 = vmatmul.mubr.msk.f32.gmra.mrb[38].mxu0 %vm603_vm5, %v13418_v56 }
 0x301   : > { %9764 = vmatprep.mubr.msk.f32.mxu0 %vm603_vm5, %v13242_v31 }
 0x302   : > { %9565 = vmatmul.mubr.msk.f32.vlgmr.msra.gmra.mrb[40].mxu1 %vm603_vm5, %v6271_v7 }
 0x303   : > { %9567 = vmatprep.mubr.msk.f32.mxu1 %vm603_vm5, %v10958_v30 }
 0x304   : > { %9765 = vmatmul.mubr.msk.f32.vlgmr.msra.gmra.mrb[8].mxu0 %vm603_vm5, %v13254_v14 }
 0x305   : > { %9813 = vmatpush3.msk.msra.mxu0 %vm5541_vm7, %v13237_v40  ;;  %9767 = vmatprep.mubr.msk.f32.mxu0 %vm603_vm5, %v13260_v23 }
 0x306   : > { %9568 = vmatmul.mubr.msk.f32.gmra.mrb[42].mxu1 %vm603_vm5, %v10959_v58 }
 0x307   : > { %9570 = vmatprep.mubr.msk.f32.mxu1 %vm603_vm5, %v13014_v41  ;;  %v10960_v41 = vld [vmem:[#allocation2 + $0x109] sm:$0xff] }
 0x308   : > { %9768 = vmatmul.mubr.msk.f32.gmra.mrb[10].mxu0 %vm603_vm5, %v13266_v33 }
 0x309   : > { %9770 = vmatprep.mubr.msk.f32.mxu0 %vm603_vm5, %v13272_v19 }
 0x30a   : > { %9571 = vmatmul.mubr.msk.f32.gmra.mrb[44].mxu1 %vm603_vm5, %v13025_v62  ;;  %v10961_v62 = vld [vmem:[#allocation2 + $0x111] sm:$0xff] }
 0x30b   : > { %9573 = vmatprep.mubr.msk.f32.mxu1 %vm603_vm5, %v13038_v36  ;;  %v10962_v36 = vld [vmem:[#allocation2 + $0x121] sm:$0xff] }
 0x30c   : > { %9771 = vmatmul.mubr.msk.f32.gmra.mrb[12].mxu0 %vm603_vm5, %v13278_v52 }
 0x30d   : > { %9773 = vmatprep.mubr.msk.f32.mxu0 %vm603_vm5, %v13284_v24 }
 0x30e   : > { %9574 = vmatmul.mubr.msk.f32.gmra.mrb[46].mxu1 %vm603_vm5, %v13053_v6  ;;  %v10963_v6 = vld [vmem:[#allocation2 + $0x129] sm:$0xff] }
 0x30f   : > { %9576 = vmatprep.mubr.msk.f32.mxu1 %vm603_vm5, %v13057_v39 }
 0x310   : > { %9774 = vmatmul.mubr.msk.f32.gmra.mrb[14].mxu0 %vm603_vm5, %v13290_v28 }
 0x311   : > { %9776 = vmatprep.mubr.msk.f32.mxu0 %vm603_vm5, %v13296_v37 }
 0x312   : > { %9577 = vmatmul.mubr.msk.f32.gmra.mrb[48].mxu1 %vm603_vm5, %v13069_v21 }
 0x313   : > { %9579 = vmatprep.mubr.msk.f32.mxu1 %vm603_vm5, %v13073_v17 }
 0x314   : > { %9777 = vmatmul.mubr.msk.f32.gmra.mrb[16].mxu0 %vm603_vm5, %v13302_v61 }
 0x315   : > { %9779 = vmatprep.mubr.msk.f32.mxu0 %vm603_vm5, %v13308_v57 }
 0x316   : > { %9580 = vmatmul.mubr.msk.f32.gmra.mrb[50].mxu1 %vm603_vm5, %v13085_v27 }
 0x317   : > { %9582 = vmatprep.mubr.msk.f32.mxu1 %vm603_vm5, %v13089_v45 }
 0x318   : > { %9780 = vmatmul.mubr.msk.f32.gmra.mrb[18].mxu0 %vm603_vm5, %v13314_v16 }
 0x319   : > { %9782 = vmatprep.mubr.msk.f32.mxu0 %vm603_vm5, %v13320_v44 }
 0x31a   : > { %9583 = vmatmul.mubr.msk.f32.gmra.mrb[52].mxu1 %vm603_vm5, %v13101_v47 }
 0x31b   : > { %9585 = vmatprep.mubr.msk.f32.mxu1 %vm603_vm5, %v13105_v18 }
 0x31c   : > { %9783 = vmatmul.mubr.msk.f32.gmra.mrb[20].mxu0 %vm603_vm5, %v13326_v59 }
 0x31d   : > { %9785 = vmatprep.mubr.msk.f32.mxu0 %vm603_vm5, %v13332_v22 }
 0x31e   : > { %9586 = vmatmul.mubr.msk.f32.gmra.mrb[54].mxu1 %vm603_vm5, %v13117_v25 }
 0x31f   : > { %9588 = vmatprep.mubr.msk.f32.mxu1 %vm603_vm5, %v13121_v48 }
 0x320   : > { %9786 = vmatmul.mubr.msk.f32.gmra.mrb[22].mxu0 %vm603_vm5, %v13338_v1 }
 0x321   : > { %9788 = vmatprep.mubr.msk.f32.mxu0 %vm603_vm5, %v13344_v12 }
 0x322   : > { %9589 = vmatmul.mubr.msk.f32.gmra.mrb[56].mxu1 %vm603_vm5, %v13133_v4 }
 0x323   : > { %9591 = vmatprep.mubr.msk.f32.mxu1 %vm603_vm5, %v13137_v32 }
 0x324   : > { %9789 = vmatmul.mubr.msk.f32.gmra.mrb[24].mxu0 %vm603_vm5, %v13349_v49 }
 0x325   : > { %9791 = vmatprep.mubr.msk.f32.mxu0 %vm603_vm5, %v13354_v35 }
 0x326   : > { %9592 = vmatmul.mubr.msk.f32.gmra.mrb[58].mxu1 %vm603_vm5, %v13149_v38 }
 0x327   : > { %9594 = vmatprep.mubr.msk.f32.mxu1 %vm603_vm5, %v13153_v2 }
 0x328   : > { %9792 = vmatmul.mubr.msk.f32.gmra.mrb[26].mxu0 %vm603_vm5, %v13360_v53 }
 0x329   : > { %9794 = vmatprep.mubr.msk.f32.mxu0 %vm603_vm5, %v13366_v11 }
 0x32a   : > { %9595 = vmatmul.mubr.msk.f32.gmra.mrb[60].mxu1 %vm603_vm5, %v13165_v51 }
 0x32b   : > { %9597 = vmatprep.mubr.msk.f32.mxu1 %vm603_vm5, %v10960_v41 }
 0x32c   : > { %9795 = vmatmul.mubr.msk.f32.gmra.mrb[28].mxu0 %vm603_vm5, %v13372_v20 }
 0x32d   : > { %9797 = vmatprep.mubr.msk.f32.mxu0 %vm603_vm5, %v13378_v43 }
 0x32e   : > { %9598 = vmatmul.mubr.msk.f32.gmra.mrb[62].mxu1 %vm603_vm5, %v10961_v62 }
 0x32f   : > { %9600 = vmatprep.mubr.msk.f32.mxu1 %vm603_vm5, %v10962_v36 }
 0x330   : > { %9798 = vmatmul.mubr.msk.f32.gmra.mrb[30].mxu0 %vm603_vm5, %v13384_v42 }
 0x331   : > { %9800 = vmatprep.mubr.msk.f32.mxu0 %vm603_vm5, %v13390_v0 }
 0x332   : > { %9601 = vmatmul.mubr.msk.f32.gmra.mrb[64].mxu1 %vm603_vm5, %v10963_v6 }
 0x333   : > { %9603 = vmatprep.mubr.msk.f32.mxu1 %vm603_vm5, %v12851_v5  ;;  %v7226_v5 = vld [vmem:[#allocation2 + $0x182] sm:$0xff] }
 0x334   : > { %9801 = vmatmul.mubr.msk.f32.gmra.mrb[32].mxu0 %vm603_vm5, %v13396_v15 }
 0x335   : > { %9803 = vmatprep.mubr.msk.f32.mxu0 %vm603_vm5, %v13402_v60 }
 0x336   : > { %9604 = vmatmul.mubr.msk.f32.gmra.mrb[66].mxu1 %vm603_vm5, %v12853_v50  ;;  %v7227_v50 = vld [vmem:[#allocation2 + $0x18a] sm:$0xff] }
 0x337   : > { %9606 = vmatprep.mubr.msk.f32.mxu1 %vm603_vm5, %v12923_v46  ;;  %v7228_v46 = vld [vmem:[#allocation2 + $0x19a] sm:$0xff] }
 0x338   : > { %9804 = vmatmul.mubr.msk.f32.gmra.mrb[34].mxu0 %vm603_vm5, %v13408_v26 }
 0x339   : > { %9806 = vmatprep.mubr.msk.f32.mxu0 %vm603_vm5, %v13413_v9 }
 0x33a   : > { %9607 = vmatmul.mubr.msk.f32.gmra.mrb[68].mxu1 %vm603_vm5, %v12925_v54  ;;  %v7229_v54 = vld [vmem:[#allocation2 + $0x1a2] sm:$0xff] }
 0x33b   : > { %9609 = vmatprep.mubr.msk.f32.mxu1 %vm603_vm5, %v12962_v3 }
 0x33c   : > { %9807 = vmatmul.mubr.msk.f32.gmra.mrb[36].mxu0 %vm603_vm5, %v13418_v56 }
 0x33d   : > { %9809 = vmatprep.mubr.msk.f32.mxu0 %vm603_vm5, %v7226_v5 }
 0x33e   : > { %9610 = vmatmul.mubr.msk.f32.gmra.mrb[70].mxu1 %vm603_vm5, %v12964_v63 }
 0x340   : > { %9810 = vmatmul.mubr.msk.f32.gmra.mrb[38].mxu0 %vm603_vm5, %v7227_v50 }
 0x341   : > { %9814 = vmatprep.mubr.msk.f32.mxu0 %vm603_vm5, %v13260_v23 }
 0x344   : > { %9815 = vmatmul.mubr.msk.f32.vlgmr.msra.gmra.mrb[8].mxu0 %vm603_vm5, %v13266_v33 }
 0x345   : > { %9817 = vmatprep.mubr.msk.f32.mxu0 %vm603_vm5, %v13272_v19 }
 0x348   : > { %9818 = vmatmul.mubr.msk.f32.gmra.mrb[10].mxu0 %vm603_vm5, %v13278_v52 }
 0x349   : > { %9820 = vmatprep.mubr.msk.f32.mxu0 %vm603_vm5, %v13284_v24 }
 0x34c   : > { %9821 = vmatmul.mubr.msk.f32.gmra.mrb[12].mxu0 %vm603_vm5, %v13290_v28 }
 0x34d   : > { %9823 = vmatprep.mubr.msk.f32.mxu0 %vm603_vm5, %v13296_v37 }
 0x350   : > { %9824 = vmatmul.mubr.msk.f32.gmra.mrb[14].mxu0 %vm603_vm5, %v13302_v61 }
 0x351   : > { %9826 = vmatprep.mubr.msk.f32.mxu0 %vm603_vm5, %v13308_v57 }
 0x354   : > { %9827 = vmatmul.mubr.msk.f32.gmra.mrb[16].mxu0 %vm603_vm5, %v13314_v16 }
 0x355   : > { %9829 = vmatprep.mubr.msk.f32.mxu0 %vm603_vm5, %v13320_v44 }
 0x358   : > { %9830 = vmatmul.mubr.msk.f32.gmra.mrb[18].mxu0 %vm603_vm5, %v13326_v59 }
 0x359   : > { %9832 = vmatprep.mubr.msk.f32.mxu0 %vm603_vm5, %v13332_v22 }
 0x35c   : > { %9833 = vmatmul.mubr.msk.f32.gmra.mrb[20].mxu0 %vm603_vm5, %v13338_v1  ;;  %v13653_v1 = vld [vmem:[%s13956_s6] ss:$0 sm:$0xff] }
 0x35d   : > { %9835 = vmatprep.mubr.msk.f32.mxu0 %vm603_vm5, %v13344_v12 }
 0x360   : > { %9836 = vmatmul.mubr.msk.f32.gmra.mrb[22].mxu0 %vm603_vm5, %v13349_v49 }
 0x361   : > { %9838 = vmatprep.mubr.msk.f32.mxu0 %vm603_vm5, %v13354_v35 }
 0x364   : > { %9839 = vmatmul.mubr.msk.f32.gmra.mrb[24].mxu0 %vm603_vm5, %v13360_v53 }
 0x365   : > { %9841 = vmatprep.mubr.msk.f32.mxu0 %vm603_vm5, %v13366_v11 }
 0x368   : > { %9842 = vmatmul.mubr.msk.f32.gmra.mrb[26].mxu0 %vm603_vm5, %v13372_v20 }
 0x369   : > { %9844 = vmatprep.mubr.msk.f32.mxu0 %vm603_vm5, %v13378_v43 }
 0x36c   : > { %9845 = vmatmul.mubr.msk.f32.gmra.mrb[28].mxu0 %vm603_vm5, %v13384_v42 }
 0x36d   : > { %9847 = vmatprep.mubr.msk.f32.mxu0 %vm603_vm5, %v13390_v0 }
 0x370   : > { %9848 = vmatmul.mubr.msk.f32.gmra.mrb[30].mxu0 %vm603_vm5, %v13396_v15 }
 0x371   : > { %9850 = vmatprep.mubr.msk.f32.mxu0 %vm603_vm5, %v13402_v60 }
 0x374   : > { %9851 = vmatmul.mubr.msk.f32.gmra.mrb[32].mxu0 %vm603_vm5, %v13408_v26 }
 0x375   : > { %9853 = vmatprep.mubr.msk.f32.mxu0 %vm603_vm5, %v13413_v9 }
 0x378   : > { %9854 = vmatmul.mubr.msk.f32.gmra.mrb[34].mxu0 %vm603_vm5, %v13418_v56 }
 0x379   : > { %9856 = vmatprep.mubr.msk.f32.mxu0 %vm603_vm5, %v7226_v5 }
 0x37c   : > { %9857 = vmatmul.mubr.msk.f32.gmra.mrb[36].mxu0 %vm603_vm5, %v7227_v50 }
 0x37d   : > { %9859 = vmatprep.mubr.msk.f32.mxu0 %vm603_vm5, %v7228_v46 }
 0x380   : > { %9860 = vmatmul.mubr.msk.f32.gmra.mrb[38].mxu0 %vm603_vm5, %v7229_v54 }
 0x3d5   : > { %v9566_v3 = vpop.f32.mrb[40].mxu1 }
 0x3d6   : > { %v6471_v63 = vpop.f32.mrb[41].mxu1 }
 0x3d9   : > { %v9569_v39 = vpop.f32.mrb[42].mxu1 }
 0x3da   : > { %v6481_v21 = vpop.f32.mrb[43].mxu1 }
 0x3dd   : > { %v9572_v17 = vpop.f32.mrb[44].mxu1 }
 0x3de   : > { %v6491_v27 = vpop.f32.mrb[45].mxu1 }
 0x3e1   : > { %v9575_v45 = vpop.f32.mrb[46].mxu1 }
 0x3e2   : > { %v6501_v47 = vpop.f32.mrb[47].mxu1 }
 0x3e5   : > { %v13602_v18 = vpop.f32.mrb[48].mxu1 }
 0x3e6   : > { %v13604_v25 = vpop.f32.mrb[49].mxu1 }
 0x3e9   : > { %v13606_v48 = vpop.f32.mrb[50].mxu1 }
 0x3ea   : > { %v13608_v4 = vpop.f32.mrb[51].mxu1 }
 0x3ed   : > { %v13610_v32 = vpop.f32.mrb[52].mxu1 }
 0x3ee   : > { %v13612_v38 = vpop.f32.mrb[53].mxu1 }
 0x3f1   : > { %v13614_v2 = vpop.f32.mrb[54].mxu1 }
 0x3f2   : > { %v13616_v51 = vpop.f32.mrb[55].mxu1 }
 0x3f5   : > { %v13618_v55 = vpop.f32.mrb[56].mxu1 }
 0x3f6   : > { %v13620_v40 = vpop.f32.mrb[57].mxu1 }
 0x3f9   : > { %v13622_v31 = vpop.f32.mrb[58].mxu1 }
 0x3fa   : > { %v13624_v14 = vpop.f32.mrb[59].mxu1 }
 0x3fd   : > { %v13626_v23 = vpop.f32.mrb[60].mxu1 }
 0x3fe   : > { %v13628_v33 = vpop.f32.mrb[61].mxu1 }
 0x401   : > { %v13630_v19 = vpop.f32.mrb[62].mxu1 }
 0x402   : > { %v13632_v52 = vpop.f32.mrb[63].mxu1 }
 0x405   : > { %v13634_v24 = vpop.f32.mrb[64].mxu1 }
 0x406   : > { %v13636_v28 = vpop.f32.mrb[65].mxu1 }
 0x409   : > { %v13638_v37 = vpop.f32.mrb[66].mxu1 }
 0x40a   : > { %v13640_v61 = vpop.f32.mrb[67].mxu1 }
 0x40d   : > { %v13642_v57 = vpop.f32.mrb[68].mxu1 }
 0x40e   : > { %v13644_v16 = vpop.f32.mrb[69].mxu1 }
 0x411   : > { %v13646_v44 = vpop.f32.mrb[70].mxu1 }
 0x412   : > { %v13648_v59 = vpop.f32.mrb[71].mxu1 }
 0x417   : > { %v9816_v22 = vpop.f32.mrb[8].mxu0 }
 0x418   : > { %v9864_v12 = vadd.f32 %v9816_v22, %v9566_v3  ;;  %v7927_v29 = vpop.f32.mrb[9].mxu0 }
 0x419   : > { %v9865_v49 = vadd.f32 %v7927_v29, %v6471_v63 }
 0x41a   : > { %v13656_v34 = vadd.f32 %v9864_v12, %v13653_v1 }
 0x41b   : > { %v13659_v35 = vadd.f32 %v9865_v49, %v13653_v1  ;;  %v9819_v53 = vpop.f32.mrb[10].mxu0 }
 0x41c   : > { %v8158_v11 = vsub.f32 0.0, %v13656_v34  ;;  %v9866_v20 = vadd.f32 %v9819_v53, %v9569_v39  ;;  %v7937_v43 = vpop.f32.mrb[11].mxu0 }
 0x41d   : > { %v8157_v42 = vsub.f32 0.0, %v13659_v35  ;;  %v9867_v0 = vadd.f32 %v7937_v43, %v6481_v21 }
 0x41e   : > { %v8191_v15 = vmul.f32 1.442695, %v8158_v11  ;;  %v13664_v60 = vadd.f32 %v9866_v20, %v13653_v1 }
 0x41f   : > { %v8189_v8 = vmul.f32 1.442695, %v8157_v42  ;;  %v13667_v26 = vadd.f32 %v9867_v0, %v13653_v1  ;;  %v9822_v9 = vpop.f32.mrb[12].mxu0 }
 0x420   : > { %10787 = vpow2.f32 %v8191_v15  ;;  %v8160_v10 = vsub.f32 0.0, %v13664_v60  ;;  %v9868_v13 = vadd.f32 %v9822_v9, %v9572_v17  ;;  %v7947_v56 = vpop.f32.mrb[13].mxu0 }
 0x421   : > { %10789 = vpow2.f32 %v8189_v8  ;;  %v8159_v7 = vsub.f32 0.0, %v13667_v26  ;;  %v9869_v30 = vadd.f32 %v7947_v56, %v6491_v27 }
 0x422   : > { %v8195_v58 = vmul.f32 1.442695, %v8160_v10  ;;  %v13672_v41 = vadd.f32 %v9868_v13, %v13653_v1 }
 0x423   : > { %v8193_v62 = vmul.f32 1.442695, %v8159_v7  ;;  %v13675_v36 = vadd.f32 %v9869_v30, %v13653_v1  ;;  %v9825_v6 = vpop.f32.mrb[14].mxu0 }
 0x424   : > { %10791 = vpow2.f32 %v8195_v58  ;;  %v8162_v5 = vsub.f32 0.0, %v13672_v41  ;;  %v9870_v50 = vadd.f32 %v9825_v6, %v9575_v45  ;;  %v7957_v46 = vpop.f32.mrb[15].mxu0 }
 0x425   : > { %10793 = vpow2.f32 %v8193_v62  ;;  %v8161_v54 = vsub.f32 0.0, %v13675_v36  ;;  %v9871_v3 = vadd.f32 %v7957_v46, %v6501_v47 }
 0x426   : > { %v8199_v63 = vmul.f32 1.442695, %v8162_v5  ;;  %v13680_v39 = vadd.f32 %v9870_v50, %v13653_v1 }
 0x427   : > { %v8197_v21 = vmul.f32 1.442695, %v8161_v54  ;;  %v13683_v17 = vadd.f32 %v9871_v3, %v13653_v1  ;;  %v9828_v27 = vpop.f32.mrb[16].mxu0 }
 0x428   : > { %10795 = vpow2.f32 %v8199_v63  ;;  %v8164_v22 = vsub.f32 0.0, %v13680_v39  ;;  %v9872_v12 = vadd.f32 %v9828_v27, %v13602_v18  ;;  %v7967_v45 = vpop.f32.mrb[17].mxu0 }
 0x429   : > { %10797 = vpow2.f32 %v8197_v21  ;;  %v8163_v29 = vsub.f32 0.0, %v13683_v17  ;;  %v9873_v47 = vadd.f32 %v7967_v45, %v13604_v25 }
 0x42a   : > { %v10788_v49 = vpop.eup %10787  ;;  %v8203_v53 = vmul.f32 1.442695, %v8164_v22  ;;  %v13690_v11 = vadd.f32 %v9872_v12, %v13653_v1 }
 0x42b   : > { %v10790_v20 = vpop.eup %10789  ;;  %v8254_v43 = vadd.f32 1.0, %v10788_v49  ;;  %v8201_v42 = vmul.f32 1.442695, %v8163_v29  ;;  %v13693_v0 = vadd.f32 %v9873_v47, %v13653_v1  ;;  %v9831_v15 = vpop.f32.mrb[18].mxu0 }
 0x42c   : > { %v8253_v8 = vadd.f32 1.0, %v10790_v20  ;;  %10799 = vpow2.f32 %v8203_v53  ;;  %v8166_v18 = vsub.f32 0.0, %v13690_v11  ;;  %v9874_v9 = vadd.f32 %v9831_v15, %v13606_v48  ;;  %v7977_v10 = vpop.f32.mrb[19].mxu0 }
 0x42d   : > { %10801 = vrcp.f32 %v8254_v43  ;;  %v8165_v25 = vsub.f32 0.0, %v13693_v0  ;;  %v9875_v13 = vadd.f32 %v7977_v10, %v13608_v4  ;;  %v8382_v10 = vld [vmem:[%s11082_s13 + $0x9] sm:$0xff] }
 0x42e   : > { %v10792_v56 = vpop.eup %10791  ;;  %10803 = vrcp.f32 %v8253_v8  ;;  %v8207_v7 = vmul.f32 1.442695, %v8166_v18  ;;  %v13700_v30 = vadd.f32 %v9874_v9, %v13653_v1 }
 0x42f   : > { %v10794_v58 = vpop.eup %10793  ;;  %v8256_v62 = vadd.f32 1.0, %v10792_v56  ;;  %10805 = vpow2.f32 %v8201_v42  ;;  %v8205_v6 = vmul.f32 1.442695, %v8165_v25  ;;  %v13703_v5 = vadd.f32 %v9875_v13, %v13653_v1  ;;  %v9834_v48 = vpop.f32.mrb[20].mxu0 }
 0x430   : > { %v8255_v50 = vadd.f32 1.0, %v10794_v58  ;;  %10807 = vpow2.f32 %v8207_v7  ;;  %v8168_v46 = vsub.f32 0.0, %v13700_v30  ;;  %v9876_v4 = vadd.f32 %v9834_v48, %v13610_v32  ;;  %v7987_v54 = vpop.f32.mrb[21].mxu0 }
 0x431   : > { %10809 = vrcp.f32 %v8256_v62  ;;  %v8167_v3 = vsub.f32 0.0, %v13703_v5  ;;  %v9877_v63 = vadd.f32 %v7987_v54, %v13612_v38 }
 0x432   : > { %v10796_v21 = vpop.eup %10795  ;;  %10811 = vrcp.f32 %v8255_v50  ;;  %v8211_v27 = vmul.f32 1.442695, %v8168_v46  ;;  %v13710_v22 = vadd.f32 %v9876_v4, %v13653_v1 }
 0x433   : > { %v10798_v12 = vpop.eup %10797  ;;  %v8258_v45 = vadd.f32 1.0, %v10796_v21  ;;  %10813 = vpow2.f32 %v8205_v6  ;;  %v8209_v29 = vmul.f32 1.442695, %v8167_v3  ;;  %v13713_v47 = vadd.f32 %v9877_v63, %v13653_v1  ;;  %v9837_v32 = vpop.f32.mrb[22].mxu0 }
 0x434   : > { %v8257_v49 = vadd.f32 1.0, %v10798_v12  ;;  %10815 = vpow2.f32 %v8211_v27  ;;  %v8170_v38 = vsub.f32 0.0, %v13710_v22  ;;  %v9878_v53 = vadd.f32 %v9837_v32, %v13614_v2  ;;  %v7997_v20 = vpop.f32.mrb[23].mxu0  ;;  %v8384_v12 = vld [vmem:[%s11082_s13 + $0x21] sm:$0xff] }
 0x435   : > { %10817 = vrcp.f32 %v8258_v45  ;;  %v8169_v43 = vsub.f32 0.0, %v13713_v47  ;;  %v9879_v42 = vadd.f32 %v7997_v20, %v13616_v51  ;;  %v8381_v51 = vld [vmem:[%s11082_s13 + $0x1] sm:$0xff] }
 0x436   : > { %v10800_v15 = vpop.eup %10799  ;;  %10819 = vrcp.f32 %v8257_v49  ;;  %v8215_v8 = vmul.f32 1.442695, %v8170_v38  ;;  %v13721_v18 = vadd.f32 %v9878_v53, %v13653_v1  ;;  %v8383_v38 = vld [vmem:[%s11082_s13 + $0x19] sm:$0xff] }
 0x437   : > { %v10802_v9 = vpop.eup %10801  ;;  %v8260_v25 = vadd.f32 1.0, %v10800_v15  ;;  %10821 = vpow2.f32 %v8209_v29  ;;  %v8213_v13 = vmul.f32 1.442695, %v8169_v43  ;;  %v13725_v2 = vadd.f32 %v9879_v42, %v13653_v1  ;;  %v9840_v56 = vpop.f32.mrb[24].mxu0 }
 0x438   : > { %v10804_v7 = vpop.eup %10803  ;;  %v8350_v58 = vmul.f32 %v10802_v9, %v13656_v34  ;;  %10823 = vpow2.f32 %v8215_v8  ;;  %v8172_v62 = vsub.f32 0.0, %v13721_v18  ;;  %v9880_v6 = vadd.f32 %v9840_v56, %v13618_v55  ;;  %v8007_v48 = vpop.f32.mrb[25].mxu0 }
 0x439   : > { %v10806_v50 = vpop.eup %10805  ;;  %v8349_v46 = vmul.f32 %v10804_v7, %v13659_v35  ;;  %10825 = vrcp.f32 %v8260_v25  ;;  %v8171_v34 = vsub.f32 0.0, %v13725_v2  ;;  %v9881_v4 = vadd.f32 %v8007_v48, %v13620_v40  ;;  %v8386_v7 = vld [vmem:[%s11082_s13 + $0x39] sm:$0xff] }
 0x43a   : > { %v10808_v54 = vpop.eup %10807  ;;  %v8414_v3 = vadd.f32 %v8382_v10, %v8350_v58  ;;  %v8259_v63 = vadd.f32 1.0, %v10806_v50  ;;  %10827 = vpow2.f32 %v8213_v13  ;;  %v8219_v55 = vmul.f32 1.442695, %v8172_v62 }
 0x43b   : > { %v10810_v21 = vpop.eup %10809  ;;  %v8413_v27 = vadd.f32 %v8381_v51, %v8349_v46  ;;  %v8262_v45 = vadd.f32 1.0, %v10808_v54  ;;  %v8217_v29 = vmul.f32 1.442695, %v8171_v34  ;;  %v13741_v35 = vadd.f32 %v9880_v6, %v13653_v1  ;;  %v9843_v32 = vpop.f32.mrb[26].mxu0  ;;  %v8385_v6 = vld [vmem:[%s11082_s13 + $0x31] sm:$0xff] }
 0x43c   : > { %v10812_v49 = vpop.eup %10811  ;;  %8446 = vst.msk [vmem:[%s13734_s9 + $0x8] sm:$0xff] %vm481_vm2, %v8414_v3  ;;  %v8352_v40 = vmul.f32 %v10810_v21, %v13664_v60  ;;  %10829 = vrcp.f32 %v8259_v63  ;;  %v13748_v53 = vadd.f32 %v9881_v4, %v13653_v1  ;;  %v9882_v20 = vadd.f32 %v9843_v32, %v13622_v31  ;;  %v8017_v43 = vpop.f32.mrb[27].mxu0 }
 0x43d   : > { %v10814_v42 = vpop.eup %10813  ;;  %8445 = vst.msk [vmem:[%s13734_s9] sm:$0xff] %vm481_vm2, %v8413_v27  ;;  %v8351_v15 = vmul.f32 %v10812_v49, %v13667_v26  ;;  %10831 = vrcp.f32 %v8262_v45  ;;  %v8174_v8 = vsub.f32 0.0, %v13741_v35  ;;  %v9883_v60 = vadd.f32 %v8017_v43, %v13624_v14  ;;  %v8388_v45 = vld [vmem:[%s11082_s13 + $0x51] sm:$0xff] }
 0x43e   : > { %v10816_v9 = vpop.eup %10815  ;;  %v8416_v10 = vadd.f32 %v8384_v12, %v8352_v40  ;;  %v8261_v25 = vadd.f32 1.0, %v10814_v42  ;;  %10833 = vpow2.f32 %v8219_v55  ;;  %v8173_v13 = vsub.f32 0.0, %v13748_v53 }
 0x43f   : > { %v10818_v31 = vpop.eup %10817  ;;  %v8415_v56 = vadd.f32 %v8383_v38, %v8351_v15  ;;  %v8264_v58 = vadd.f32 1.0, %v10816_v9  ;;  %10835 = vpow2.f32 %v8217_v29  ;;  %v8223_v26 = vmul.f32 1.442695, %v8174_v8  ;;  %v9846_v51 = vpop.f32.mrb[28].mxu0  ;;  %v8387_v9 = vld [vmem:[%s11082_s13 + $0x49] sm:$0xff] }
 0x440   : > { %v10820_v62 = vpop.eup %10819  ;;  %8448 = vst.msk [vmem:[%s13734_s9 + $0x18] sm:$0xff] %vm481_vm2, %v8416_v10  ;;  %v8354_v14 = vmul.f32 %v10818_v31, %v13672_v41  ;;  %10837 = vrcp.f32 %v8261_v25  ;;  %v8221_v48 = vmul.f32 1.442695, %v8173_v13  ;;  %v13763_v50 = vadd.f32 %v9882_v20, %v13653_v1  ;;  %v8027_v46 = vpop.f32.mrb[29].mxu0  ;;  %v8390_v31 = vld [vmem:[%s11082_s13 + $0x69] sm:$0xff] }
 0x441   : > { %v10822_v34 = vpop.eup %10821  ;;  %8447 = vst.msk [vmem:[%s13734_s9 + $0x10] sm:$0xff] %vm481_vm2, %v8415_v56  ;;  %v8353_v4 = vmul.f32 %v10820_v62, %v13675_v36  ;;  %10839 = vrcp.f32 %v8264_v58  ;;  %v13769_v54 = vadd.f32 %v9883_v60, %v13653_v1  ;;  %v9884_v41 = vadd.f32 %v9846_v51, %v13626_v23 }
 0x442   : > { %v10824_v3 = vpop.eup %10823  ;;  %v8418_v63 = vadd.f32 %v8386_v7, %v8354_v14  ;;  %v8263_v55 = vadd.f32 1.0, %v10822_v34  ;;  %10841 = vpow2.f32 %v8223_v26  ;;  %v8176_v21 = vsub.f32 0.0, %v13763_v50 }
 0x443   : > { %v10826_v27 = vpop.eup %10825  ;;  %v8417_v12 = vadd.f32 %v8385_v6, %v8353_v4  ;;  %v8266_v29 = vadd.f32 1.0, %v10824_v3  ;;  %10843 = vpow2.f32 %v8221_v48  ;;  %v8175_v36 = vsub.f32 0.0, %v13769_v54  ;;  %v9849_v32 = vpop.f32.mrb[30].mxu0 }
 0x444   : > { %v10828_v49 = vpop.eup %10827  ;;  %8450 = vst.msk [vmem:[%s13734_s9 + $0x28] sm:$0xff] %vm481_vm2, %v8418_v63  ;;  %v8356_v23 = vmul.f32 %v10826_v27, %v13680_v39  ;;  %10845 = vrcp.f32 %v8263_v55  ;;  %v8227_v40 = vmul.f32 1.442695, %v8176_v21  ;;  %v13779_v38 = vadd.f32 %v9884_v41, %v13653_v1  ;;  %v8037_v20 = vpop.f32.mrb[31].mxu0  ;;  %v8392_v55 = vld [vmem:[%s11082_s13 + $0x81] sm:$0xff] }
 0x445   : > { %8449 = vst.msk [vmem:[%s13734_s9 + $0x20] sm:$0xff] %vm481_vm2, %v8417_v12  ;;  %10847 = vrcp.f32 %v8266_v29  ;;  %v8265_v43 = vadd.f32 1.0, %v10828_v49  ;;  %v8225_v42 = vmul.f32 1.442695, %v8175_v36  ;;  %v9885_v15 = vadd.f32 %v8027_v46, %v13628_v33 }
 0x446   : > { %v10830_v8 = vpop.eup %10829  ;;  %v8420_v60 = vadd.f32 %v8388_v45, %v8356_v23  ;;  %10849 = vpow2.f32 %v8227_v40  ;;  %v8178_v39 = vsub.f32 0.0, %v13779_v38  ;;  %v9886_v10 = vadd.f32 %v9849_v32, %v13630_v19 }
 0x447   : > { %v10832_v25 = vpop.eup %10831  ;;  %v8355_v13 = vmul.f32 %v10830_v8, %v13683_v17  ;;  %10851 = vrcp.f32 %v8265_v43  ;;  %v13790_v56 = vadd.f32 %v9885_v15, %v13653_v1  ;;  %v9887_v7 = vadd.f32 %v8037_v20, %v13632_v52  ;;  %v9852_v33 = vpop.f32.mrb[32].mxu0  ;;  %v8391_v15 = vld [vmem:[%s11082_s13 + $0x79] sm:$0xff] }
 0x448   : > { %v10834_v58 = vpop.eup %10833  ;;  %8452 = vst.msk [vmem:[%s13734_s9 + $0x38] sm:$0xff] %vm481_vm2, %v8420_v60  ;;  %v8358_v26 = vmul.f32 %v10832_v25, %v13690_v11  ;;  %10853 = vpow2.f32 %v8225_v42  ;;  %v8231_v19 = vmul.f32 1.442695, %v8178_v39  ;;  %v13797_v51 = vadd.f32 %v9886_v10, %v13653_v1  ;;  %v8047_v17 = vpop.f32.mrb[33].mxu0  ;;  %v8389_v11 = vld [vmem:[%s11082_s13 + $0x61] sm:$0xff] }
 0x449   : > { %v10836_v62 = vpop.eup %10835  ;;  %v8419_v14 = vadd.f32 %v8387_v9, %v8355_v13  ;;  %v8268_v6 = vadd.f32 1.0, %v10834_v58  ;;  %v8177_v52 = vsub.f32 0.0, %v13790_v56  ;;  %v13801_v48 = vadd.f32 %v9887_v7, %v13653_v1  ;;  %v8394_v9 = vld [vmem:[%s11082_s13 + $0x99] sm:$0xff] }
 0x44a   : > { %v10838_v46 = vpop.eup %10837  ;;  %v8422_v34 = vadd.f32 %v8390_v31, %v8358_v26  ;;  %v8267_v4 = vadd.f32 1.0, %v10836_v62  ;;  %10855 = vpow2.f32 %v8231_v19  ;;  %v8180_v41 = vsub.f32 0.0, %v13797_v51  ;;  %v8393_v19 = vld [vmem:[%s11082_s13 + $0x91] sm:$0xff] }
 0x44b   : > { %v10840_v3 = vpop.eup %10839  ;;  %8451 = vst.msk [vmem:[%s13734_s9 + $0x30] sm:$0xff] %vm481_vm2, %v8419_v14  ;;  %v8357_v63 = vmul.f32 %v10838_v46, %v13693_v0  ;;  %10857 = vrcp.f32 %v8268_v6  ;;  %v8229_v21 = vmul.f32 1.442695, %v8177_v52  ;;  %v8179_v27 = vsub.f32 0.0, %v13801_v48  ;;  %v9855_v12 = vpop.f32.mrb[34].mxu0 }
 0x44c   : > { %v10842_v45 = vpop.eup %10841  ;;  %8454 = vst.msk [vmem:[%s13734_s9 + $0x48] sm:$0xff] %vm481_vm2, %v8422_v34  ;;  %v8360_v29 = vmul.f32 %v10840_v3, %v13700_v30  ;;  %10859 = vrcp.f32 %v8267_v4  ;;  %v8235_v36 = vmul.f32 1.442695, %v8180_v41  ;;  %v9888_v32 = vadd.f32 %v9852_v33, %v13634_v24  ;;  %v8057_v49 = vpop.f32.mrb[35].mxu0 }
 0x44d   : > { %v10844_v0 = vpop.eup %10843  ;;  %v8421_v23 = vadd.f32 %v8389_v11, %v8357_v63  ;;  %v8270_v40 = vadd.f32 1.0, %v10842_v45  ;;  %10861 = vpow2.f32 %v8229_v21  ;;  %v8233_v20 = vmul.f32 1.442695, %v8179_v27 }
 0x44e   : > { %v10846_v43 = vpop.eup %10845  ;;  %v8424_v42 = vadd.f32 %v8392_v55, %v8360_v29  ;;  %v8269_v8 = vadd.f32 1.0, %v10844_v0  ;;  %10863 = vpow2.f32 %v8235_v36  ;;  %v13816_v30 = vadd.f32 %v9888_v32, %v13653_v1  ;;  %v8396_v55 = vld [vmem:[%s11082_s13 + $0xb1] sm:$0xff]  ;;  %v8395_v36 = vld [vmem:[%s11082_s13 + $0xa9] sm:$0xff] }
 0x44f   : > { %v10848_v60 = vpop.eup %10847  ;;  %8453 = vst.msk [vmem:[%s13734_s9 + $0x40] sm:$0xff] %vm481_vm2, %v8421_v23  ;;  %v8359_v24 = vmul.f32 %v10846_v43, %v13703_v5  ;;  %10865 = vrcp.f32 %v8270_v40  ;;  %v9889_v39 = vadd.f32 %v8047_v17, %v13636_v28  ;;  %v9890_v10 = vadd.f32 %v9855_v12, %v13638_v37  ;;  %v9858_v25 = vpop.f32.mrb[36].mxu0 }
 0x450   : > { %v10850_v13 = vpop.eup %10849  ;;  %8456 = vst.msk [vmem:[%s13734_s9 + $0x58] sm:$0xff] %vm481_vm2, %v8424_v42  ;;  %v8362_v31 = vmul.f32 %v10848_v60, %v13710_v22  ;;  %10867 = vrcp.f32 %v8269_v8  ;;  %v8182_v7 = vsub.f32 0.0, %v13816_v30  ;;  %v9891_v33 = vadd.f32 %v8057_v49, %v13640_v61  ;;  %v8067_v58 = vpop.f32.mrb[37].mxu0 }
 0x451   : > { %v10852_v5 = vpop.eup %10851  ;;  %v8423_v26 = vadd.f32 %v8391_v15, %v8359_v24  ;;  %v8272_v28 = vadd.f32 1.0, %v10850_v13  ;;  %10869 = vpow2.f32 %v8233_v20  ;;  %v13831_v37 = vadd.f32 %v9889_v39, %v13653_v1  ;;  %v8398_v24 = vld [vmem:[%s11082_s13 + $0xc9] sm:$0xff]  ;;  %v8397_v39 = vld [vmem:[%s11082_s13 + $0xc1] sm:$0xff] }
 0x452   : > { %v10854_v17 = vpop.eup %10853  ;;  %v8426_v62 = vadd.f32 %v8394_v9, %v8362_v31  ;;  %v8361_v22 = vmul.f32 %v10852_v5, %v13713_v47  ;;  %v8239_v14 = vmul.f32 1.442695, %v8182_v7  ;;  %v13835_v6 = vadd.f32 %v9890_v10, %v13653_v1 }
 0x453   : > { %8455 = vst.msk [vmem:[%s13734_s9 + $0x50] sm:$0xff] %vm481_vm2, %v8423_v26  ;;  %10871 = vrcp.f32 %v8272_v28  ;;  %v8271_v61 = vadd.f32 1.0, %v10854_v17  ;;  %v8181_v52 = vsub.f32 0.0, %v13831_v37  ;;  %v13841_v46 = vadd.f32 %v9891_v33, %v13653_v1  ;;  %v9861_v34 = vpop.f32.mrb[38].mxu0  ;;  %v8400_v28 = vld [vmem:[%s11082_s13 + $0xe1] sm:$0xff] }
 0x454   : > { %v10856_v11 = vpop.eup %10855  ;;  %8458 = vst.msk [vmem:[%s13734_s9 + $0x68] sm:$0xff] %vm481_vm2, %v8426_v62  ;;  %v8425_v47 = vadd.f32 %v8393_v19, %v8361_v22  ;;  %10873 = vpow2.f32 %v8239_v14  ;;  %v8184_v4 = vsub.f32 0.0, %v13835_v6  ;;  %v9892_v41 = vadd.f32 %v9858_v25, %v13642_v57  ;;  %v8077_v3 = vpop.f32.mrb[39].mxu0 }
 0x455   : > { %v10858_v63 = vpop.eup %10857  ;;  %10875 = vrcp.f32 %v8271_v61  ;;  %v8274_v21 = vadd.f32 1.0, %v10856_v11  ;;  %v8237_v27 = vmul.f32 1.442695, %v8181_v52  ;;  %v8183_v12 = vsub.f32 0.0, %v13841_v46  ;;  %v8399_v61 = vld [vmem:[%s11082_s13 + $0xd9] sm:$0xff] }
 0x456   : > { %v10860_v45 = vpop.eup %10859  ;;  %8457 = vst.msk [vmem:[%s13734_s9 + $0x60] sm:$0xff] %vm481_vm2, %v8425_v47  ;;  %v8364_v29 = vmul.f32 %v10858_v63, %v13721_v18  ;;  %v8243_v32 = vmul.f32 1.442695, %v8184_v4  ;;  %v13854_v49 = vadd.f32 %v9892_v41, %v13653_v1  ;;  %v9893_v57 = vadd.f32 %v8067_v58, %v13644_v16  ;;  %v8402_v4 = vld [vmem:[%s11082_s13 + $0xf9] sm:$0xff] }
 0x457   : > { %v10862_v0 = vpop.eup %10861  ;;  %v8363_v23 = vmul.f32 %v10860_v45, %v13725_v2  ;;  %10877 = vrcp.f32 %v8274_v21  ;;  %v8241_v40 = vmul.f32 1.442695, %v8183_v12  ;;  %v9894_v20 = vadd.f32 %v9861_v34, %v13646_v44  ;;  %v8401_v12 = vld [vmem:[%s11082_s13 + $0xf1] sm:$0xff] }
 0x458   : > { %v10864_v43 = vpop.eup %10863  ;;  %v8428_v42 = vadd.f32 %v8396_v55, %v8364_v29  ;;  %v8273_v18 = vadd.f32 1.0, %v10862_v0  ;;  %10879 = vpow2.f32 %v8237_v27  ;;  %v8186_v15 = vsub.f32 0.0, %v13854_v49 }
 0x459   : > { %v10866_v8 = vpop.eup %10865  ;;  %v8427_v60 = vadd.f32 %v8395_v36, %v8363_v23  ;;  %v8276_v16 = vadd.f32 1.0, %v10864_v43  ;;  %10881 = vpow2.f32 %v8243_v32  ;;  %v13862_v2 = vadd.f32 %v9893_v57, %v13653_v1  ;;  %v8404_v32 = vld [vmem:[%s11082_s13 + $0x111] sm:$0xff] }
 0x45a   : > { %v10868_v9 = vpop.eup %10867  ;;  %8460 = vst.msk [vmem:[%s13734_s9 + $0x78] sm:$0xff] %vm481_vm2, %v8428_v42  ;;  %v8366_v44 = vmul.f32 %v10866_v8, %v13741_v35  ;;  %10883 = vrcp.f32 %v8273_v18  ;;  %v8247_v10 = vmul.f32 1.442695, %v8186_v15  ;;  %v13869_v25 = vadd.f32 %v9894_v20, %v13653_v1  ;;  %v8403_v42 = vld [vmem:[%s11082_s13 + $0x109] sm:$0xff] }
 0x45b   : > { %v10870_v13 = vpop.eup %10869  ;;  %8459 = vst.msk [vmem:[%s13734_s9 + $0x70] sm:$0xff] %vm481_vm2, %v8427_v60  ;;  %v8365_v31 = vmul.f32 %v10868_v9, %v13748_v53  ;;  %10885 = vrcp.f32 %v8276_v16  ;;  %v8185_v7 = vsub.f32 0.0, %v13862_v2  ;;  %v9895_v33 = vadd.f32 %v8077_v3, %v13648_v59  ;;  %v8406_v16 = vld [vmem:[%s11082_s13 + $0x129] sm:$0xff] }
 0x45c   : > { %v8430_v58 = vadd.f32 %v8398_v24, %v8366_v44  ;;  %v8275_v35 = vadd.f32 1.0, %v10870_v13  ;;  %10887 = vpow2.f32 %v8241_v40  ;;  %v8188_v5 = vsub.f32 0.0, %v13869_v25 }
 0x45d   : > { %v10872_v26 = vpop.eup %10871  ;;  %v8429_v19 = vadd.f32 %v8397_v39, %v8365_v31  ;;  %10889 = vpow2.f32 %v8247_v10  ;;  %v8245_v17 = vmul.f32 1.442695, %v8185_v7  ;;  %v13879_v62 = vadd.f32 %v9895_v33, %v13653_v1  ;;  %v8405_v31 = vld [vmem:[%s11082_s13 + $0x121] sm:$0xff] }
 0x45e   : > { %v10874_v53 = vpop.eup %10873  ;;  %8462 = vst.msk [vmem:[%s13734_s9 + $0x88] sm:$0xff] %vm481_vm2, %v8430_v58  ;;  %v8368_v59 = vmul.f32 %v10872_v26, %v13763_v50  ;;  %10891 = vrcp.f32 %v8275_v35  ;;  %v8251_v22 = vmul.f32 1.442695, %v8188_v5 }
 0x45f   : > { %v10876_v14 = vpop.eup %10875  ;;  %8461 = vst.msk [vmem:[%s13734_s9 + $0x80] sm:$0xff] %vm481_vm2, %v8429_v19  ;;  %v8278_v52 = vadd.f32 1.0, %v10874_v53  ;;  %10893 = vpow2.f32 %v8245_v17  ;;  %v8187_v34 = vsub.f32 0.0, %v13879_v62  ;;  %v8407_v19 = vld [vmem:[%s11082_s13 + $0x139] sm:$0xff] }
 0x460   : > { %v8432_v1 = vadd.f32 %v8400_v28, %v8368_v59  ;;  %v8367_v11 = vmul.f32 %v10876_v14, %v13769_v54  ;;  %10895 = vpow2.f32 %v8251_v22  ;;  %v8410_v53 = vld [vmem:[%s11082_s13 + $0x159] sm:$0xff]  ;;  %v8409_v22 = vld [vmem:[%s11082_s13 + $0x151] sm:$0xff] }
 0x461   : > { %v10878_v47 = vpop.eup %10877  ;;  %10897 = vrcp.f32 %v8278_v52  ;;  %v8249_v50 = vmul.f32 1.442695, %v8187_v34  ;;  %v8412_v34 = vld [vmem:[%s11082_s13 + $0x171] sm:$0xff] }
 0x462   : > { %v10880_v41 = vpop.eup %10879  ;;  %8464 = vst.msk [vmem:[%s13734_s9 + $0x98] sm:$0xff] %vm481_vm2, %v8432_v1  ;;  %v8431_v3 = vadd.f32 %v8399_v61, %v8367_v11  ;;  %v8370_v63 = vmul.f32 %v10878_v47, %v13779_v38 }
 0x463   : > { %v10882_v55 = vpop.eup %10881  ;;  %v8277_v21 = vadd.f32 1.0, %v10880_v41  ;;  %10899 = vpow2.f32 %v8249_v50 }
 0x464   : > { %v10884_v27 = vpop.eup %10883  ;;  %8463 = vst.msk [vmem:[%s13734_s9 + $0x90] sm:$0xff] %vm481_vm2, %v8431_v3  ;;  %v8434_v54 = vadd.f32 %v8402_v4, %v8370_v63  ;;  %v8280_v45 = vadd.f32 1.0, %v10882_v55 }
 0x465   : > { %v10886_v29 = vpop.eup %10885  ;;  %v8369_v36 = vmul.f32 %v10884_v27, %v13790_v56  ;;  %10901 = vrcp.f32 %v8277_v21 }
 0x466   : > { %v10888_v57 = vpop.eup %10887  ;;  %8466 = vst.msk [vmem:[%s13734_s9 + $0xa8] sm:$0xff] %vm481_vm2, %v8434_v54  ;;  %v8372_v38 = vmul.f32 %v10886_v29, %v13797_v51  ;;  %10903 = vrcp.f32 %v8280_v45 }
 0x467   : > { %v10890_v0 = vpop.eup %10889  ;;  %v8433_v23 = vadd.f32 %v8401_v12, %v8369_v36  ;;  %v8279_v40 = vadd.f32 1.0, %v10888_v57 }
 0x468   : > { %v10892_v20 = vpop.eup %10891  ;;  %v8436_v43 = vadd.f32 %v8404_v32, %v8372_v38  ;;  %v8282_v18 = vadd.f32 1.0, %v10890_v0 }
 0x469   : > { %v10894_v15 = vpop.eup %10893  ;;  %8465 = vst.msk [vmem:[%s13734_s9 + $0xa0] sm:$0xff] %vm481_vm2, %v8433_v23  ;;  %v8371_v56 = vmul.f32 %v10892_v20, %v13801_v48  ;;  %10905 = vrcp.f32 %v8279_v40 }
 0x46a   : > { %v10896_v8 = vpop.eup %10895  ;;  %8468 = vst.msk [vmem:[%s13734_s9 + $0xb8] sm:$0xff] %vm481_vm2, %v8436_v43  ;;  %10907 = vrcp.f32 %v8282_v18  ;;  %v8281_v51 = vadd.f32 1.0, %v10894_v15 }
 0x46b   : > { %v10898_v60 = vpop.eup %10897  ;;  %v8435_v24 = vadd.f32 %v8403_v42, %v8371_v56  ;;  %v8284_v9 = vadd.f32 1.0, %v10896_v8 }
 0x46c   : > { %v8374_v44 = vmul.f32 %v10898_v60, %v13816_v30  ;;  %10909 = vrcp.f32 %v8281_v51  ;;  %v8408_v30 = vld [vmem:[%s11082_s13 + $0x141] sm:$0xff] }
 0x46d   : > { %v10900_v39 = vpop.eup %10899  ;;  %8467 = vst.msk [vmem:[%s13734_s9 + $0xb0] sm:$0xff] %vm481_vm2, %v8435_v24  ;;  %10911 = vrcp.f32 %v8284_v9 }
 0x46e   : > { %v8438_v48 = vadd.f32 %v8406_v16, %v8374_v44  ;;  %v8283_v10 = vadd.f32 1.0, %v10900_v39 }
 0x46f   : > { %v10902_v13 = vpop.eup %10901 }
 0x470   : > { %v10904_v7 = vpop.eup %10903  ;;  %8470 = vst.msk [vmem:[%s13734_s9 + $0xc8] sm:$0xff] %vm481_vm2, %v8438_v48  ;;  %v8373_v33 = vmul.f32 %v10902_v13, %v13831_v37  ;;  %10913 = vrcp.f32 %v8283_v10 }
 0x471   : > { %v8376_v58 = vmul.f32 %v10904_v7, %v13835_v6 }
 0x472   : > { %v8437_v35 = vadd.f32 %v8405_v31, %v8373_v33 }
 0x473   : > { %v10906_v5 = vpop.eup %10905  ;;  %v8440_v26 = vadd.f32 %v8408_v30, %v8376_v58 }
 0x474   : > { %v10908_v28 = vpop.eup %10907  ;;  %8469 = vst.msk [vmem:[%s13734_s9 + $0xc0] sm:$0xff] %vm481_vm2, %v8437_v35  ;;  %v8375_v17 = vmul.f32 %v10906_v5, %v13841_v46 }
 0x475   : > { %8472 = vst.msk [vmem:[%s13734_s9 + $0xd8] sm:$0xff] %vm481_vm2, %v8440_v26  ;;  %v8378_v37 = vmul.f32 %v10908_v28, %v13854_v49  ;;  %v8411_v49 = vld [vmem:[%s11082_s13 + $0x169] sm:$0xff] }
 0x476   : > { %v10910_v6 = vpop.eup %10909  ;;  %v8439_v59 = vadd.f32 %v8407_v19, %v8375_v17 }
 0x477   : > { %v10912_v14 = vpop.eup %10911  ;;  %v8442_v61 = vadd.f32 %v8410_v53, %v8378_v37  ;;  %v8377_v52 = vmul.f32 %v10910_v6, %v13862_v2 }
 0x478   : > { %8471 = vst.msk [vmem:[%s13734_s9 + $0xd0] sm:$0xff] %vm481_vm2, %v8439_v59  ;;  %v8380_v46 = vmul.f32 %v10912_v14, %v13869_v25 }
 0x479   : > { %8474 = vst.msk [vmem:[%s13734_s9 + $0xe8] sm:$0xff] %vm481_vm2, %v8442_v61  ;;  %v8441_v1 = vadd.f32 %v8409_v22, %v8377_v52 }
 0x47a   : > { %v10914_v11 = vpop.eup %10913  ;;  %v8444_v47 = vadd.f32 %v8412_v34, %v8380_v46 }
 0x47b   : > { %8473 = vst.msk [vmem:[%s13734_s9 + $0xe0] sm:$0xff] %vm481_vm2, %v8441_v1  ;;  %v8379_v4 = vmul.f32 %v10914_v11, %v13879_v62 }
 0x47c   : > { %8476 = vst.msk [vmem:[%s13734_s9 + $0xf8] sm:$0xff] %vm481_vm2, %v8444_v47 }
 0x47d   : > { %v8443_v50 = vadd.f32 %v8411_v49, %v8379_v4 }
 0x47f   : > { %8475 = vst.msk [vmem:[%s13734_s9 + $0xf0] sm:$0xff] %vm481_vm2, %v8443_v50 }
 0x480 PF: > { %s17_s26 = sadd.s32 1, %s10986_s26   ;;  %s14022_s24 = smov %s10982_s25 }
 0x481   : > { %p14_p5 = scmp.ge.s32.totalorder %s17_s26, 4   ;;  %s14023_s25 = smov %s14025_s27 }
 0x483   :  { %16 = sbr.rel (!%p14_p5) target bundleno = 2 (0x2), region = 86 }

</bundles_post_ra>
